<compile_context>
chip_gen: v7x
topology: tpu7x:2x2x1
jax: 0.10.0
libtpu: 0.0.40
codegen_flags: <defaults>
</compile_context>

<pallas_src>
import functools

import numpy as np
import jax
import jax.numpy as jnp
from jax import lax
from jax.experimental import pallas as pl
from jax.experimental.pallas import tpu as pltpu


# ------------------------------------------------------------------ Pallas kernel

def _segnet_up3_kernel(xup_ref, iup_ref, tgt_ref, msk_ref,
                       w1_ref, b1_ref, w2_ref, b2_ref, w3_ref, b3_ref,
                       o_ref, buf_ref, *, wp, p_pad, guard):
    """Fused MaxUnpool2d(2,2) + 3x(3x3 conv + folded BN + ReLU), one batch element.

    xup_ref : (1, Cin, P_pad)  nearest-duplicated unpool values, padded-flat layout
    iup_ref : (1, Cin, P_pad)  nearest-duplicated flat output indices (int32, pad = -1)
    tgt_ref : (1, P_pad)       flat output index of each padded position (-2 on pad)
    msk_ref : (1, P_pad)       1.0 at interior positions, 0.0 on pad ring / tail pad
    wK_ref  : (Cout, 9*Cin)    folded conv+BN weights (column order (dy*3+dx)*Cin + i)
    bK_ref  : (Cout, 1)        folded conv-bias + BN shift
    o_ref   : (1, Cout, P_pad) output, padded-flat layout (wrapper crops)
    buf_ref : (Cin, P_pad + 2*guard) VMEM scratch: [guard | padded map | guard]
    """
    P = p_pad
    G = guard

    x = xup_ref[0]                       # (Cin, P)
    idx = iup_ref[0]                     # (Cin, P) int32
    tgt = tgt_ref[...]                   # (1, P)   int32
    msk = msk_ref[...]                   # (1, P)   f32

    # ---- MaxUnpool2d(2, 2): keep a value only at the position its index targets.
    y = jnp.where(idx == tgt, x, 0.0)    # (Cin, P), zero on pad ring / tail pad

    # Scratch buffer: guards make every shifted 3x3-tap slice an in-bounds
    # static slice; zeros so the pad ring / guards act as exact zero padding.
    buf_ref[...] = jnp.zeros_like(buf_ref)
    buf_ref[:, G:G + P] = y

    shifts = tuple((dy - 1) * wp + (dx - 1) for dy in range(3) for dx in range(3))

    def conv_bn_relu(w_ref, b_ref):
        # im2col-style tap stack: (9*Cin, P); one MXU matmul per layer.
        taps = jnp.concatenate(
            [buf_ref[:, G + s:G + s + P] for s in shifts], axis=0)
        acc = jnp.dot(w_ref[...], taps, preferred_element_type=jnp.float32)
        z = acc + b_ref[...]                                    # folded BN/bias shift
        return jnp.maximum(z, 0.0) * msk                        # ReLU + re-zero pad

    h = conv_bn_relu(w1_ref, b1_ref)     # (Cin, P)
    buf_ref[:, G:G + P] = h
    h = conv_bn_relu(w2_ref, b2_ref)     # (Cin, P)
    buf_ref[:, G:G + P] = h
    h = conv_bn_relu(w3_ref, b3_ref)     # (Cout, P)
    o_ref[0] = h.astype(o_ref.dtype)


# ------------------------------------------------------------------ wrapper

@functools.partial(jax.jit, static_argnames=("out_hw",))
def segnet_up3_forward(x, indices, folded, *, out_hw):
    """x: (N, Cin, H, W), indices: (N, Cin, H, W) int (flat into Hout*Wout)."""
    N, Cin, H, W = x.shape
    Hout, Wout = out_hw
    assert Hout == 2 * H and Wout == 2 * W, "MaxUnpool2d(2,2) expects 2x output size"
    Hp, Wp = Hout + 2, Wout + 2
    P = Hp * Wp
    P_pad = ((P + 127) // 128) * 128            # lane-dense, multiple of 128
    G = ((Wp + 1 + 127) // 128) * 128           # guard >= Wp+1, lane-aligned
    Cout = folded[2][0].shape[0]

    # Nearest-2x duplication of values / indices (layout prep for the in-kernel
    # index-match unpool), zero / -1 padded ring, flattened + padded to P_pad.
    xu = jnp.repeat(jnp.repeat(x, 2, axis=2), 2, axis=3)
    iu = jnp.repeat(jnp.repeat(indices.astype(jnp.int32), 2, axis=2), 2, axis=3)
    xu = jnp.pad(xu, ((0, 0), (0, 0), (1, 1), (1, 1))).reshape(N, Cin, P)
    iu = jnp.pad(iu, ((0, 0), (0, 0), (1, 1), (1, 1)),
                 constant_values=-1).reshape(N, Cin, P)
    xu = jnp.pad(xu, ((0, 0), (0, 0), (0, P_pad - P)))
    iu = jnp.pad(iu, ((0, 0), (0, 0), (0, P_pad - P)), constant_values=-1)

    # Constant per-position tables: target flat output index + interior mask.
    ph = np.arange(Hp)[:, None]
    pw = np.arange(Wp)[None, :]
    interior = (ph >= 1) & (ph <= Hout) & (pw >= 1) & (pw <= Wout)
    tgt_np = np.full((P_pad,), -2, np.int32)
    msk_np = np.zeros((P_pad,), np.float32)
    tgt_np[:P] = np.where(interior, (ph - 1) * Wout + (pw - 1), -2).reshape(P)
    msk_np[:P] = interior.astype(np.float32).reshape(P)
    tgt = jnp.asarray(tgt_np.reshape(1, P_pad))
    msk = jnp.asarray(msk_np.reshape(1, P_pad))

    (w1, b1), (w2, b2), (w3, b3) = folded

    kernel = functools.partial(_segnet_up3_kernel, wp=Wp, p_pad=P_pad, guard=G)

    def bcast_spec(shape):
        return pl.BlockSpec(shape, lambda n, _s=len(shape): (0,) * _s)

    out_flat = pl.pallas_call(
        kernel,
        out_shape=jax.ShapeDtypeStruct((N, Cout, P_pad), x.dtype),
        grid=(N,),
        in_specs=[
            pl.BlockSpec((1, Cin, P_pad), lambda n: (n, 0, 0)),
            pl.BlockSpec((1, Cin, P_pad), lambda n: (n, 0, 0)),
            bcast_spec(tgt.shape),
            bcast_spec(msk.shape),
            bcast_spec(w1.shape), bcast_spec(b1.shape),
            bcast_spec(w2.shape), bcast_spec(b2.shape),
            bcast_spec(w3.shape), bcast_spec(b3.shape),
        ],
        out_specs=pl.BlockSpec((1, Cout, P_pad), lambda n: (n, 0, 0)),
        scratch_shapes=[pltpu.VMEM((Cin, P_pad + 2 * G), jnp.float32)],
        compiler_params=pltpu.CompilerParams(dimension_semantics=("parallel",)),
    )(xu, iu, tgt, msk, w1, b1, w2, b2, w3, b3)

    # Crop the lane padding + padded ring (pure slice; kernel stays lane-dense).
    out = out_flat[:, :, :P].reshape(N, Cout, Hp, Wp)[:, :, 1:Hout + 1, 1:Wout + 1]
    return out


# ------------------------------------------------------------------ parameters

def _fold_conv_bn(w, b, gamma, beta, mean, var, eps):
    """Fold eval-mode BN (and conv bias) into matmul weight + additive shift."""
    cout, cin = w.shape[0], w.shape[1]
    scale = gamma / jnp.sqrt(var + eps)                               # (Cout,)
    w_col = jnp.transpose(scale[:, None, None, None] * w, (0, 2, 3, 1))
    w_col = w_col.reshape(cout, 9 * cin)                              # [(dy*3+dx)*cin + i]
    b_fold = (scale * (b - mean) + beta)[:, None]                     # (Cout, 1)
    return w_col, b_fold


def init_params(key, in_size, out_size):
    """Deterministic synthetic params for conv1/conv2/conv3 (+ BN in eval mode)."""
    eps = 1e-5
    layer_io = [(in_size, in_size), (in_size, in_size), (in_size, out_size)]
    raw, folded = [], []
    for i, (cin, cout) in enumerate(layer_io):
        k = jax.random.fold_in(key, i)
        kw, kb, kg, kbe, km, kv = jax.random.split(k, 6)
        w = 0.2 * jax.random.normal(kw, (cout, cin, 3, 3), jnp.float32)
        b = 0.1 * jax.random.normal(kb, (cout,), jnp.float32)
        gamma = 1.0 + 0.1 * jax.random.normal(kg, (cout,), jnp.float32)
        beta = 0.1 * jax.random.normal(kbe, (cout,), jnp.float32)
        mean = 0.1 * jax.random.normal(km, (cout,), jnp.float32)
        var = jnp.abs(jax.random.normal(kv, (cout,), jnp.float32)) + 0.5
        raw.append(dict(w=w, b=b, gamma=gamma, beta=beta, mean=mean, var=var, eps=eps))
        folded.append(_fold_conv_bn(w, b, gamma, beta, mean, var, eps))
    return raw, tuple(folded)


# ------------------------------------------------------------------ plain-JAX reference

def reference_forward(x, indices, raw_params, out_hw):
    """Mirrors PyTorch: max_unpool2d -> 3x(conv3x3+bias -> BN(eval) -> ReLU)."""
    N, C, H, W = x.shape
    Hout, Wout = out_hw
    up = jnp.zeros((N, C, Hout * Wout), x.dtype)
    flat_idx = indices.reshape(N, C, H * W)
    vals = x.reshape(N, C, H * W)
    up = jax.vmap(jax.vmap(lambda u, i, v: u.at[i].set(v)))(up, flat_idx, vals)
    out = up.reshape(N, C, Hout, Wout)
    for p in raw_params:
        out = lax.conv_general_dilated(
            out, p["w"], window_strides=(1, 1), padding=((1, 1), (1, 1)),
            dimension_numbers=("NCHW", "OIHW", "NCHW"))
        out = out + p["b"][None, :, None, None]
        out = ((out - p["mean"][None, :, None, None])
               / jnp.sqrt(p["var"][None, :, None, None] + p["eps"])
               * p["gamma"][None, :, None, None]
               + p["beta"][None, :, None, None])
        out = jnp.maximum(out, 0.0)
    return out


# ------------------------------------------------------------------ main

if __name__ == "__main__":
    key = jax.random.PRNGKey(0)
    k_pre, k_par = jax.random.split(key)

    N, in_size, out_size = 2, 4, 6
    H, W = 16, 16                       # module input spatial size (pre-unpool)
    Hout, Wout = 2 * H, 2 * W

    # Build (inputs, indices) the way SegNet produces them: MaxPool2d(2,2) with
    # return_indices=True on a random pre-image (indices are flat into Hout*Wout).
    pre = jax.random.normal(k_pre, (N, in_size, Hout, Wout), jnp.float32)
    blocks = pre.reshape(N, in_size, H, 2, W, 2).transpose(0, 1, 2, 4, 3, 5)
    blocks = blocks.reshape(N, in_size, H, W, 4)
    arg = jnp.argmax(blocks, axis=-1).astype(jnp.int32)            # 0..3 = 2*r + c
    inputs = jnp.max(blocks, axis=-1)
    r, c = arg // 2, arg % 2
    hh = 2 * jnp.arange(H, dtype=jnp.int32)[None, None, :, None] + r
    ww = 2 * jnp.arange(W, dtype=jnp.int32)[None, None, None, :] + c
    indices = hh * Wout + ww                                       # (N, Cin, H, W)

    raw_params, folded = init_params(k_par, in_size, out_size)

    out = segnet_up3_forward(inputs, indices, folded, out_hw=(Hout, Wout))
    out = jax.block_until_ready(out)
    assert out.shape == (N, out_size, Hout, Wout), out.shape

    ref = reference_forward(inputs, indices, raw_params, (Hout, Wout))
    np.testing.assert_allclose(np.asarray(out), np.asarray(ref), rtol=1e-4, atol=1e-4)

    print("KERNEL_OK")
</pallas_src>

<mosaic_0001>
module attributes {stable_mosaic.version = 11 : i64} {
  func.func @_segnet_up3_kernel(%arg0: i32, %arg1: memref<1x4x1280xf32, #tpu.memory_space<vmem>>, %arg2: memref<1x4x1280xi32, #tpu.memory_space<vmem>>, %arg3: memref<1x1280xi32, #tpu.memory_space<vmem>>, %arg4: memref<1x1280xf32, #tpu.memory_space<vmem>>, %arg5: memref<4x36xf32, #tpu.memory_space<vmem>>, %arg6: memref<4x1xf32, #tpu.memory_space<vmem>>, %arg7: memref<4x36xf32, #tpu.memory_space<vmem>>, %arg8: memref<4x1xf32, #tpu.memory_space<vmem>>, %arg9: memref<6x36xf32, #tpu.memory_space<vmem>>, %arg10: memref<6x1xf32, #tpu.memory_space<vmem>>, %arg11: memref<1x6x1280xf32, #tpu.memory_space<vmem>>, %arg12: memref<4x1536xf32, #tpu.memory_space<vmem>>) attributes {dimension_semantics = [#tpu.dimension_semantics<parallel>], iteration_bounds = array<i64: 2>, scalar_prefetch = 0 : i64, scratch_operands = 1 : i64, tpu.core_type = #tpu.core_type<tc>, window_params = [{transform_indices = @transform_0, window_bounds = array<i64: 1, 4, 1280>}, {transform_indices = @transform_1, window_bounds = array<i64: 1, 4, 1280>}, {pipeline_mode = #tpu.pipeline_mode<synchronous>, transform_indices = @transform_2, window_bounds = array<i64: 1, 1280>}, {pipeline_mode = #tpu.pipeline_mode<synchronous>, transform_indices = @transform_3, window_bounds = array<i64: 1, 1280>}, {pipeline_mode = #tpu.pipeline_mode<synchronous>, transform_indices = @transform_4, window_bounds = array<i64: 4, 36>}, {pipeline_mode = #tpu.pipeline_mode<synchronous>, transform_indices = @transform_5, window_bounds = array<i64: 4, 1>}, {pipeline_mode = #tpu.pipeline_mode<synchronous>, transform_indices = @transform_6, window_bounds = array<i64: 4, 36>}, {pipeline_mode = #tpu.pipeline_mode<synchronous>, transform_indices = @transform_7, window_bounds = array<i64: 4, 1>}, {pipeline_mode = #tpu.pipeline_mode<synchronous>, transform_indices = @transform_8, window_bounds = array<i64: 6, 36>}, {pipeline_mode = #tpu.pipeline_mode<synchronous>, transform_indices = @transform_9, window_bounds = array<i64: 6, 1>}, {transform_indices = @transform_10, window_bounds = array<i64: 1, 6, 1280>}]} {
    %c0 = arith.constant 0 : index
    %c0_0 = arith.constant 0 : index
    %c0_1 = arith.constant 0 : index
    %0 = vector.load %arg1[%c0, %c0_0, %c0_1] : memref<1x4x1280xf32, #tpu.memory_space<vmem>>, vector<1x4x1280xf32>
    %1 = vector.shape_cast %0 : vector<1x4x1280xf32> to vector<4x1280xf32>
    %c0_2 = arith.constant 0 : index
    %c0_3 = arith.constant 0 : index
    %c0_4 = arith.constant 0 : index
    %2 = vector.load %arg2[%c0_2, %c0_3, %c0_4] : memref<1x4x1280xi32, #tpu.memory_space<vmem>>, vector<1x4x1280xi32>
    %3 = vector.shape_cast %2 : vector<1x4x1280xi32> to vector<4x1280xi32>
    %c0_5 = arith.constant 0 : index
    %c0_6 = arith.constant 0 : index
    %4 = vector.load %arg3[%c0_5, %c0_6] : memref<1x1280xi32, #tpu.memory_space<vmem>>, vector<1x1280xi32>
    %c0_7 = arith.constant 0 : index
    %c0_8 = arith.constant 0 : index
    %5 = vector.load %arg4[%c0_7, %c0_8] : memref<1x1280xf32, #tpu.memory_space<vmem>>, vector<1x1280xf32>
    %6 = vector.broadcast %4 : vector<1x1280xi32> to vector<4x1280xi32>
    %7 = arith.cmpi eq, %3, %6 : vector<4x1280xi32>
    %cst = arith.constant 0.000000e+00 : f32
    %8 = vector.broadcast %cst : f32 to vector<4x1280xf32>
    %9 = arith.select %7, %1, %8 : vector<4x1280xi1>, vector<4x1280xf32>
    %cst_9 = arith.constant 0.000000e+00 : f32
    %10 = vector.broadcast %cst_9 : f32 to vector<4x1536xf32>
    %c0_10 = arith.constant 0 : index
    %c0_11 = arith.constant 0 : index
    %11 = vector.load %arg12[%c0_10, %c0_11] : memref<4x1536xf32, #tpu.memory_space<vmem>>, vector<4x1536xf32>
    tpu.vector_store %arg12[%c0_10, %c0_11], %10 {strides = array<i32>} : memref<4x1536xf32, #tpu.memory_space<vmem>>, vector<4x1536xf32>,
    %c0_12 = arith.constant 0 : index
    %c128 = arith.constant 128 : index
    %12 = vector.load %arg12[%c0_12, %c128] : memref<4x1536xf32, #tpu.memory_space<vmem>>, vector<4x1280xf32>
    tpu.vector_store %arg12[%c0_12, %c128], %9 {strides = array<i32>} : memref<4x1536xf32, #tpu.memory_space<vmem>>, vector<4x1280xf32>,
    %c0_13 = arith.constant 0 : index
    %c93 = arith.constant 93 : index
    %13 = vector.load %arg12[%c0_13, %c93] : memref<4x1536xf32, #tpu.memory_space<vmem>>, vector<4x1280xf32>
    %c0_14 = arith.constant 0 : index
    %c94 = arith.constant 94 : index
    %14 = vector.load %arg12[%c0_14, %c94] : memref<4x1536xf32, #tpu.memory_space<vmem>>, vector<4x1280xf32>
    %c0_15 = arith.constant 0 : index
    %c95 = arith.constant 95 : index
    %15 = vector.load %arg12[%c0_15, %c95] : memref<4x1536xf32, #tpu.memory_space<vmem>>, vector<4x1280xf32>
    %c0_16 = arith.constant 0 : index
    %c127 = arith.constant 127 : index
    %16 = vector.load %arg12[%c0_16, %c127] : memref<4x1536xf32, #tpu.memory_space<vmem>>, vector<4x1280xf32>
    %c0_17 = arith.constant 0 : index
    %c128_18 = arith.constant 128 : index
    %17 = vector.load %arg12[%c0_17, %c128_18] : memref<4x1536xf32, #tpu.memory_space<vmem>>, vector<4x1280xf32>
    %c0_19 = arith.constant 0 : index
    %c129 = arith.constant 129 : index
    %18 = vector.load %arg12[%c0_19, %c129] : memref<4x1536xf32, #tpu.memory_space<vmem>>, vector<4x1280xf32>
    %c0_20 = arith.constant 0 : index
    %c161 = arith.constant 161 : index
    %19 = vector.load %arg12[%c0_20, %c161] : memref<4x1536xf32, #tpu.memory_space<vmem>>, vector<4x1280xf32>
    %c0_21 = arith.constant 0 : index
    %c162 = arith.constant 162 : index
    %20 = vector.load %arg12[%c0_21, %c162] : memref<4x1536xf32, #tpu.memory_space<vmem>>, vector<4x1280xf32>
    %c0_22 = arith.constant 0 : index
    %c163 = arith.constant 163 : index
    %21 = vector.load %arg12[%c0_22, %c163] : memref<4x1536xf32, #tpu.memory_space<vmem>>, vector<4x1280xf32>
    %22 = tpu.concatenate %13, %14, %15, %16, %17, %18, %19, %20, %21 in 0 : vector<4x1280xf32>, vector<4x1280xf32>, vector<4x1280xf32>, vector<4x1280xf32>, vector<4x1280xf32>, vector<4x1280xf32>, vector<4x1280xf32>, vector<4x1280xf32>, vector<4x1280xf32> -> vector<36x1280xf32>
    %c0_23 = arith.constant 0 : index
    %c0_24 = arith.constant 0 : index
    %23 = vector.load %arg5[%c0_23, %c0_24] : memref<4x36xf32, #tpu.memory_space<vmem>>, vector<4x36xf32>
    %cst_25 = arith.constant dense<0.000000e+00> : vector<4x1280xf32>
    %24 = tpu.matmul %23, %22, %cst_25 {dimension_numbers = #tpu.dot_dimension_numbers<[1], [0], [0], [1], [0, 0, 1, 1], [], []>} : vector<4x36xf32>, vector<36x1280xf32>, vector<4x1280xf32> -> vector<4x1280xf32>
    %c0_26 = arith.constant 0 : index
    %c0_27 = arith.constant 0 : index
    %25 = vector.load %arg6[%c0_26, %c0_27] : memref<4x1xf32, #tpu.memory_space<vmem>>, vector<4x1xf32>
    %26 = vector.broadcast %25 : vector<4x1xf32> to vector<4x1280xf32>
    %27 = arith.addf %24, %26 : vector<4x1280xf32>
    %cst_28 = arith.constant 0.000000e+00 : f32
    %28 = vector.broadcast %cst_28 : f32 to vector<4x1280xf32>
    %29 = arith.maximumf %27, %28 : vector<4x1280xf32>
    %30 = vector.broadcast %5 : vector<1x1280xf32> to vector<4x1280xf32>
    %31 = arith.mulf %29, %30 : vector<4x1280xf32>
    %c0_29 = arith.constant 0 : index
    %c128_30 = arith.constant 128 : index
    %32 = vector.load %arg12[%c0_29, %c128_30] : memref<4x1536xf32, #tpu.memory_space<vmem>>, vector<4x1280xf32>
    tpu.vector_store %arg12[%c0_29, %c128_30], %31 {strides = array<i32>} : memref<4x1536xf32, #tpu.memory_space<vmem>>, vector<4x1280xf32>,
    %c0_31 = arith.constant 0 : index
    %c93_32 = arith.constant 93 : index
    %33 = vector.load %arg12[%c0_31, %c93_32] : memref<4x1536xf32, #tpu.memory_space<vmem>>, vector<4x1280xf32>
    %c0_33 = arith.constant 0 : index
    %c94_34 = arith.constant 94 : index
    %34 = vector.load %arg12[%c0_33, %c94_34] : memref<4x1536xf32, #tpu.memory_space<vmem>>, vector<4x1280xf32>
    %c0_35 = arith.constant 0 : index
    %c95_36 = arith.constant 95 : index
    %35 = vector.load %arg12[%c0_35, %c95_36] : memref<4x1536xf32, #tpu.memory_space<vmem>>, vector<4x1280xf32>
    %c0_37 = arith.constant 0 : index
    %c127_38 = arith.constant 127 : index
    %36 = vector.load %arg12[%c0_37, %c127_38] : memref<4x1536xf32, #tpu.memory_space<vmem>>, vector<4x1280xf32>
    %c0_39 = arith.constant 0 : index
    %c128_40 = arith.constant 128 : index
    %37 = vector.load %arg12[%c0_39, %c128_40] : memref<4x1536xf32, #tpu.memory_space<vmem>>, vector<4x1280xf32>
    %c0_41 = arith.constant 0 : index
    %c129_42 = arith.constant 129 : index
    %38 = vector.load %arg12[%c0_41, %c129_42] : memref<4x1536xf32, #tpu.memory_space<vmem>>, vector<4x1280xf32>
    %c0_43 = arith.constant 0 : index
    %c161_44 = arith.constant 161 : index
    %39 = vector.load %arg12[%c0_43, %c161_44] : memref<4x1536xf32, #tpu.memory_space<vmem>>, vector<4x1280xf32>
    %c0_45 = arith.constant 0 : index
    %c162_46 = arith.constant 162 : index
    %40 = vector.load %arg12[%c0_45, %c162_46] : memref<4x1536xf32, #tpu.memory_space<vmem>>, vector<4x1280xf32>
    %c0_47 = arith.constant 0 : index
    %c163_48 = arith.constant 163 : index
    %41 = vector.load %arg12[%c0_47, %c163_48] : memref<4x1536xf32, #tpu.memory_space<vmem>>, vector<4x1280xf32>
    %42 = tpu.concatenate %33, %34, %35, %36, %37, %38, %39, %40, %41 in 0 : vector<4x1280xf32>, vector<4x1280xf32>, vector<4x1280xf32>, vector<4x1280xf32>, vector<4x1280xf32>, vector<4x1280xf32>, vector<4x1280xf32>, vector<4x1280xf32>, vector<4x1280xf32> -> vector<36x1280xf32>
    %c0_49 = arith.constant 0 : index
    %c0_50 = arith.constant 0 : index
    %43 = vector.load %arg7[%c0_49, %c0_50] : memref<4x36xf32, #tpu.memory_space<vmem>>, vector<4x36xf32>
    %cst_51 = arith.constant dense<0.000000e+00> : vector<4x1280xf32>
    %44 = tpu.matmul %43, %42, %cst_51 {dimension_numbers = #tpu.dot_dimension_numbers<[1], [0], [0], [1], [0, 0, 1, 1], [], []>} : vector<4x36xf32>, vector<36x1280xf32>, vector<4x1280xf32> -> vector<4x1280xf32>
    %c0_52 = arith.constant 0 : index
    %c0_53 = arith.constant 0 : index
    %45 = vector.load %arg8[%c0_52, %c0_53] : memref<4x1xf32, #tpu.memory_space<vmem>>, vector<4x1xf32>
    %46 = vector.broadcast %45 : vector<4x1xf32> to vector<4x1280xf32>
    %47 = arith.addf %44, %46 : vector<4x1280xf32>
    %cst_54 = arith.constant 0.000000e+00 : f32
    %48 = vector.broadcast %cst_54 : f32 to vector<4x1280xf32>
    %49 = arith.maximumf %47, %48 : vector<4x1280xf32>
    %50 = vector.broadcast %5 : vector<1x1280xf32> to vector<4x1280xf32>
    %51 = arith.mulf %49, %50 : vector<4x1280xf32>
    %c0_55 = arith.constant 0 : index
    %c128_56 = arith.constant 128 : index
    %52 = vector.load %arg12[%c0_55, %c128_56] : memref<4x1536xf32, #tpu.memory_space<vmem>>, vector<4x1280xf32>
    tpu.vector_store %arg12[%c0_55, %c128_56], %51 {strides = array<i32>} : memref<4x1536xf32, #tpu.memory_space<vmem>>, vector<4x1280xf32>,
    %c0_57 = arith.constant 0 : index
    %c93_58 = arith.constant 93 : index
    %53 = vector.load %arg12[%c0_57, %c93_58] : memref<4x1536xf32, #tpu.memory_space<vmem>>, vector<4x1280xf32>
    %c0_59 = arith.constant 0 : index
    %c94_60 = arith.constant 94 : index
    %54 = vector.load %arg12[%c0_59, %c94_60] : memref<4x1536xf32, #tpu.memory_space<vmem>>, vector<4x1280xf32>
    %c0_61 = arith.constant 0 : index
    %c95_62 = arith.constant 95 : index
    %55 = vector.load %arg12[%c0_61, %c95_62] : memref<4x1536xf32, #tpu.memory_space<vmem>>, vector<4x1280xf32>
    %c0_63 = arith.constant 0 : index
    %c127_64 = arith.constant 127 : index
    %56 = vector.load %arg12[%c0_63, %c127_64] : memref<4x1536xf32, #tpu.memory_space<vmem>>, vector<4x1280xf32>
    %c0_65 = arith.constant 0 : index
    %c128_66 = arith.constant 128 : index
    %57 = vector.load %arg12[%c0_65, %c128_66] : memref<4x1536xf32, #tpu.memory_space<vmem>>, vector<4x1280xf32>
    %c0_67 = arith.constant 0 : index
    %c129_68 = arith.constant 129 : index
    %58 = vector.load %arg12[%c0_67, %c129_68] : memref<4x1536xf32, #tpu.memory_space<vmem>>, vector<4x1280xf32>
    %c0_69 = arith.constant 0 : index
    %c161_70 = arith.constant 161 : index
    %59 = vector.load %arg12[%c0_69, %c161_70] : memref<4x1536xf32, #tpu.memory_space<vmem>>, vector<4x1280xf32>
    %c0_71 = arith.constant 0 : index
    %c162_72 = arith.constant 162 : index
    %60 = vector.load %arg12[%c0_71, %c162_72] : memref<4x1536xf32, #tpu.memory_space<vmem>>, vector<4x1280xf32>
    %c0_73 = arith.constant 0 : index
    %c163_74 = arith.constant 163 : index
    %61 = vector.load %arg12[%c0_73, %c163_74] : memref<4x1536xf32, #tpu.memory_space<vmem>>, vector<4x1280xf32>
    %62 = tpu.concatenate %53, %54, %55, %56, %57, %58, %59, %60, %61 in 0 : vector<4x1280xf32>, vector<4x1280xf32>, vector<4x1280xf32>, vector<4x1280xf32>, vector<4x1280xf32>, vector<4x1280xf32>, vector<4x1280xf32>, vector<4x1280xf32>, vector<4x1280xf32> -> vector<36x1280xf32>
    %c0_75 = arith.constant 0 : index
    %c0_76 = arith.constant 0 : index
    %63 = vector.load %arg9[%c0_75, %c0_76] : memref<6x36xf32, #tpu.memory_space<vmem>>, vector<6x36xf32>
    %cst_77 = arith.constant dense<0.000000e+00> : vector<6x1280xf32>
    %64 = tpu.matmul %63, %62, %cst_77 {dimension_numbers = #tpu.dot_dimension_numbers<[1], [0], [0], [1], [0, 0, 1, 1], [], []>} : vector<6x36xf32>, vector<36x1280xf32>, vector<6x1280xf32> -> vector<6x1280xf32>
    %c0_78 = arith.constant 0 : index
    %c0_79 = arith.constant 0 : index
    %65 = vector.load %arg10[%c0_78, %c0_79] : memref<6x1xf32, #tpu.memory_space<vmem>>, vector<6x1xf32>
    %66 = vector.broadcast %65 : vector<6x1xf32> to vector<6x1280xf32>
    %67 = arith.addf %64, %66 : vector<6x1280xf32>
    %cst_80 = arith.constant 0.000000e+00 : f32
    %68 = vector.broadcast %cst_80 : f32 to vector<6x1280xf32>
    %69 = arith.maximumf %67, %68 : vector<6x1280xf32>
    %70 = vector.broadcast %5 : vector<1x1280xf32> to vector<6x1280xf32>
    %71 = arith.mulf %69, %70 : vector<6x1280xf32>
    %c0_81 = arith.constant 0 : index
    %c0_82 = arith.constant 0 : index
    %c0_83 = arith.constant 0 : index
    %72 = vector.load %arg11[%c0_81, %c0_82, %c0_83] : memref<1x6x1280xf32, #tpu.memory_space<vmem>>, vector<1x6x1280xf32>
    %73 = vector.shape_cast %72 : vector<1x6x1280xf32> to vector<6x1280xf32>
    %74 = vector.shape_cast %71 : vector<6x1280xf32> to vector<1x6x1280xf32>
    tpu.vector_store %arg11[%c0_81, %c0_82, %c0_83], %74 {strides = array<i32>} : memref<1x6x1280xf32, #tpu.memory_space<vmem>>, vector<1x6x1280xf32>,
    return
  }
  func.func @transform_0(%arg0: i32) -> (i32, i32, i32) {
    %c0_i32 = arith.constant 0 : i32
    %c0_i32_0 = arith.constant 0 : i32
    %c0_i32_1 = arith.constant 0 : i32
    return %arg0, %c0_i32, %c0_i32_0 : i32, i32, i32
  }
  func.func @transform_1(%arg0: i32) -> (i32, i32, i32) {
    %c0_i32 = arith.constant 0 : i32
    %c0_i32_0 = arith.constant 0 : i32
    %c0_i32_1 = arith.constant 0 : i32
    return %arg0, %c0_i32, %c0_i32_0 : i32, i32, i32
  }
  func.func @transform_2(%arg0: i32) -> (i32, i32) {
    %c0_i32 = arith.constant 0 : i32
    %c0_i32_0 = arith.constant 0 : i32
    %c0_i32_1 = arith.constant 0 : i32
    return %c0_i32, %c0_i32_0 : i32, i32
  }
  func.func @transform_3(%arg0: i32) -> (i32, i32) {
    %c0_i32 = arith.constant 0 : i32
    %c0_i32_0 = arith.constant 0 : i32
    %c0_i32_1 = arith.constant 0 : i32
    return %c0_i32, %c0_i32_0 : i32, i32
  }
  func.func @transform_4(%arg0: i32) -> (i32, i32) {
    %c0_i32 = arith.constant 0 : i32
    %c0_i32_0 = arith.constant 0 : i32
    %c0_i32_1 = arith.constant 0 : i32
    return %c0_i32, %c0_i32_0 : i32, i32
  }
  func.func @transform_5(%arg0: i32) -> (i32, i32) {
    %c0_i32 = arith.constant 0 : i32
    %c0_i32_0 = arith.constant 0 : i32
    %c0_i32_1 = arith.constant 0 : i32
    return %c0_i32, %c0_i32_0 : i32, i32
  }
  func.func @transform_6(%arg0: i32) -> (i32, i32) {
    %c0_i32 = arith.constant 0 : i32
    %c0_i32_0 = arith.constant 0 : i32
    %c0_i32_1 = arith.constant 0 : i32
    return %c0_i32, %c0_i32_0 : i32, i32
  }
  func.func @transform_7(%arg0: i32) -> (i32, i32) {
    %c0_i32 = arith.constant 0 : i32
    %c0_i32_0 = arith.constant 0 : i32
    %c0_i32_1 = arith.constant 0 : i32
    return %c0_i32, %c0_i32_0 : i32, i32
  }
  func.func @transform_8(%arg0: i32) -> (i32, i32) {
    %c0_i32 = arith.constant 0 : i32
    %c0_i32_0 = arith.constant 0 : i32
    %c0_i32_1 = arith.constant 0 : i32
    return %c0_i32, %c0_i32_0 : i32, i32
  }
  func.func @transform_9(%arg0: i32) -> (i32, i32) {
    %c0_i32 = arith.constant 0 : i32
    %c0_i32_0 = arith.constant 0 : i32
    %c0_i32_1 = arith.constant 0 : i32
    return %c0_i32, %c0_i32_0 : i32, i32
  }
  func.func @transform_10(%arg0: i32) -> (i32, i32, i32) {
    %c0_i32 = arith.constant 0 : i32
    %c0_i32_0 = arith.constant 0 : i32
    %c0_i32_1 = arith.constant 0 : i32
    return %arg0, %c0_i32, %c0_i32_0 : i32, i32, i32
  }
}

</mosaic_0001>

<bundles_post_ra>
// kernel: segnet_up3_forward.1
= control target key start
LH: loop header
LB: loop body
LE: loop exit
PB: predicated region body
PF: predicated region fallthrough
CT: control target
= control target key end

     0   :  { %s5100_s13 = smov 0   ;;  %s7111_s0 = inlined_call_operand.vmem [shape: f32[2,4,1280], index: 0, kind: input, shape index: {}]   ;;  %s7112_s1 = inlined_call_operand.vmem [shape: s32[2,4,1280], index: 1, kind: input, shape index: {}]   ;;  %s7113_s2 = inlined_call_operand.vmem [shape: s32[1,1280], index: 2, kind: input, shape index: {}]   ;;  %s7114_s3 = inlined_call_operand.vmem [shape: f32[1,1280], index: 3, kind: input, shape index: {}]   ;;  %s7115_s4 = inlined_call_operand.vmem [shape: f32[4,36], index: 4, kind: input, shape index: {}]   ;;  %s7116_s5 = inlined_call_operand.vmem [shape: f32[4,1], index: 5, kind: input, shape index: {}]   ;;  %s7117_s6 = inlined_call_operand.vmem [shape: f32[4,36], index: 6, kind: input, shape index: {}]   ;;  %s7118_s7 = inlined_call_operand.vmem [shape: f32[4,1], index: 7, kind: input, shape index: {}]   ;;  %s7119_s8 = inlined_call_operand.vmem [shape: f32[6,36], index: 8, kind: input, shape index: {}]   ;;  %s7120_s9 = inlined_call_operand.vmem [shape: f32[6,1], index: 9, kind: input, shape index: {}]   ;;  %s7121_s10 = inlined_call_operand.vmem [shape: f32[2,6,1280], index: 10, kind: output, shape index: {}]  }
   0x1 LB: > { %s3917_s14 = sadd.s32 4294967295, %s5032_s13   ;;  %p3921_p0 = scmp.ge.s32.totalorder %s5032_s13, 1  ;;  %s5032_s13 = sphi %s5100_s13, %s20_s13  }
   0x2   : > { %p322_p1 = scmp.lt.s32.totalorder %s5032_s13, 3 }
   0x4   : > { %p323_p2 = pnand %p3921_p0, %p322_p1 }
   0x6   : > { %326 = sbr.rel (%p323_p2) target bundleno = 1670 (0x686), region = 60 }
   0xd   : > { %p365_p3 = scmp.lt.s32.totalorder %s3917_s14, 1  ;;  %v394_v0 = vlaneseq  ;;  %v7128_v1 = vmov 0.0   ;;  %v390_v3 = vld [vmem:[%s7113_s2] sm:$0xff]  ;;  %v391_v12 = vld [vmem:[%s7113_s2 + $0x8] sm:$0x3]  ;;  %s5035_s26 = smov 127  }
   0xe   : > { %449 = vst [vmem:[#allocation2] sm:$0xff] %v7128_v1  ;;  %450 = vst [vmem:[#allocation2 + $0x8] sm:$0xff] %v7128_v1  ;;  %1249 = vmatprep.mubr.f32.mxu0 %v7128_v1  ;;  %1320 = vmatprep.mubr.f32.mxu1 %v7128_v1  ;;  %s5036_s27 = smov 126   ;;  %s5037_s28 = smov 94   ;;  %vm864_vm5 = vcmask 1043456   ;;  %vm521_vm6 = vcmask 1039360  }
   0xf   : > { %451 = vst [vmem:[#allocation2 + $0x10] sm:$0xff] %v7128_v1  ;;  %452 = vst [vmem:[#allocation2 + $0x18] sm:$0xff] %v7128_v1  ;;  %s7154_s14 = smov (!%p365_p3, %s3917_s14), 1  ;;  %v5118_v2 = vshrl.u32 %v394_v0, 7  ;;  %s5038_s29 = smov 93   ;;  %vm565_vm7 = vcmask 1031168  }
  0x10   : > { %453 = vst [vmem:[#allocation2 + $0x20] sm:$0xff] %v7128_v1  ;;  %454 = vst [vmem:[#allocation2 + $0x28] sm:$0xff] %v7128_v1  ;;  %s4092_s17 = smul.u32 40, %s7154_s14  ;;  %s5039_s30 = smov 92   ;;  %vm609_vm8 = vcmask 769024   ;;  %vm661_vm9 = vcmask 760832  }
  0x11   : > { %v5125_v4 = vsub.s32 0, %v5118_v2  ;;  %v5128_v5 = vsub.s32 1, %v5118_v2  ;;  %v7127_v6 = vsub.s32 2, %v5118_v2  ;;  %v7126_v7 = vsub.s32 3, %v5118_v2  ;;  %s5040_s11 = smov 60   ;;  %s5041_s12 = smov 59  }
  0x12   : > { %v7125_v8 = vsub.s32 4, %v5118_v2  ;;  %v7124_v9 = vsub.s32 5, %v5118_v2  ;;  %v7123_v10 = vsub.s32 6, %v5118_v2  ;;  %v7122_v11 = vsub.s32 7, %v5118_v2  ;;  %s5142_s22 = scalar_lea.vmem %s7111_s0, %s4092_s17  ;;  %s5147_s25 = scalar_lea.vmem %s7112_s1, %s4092_s17 }
  0x13   : > { %v397_v13 = vrot.slane %v390_v3, %v5125_v4  ;;  %v401_v14 = vrot.slane %v390_v3, %v5128_v5  ;;  %v405_v15 = vrot.slane %v390_v3, %v7127_v6  ;;  %v409_v16 = vrot.slane %v390_v3, %v7126_v7  ;;  %v380_v17 = vld [vmem:[%s5142_s22] sm:$0xff]  ;;  %v381_v18 = vld [vmem:[%s5142_s22 + $0x8] sm:$0xff]  ;;  %v387_v25 = vld [vmem:[%s5147_s25 + $0x10] sm:$0xff]  ;;  %s5042_s15 = smov 58   ;;  %s5043_s16 = smov 35  }
  0x14   : > { %v413_v19 = vrot.slane %v390_v3, %v7125_v8  ;;  %v417_v20 = vrot.slane %v390_v3, %v7124_v9  ;;  %v421_v21 = vrot.slane %v390_v3, %v7123_v10  ;;  %v425_v22 = vrot.slane %v390_v3, %v7122_v11  ;;  %v385_v23 = vld [vmem:[%s5147_s25] sm:$0xff]  ;;  %v386_v24 = vld [vmem:[%s5147_s25 + $0x8] sm:$0xff]  ;;  %v382_v30 = vld [vmem:[%s5142_s22 + $0x10] sm:$0xff] }
  0x15   : > { %v434_v26 = vcombine.low %v397_v13, %v401_v14  ;;  %v435_v27 = vcombine.low %v405_v15, %v409_v16  ;;  %v429_v28 = vrot.slane %v391_v12, %v5125_v4  ;;  %v433_v29 = vrot.slane %v391_v12, %v5128_v5  ;;  %v388_v32 = vld [vmem:[%s5147_s25 + $0x18] sm:$0xff]  ;;  %v389_v40 = vld [vmem:[%s5147_s25 + $0x20] sm:$0xff] }
  0x16   : > { %v436_v31 = vcombine.low %v413_v19, %v417_v20  ;;  %v437_v33 = vcombine.low %v421_v21, %v425_v22  ;;  %v383_v34 = vld [vmem:[%s5142_s22 + $0x18] sm:$0xff]  ;;  %v384_v41 = vld [vmem:[%s5142_s22 + $0x20] sm:$0xff]  ;;  %vm716_vm10 = vcmask 752640   ;;  %vm809_vm11 = vcmask 482304  }
  0x17   : > { %vm439_vm0 = vcmp.eq.s32.totalorder %v385_v23, %v434_v26  ;;  %vm440_vm1 = vcmp.eq.s32.totalorder %v386_v24, %v435_v27  ;;  %v438_v38 = vcombine.low %v429_v28, %v433_v29  ;;  %vm853_vm12 = vcmask 474112  }
  0x18   : > { %vm441_vm2 = vcmp.eq.s32.totalorder %v387_v25, %v436_v31  ;;  %v5173_v35 = vsel %vm439_vm0, %v380_v17, 0.0  ;;  %v5175_v36 = vsel %vm440_vm1, %v381_v18, 0.0  ;;  %vm442_vm3 = vcmp.eq.s32.totalorder %v388_v32, %v437_v33 }
  0x19   : > { %v5177_v37 = vsel %vm441_vm2, %v382_v30, 0.0  ;;  %455 = vst [vmem:[#allocation2 + $0x4] sm:$0xff] %v5173_v35  ;;  %456 = vst [vmem:[#allocation2 + $0xc] sm:$0xff] %v5175_v36  ;;  %v5182_v39 = vsel %vm442_vm3, %v383_v34, 0.0  ;;  %vm443_vm4 = vcmp.eq.s32.totalorder %v389_v40, %v438_v38  ;;  %v636_v53 = vcombine.high %v5173_v35, %v5173_v35 }
  0x1a   : > { %457 = vst [vmem:[#allocation2 + $0x14] sm:$0xff] %v5177_v37  ;;  %458 = vst [vmem:[#allocation2 + $0x1c] sm:$0xff] %v5182_v39  ;;  %v5187_v42 = vsel %vm443_vm4, %v384_v41, 0.0  ;;  %v5220_v54 = vcombine.high %v5175_v36, %v5175_v36  ;;  %v688_v55 = vcombine.low %v5173_v35, %v5173_v35  ;;  %v689_v58 = vcombine.low %v5175_v36, %v5175_v36 }
  0x1b   : > { %459 = vst [vmem:[#allocation2 + $0x24] sm:$0xff] %v5187_v42  ;;  %v4143_v56 = vpack.i.bf16 %v636_v53, %v5173_v35  ;;  %v638_v17 = vcombine.high %v5177_v37, %v5177_v37  ;;  %v639_v19 = vcombine.high %v5182_v39, %v5182_v39  ;;  %v690_v20 = vcombine.low %v5177_v37, %v5177_v37 }
  0x1c   : > { %v4148_v57 = vpack.i.bf16 %v5220_v54, %v5175_v36  ;;  %v4153_v59 = vpack.i.bf16 %v5173_v35, %v688_v55  ;;  %v4158_v60 = vpack.i.bf16 %v5175_v36, %v689_v58  ;;  %v691_v23 = vcombine.low %v5182_v39, %v5182_v39 }
  0x1d   : > { %v4213_v18 = vpack.i.bf16 %v638_v17, %v5177_v37  ;;  %v4218_v21 = vpack.i.bf16 %v639_v19, %v5182_v39  ;;  %v4223_v22 = vpack.i.bf16 %v5177_v37, %v690_v20  ;;  %v640_v32 = vcombine.high %v5187_v42, %v5187_v42 }
  0x1e   : > { %v4228_v24 = vpack.i.bf16 %v5182_v39, %v691_v23  ;;  %v692_v34 = vcombine.low %v5187_v42, %v5187_v42  ;;  %vm765_vm13 = vcmask 490496   ;;  %vm1070_vm14 = vcmask 285696  }
  0x1f   : > { %v4268_v33 = vpack.i.bf16 %v640_v32, %v5187_v42  ;;  %vm1161_vm15 = vcmask 293888  }
  0x20   : > { %v5190_v43 = vld [vmem:[#allocation2] sm:$0xff]  ;;  %v5192_v44 = vld [vmem:[#allocation2 + $0x8] sm:$0xff] }
  0x21   : > { %v494_v45 = vcombine.low %v5192_v44, %v5192_v44  ;;  %v5198_v46 = vcombine.high %v5190_v43, %v5190_v43  ;;  %v493_v47 = vcombine.low %v5190_v43, %v5190_v43  ;;  %v5204_v48 = vcombine.high %v5192_v44, %v5192_v44  ;;  %v5237_v61 = vld [vmem:[#allocation2 + $0x10] sm:$0xff]  ;;  %v5239_v62 = vld [vmem:[#allocation2 + $0x18] sm:$0xff] }
  0x22   : > { %v495_v63 = vcombine.low %v5237_v61, %v5237_v61  ;;  %v496_v0 = vcombine.low %v5239_v62, %v5239_v62  ;;  %v5249_v3 = vcombine.high %v5237_v61, %v5237_v61  ;;  %v5257_v14 = vcombine.high %v5239_v62, %v5239_v62  ;;  %v5289_v25 = vld [vmem:[#allocation2 + $0x20] sm:$0xff]  ;;  %v5302_v29 = vld [vmem:[#allocation2 + $0x28] sm:$0xf] }
  0x23   : > { %v4113_v49 = vpack.i.bf16 %v494_v45, %v5190_v43  ;;  %v4123_v50 = vpack.i.bf16 %v5192_v44, %v5198_v46  ;;  %v4118_v51 = vpack.i.bf16 %v493_v47, %v5192_v44  ;;  %v4128_v52 = vpack.i.bf16 %v5190_v43, %v5204_v48 }
  0x24   : > { %v4183_v12 = vpack.i.bf16 %v5237_v61, %v495_v63  ;;  %v4188_v13 = vpack.i.bf16 %v5239_v62, %v496_v0  ;;  %v4193_v15 = vpack.i.bf16 %v5249_v3, %v5237_v61  ;;  %v4198_v16 = vpack.i.bf16 %v5257_v14, %v5239_v62 }
  0x25   : > { %4114 = vrot.lane.b32.xlu0 %v4113_v49, %s5035_s26  ;;  %4124 = vrot.lane.b32.xlu1 %v4123_v50, %s5036_s27  ;;  %v497_v26 = vcombine.low %v5289_v25, %v5289_v25  ;;  %v5300_v28 = vcombine.high %v5289_v25, %v5289_v25  ;;  %v498_v30 = vcombine.low %v5302_v29, %v5302_v29 }
  0x27   : > { %v4253_v27 = vpack.i.bf16 %v5289_v25, %v497_v26  ;;  %v4258_v31 = vpack.i.bf16 %v5300_v28, %v5289_v25 }
  0x29   : > { %4119 = vrot.lane.b32.xlu0 %v4118_v51, %s5035_s26  ;;  %4129 = vrot.lane.b32.xlu1 %v4128_v52, %s5036_s27 }
  0x2d   : > { %4134 = vrot.lane.b32.xlu0 %v4113_v49, %s5037_s28  ;;  %4139 = vrot.lane.b32.xlu1 %v4118_v51, %s5037_s28 }
  0x31   : > { %4144 = vrot.lane.b32.xlu0 %v4143_v56, %s5038_s29  ;;  %4149 = vrot.lane.b32.xlu1 %v4148_v57, %s5038_s29 }
  0x35   : > { %4154 = vrot.lane.b32.xlu0 %v4153_v59, %s5039_s30  ;;  %4159 = vrot.lane.b32.xlu1 %v4158_v60, %s5039_s30 }
  0x39   : > { %4164 = vrot.lane.b32.xlu0 %v4143_v56, %s5040_s11  ;;  %4169 = vrot.lane.b32.xlu1 %v4148_v57, %s5040_s11 }
  0x3d   : > { %4174 = vrot.lane.b32.xlu0 %v4153_v59, %s5041_s12  ;;  %4179 = vrot.lane.b32.xlu1 %v4158_v60, %s5041_s12 }
  0x41   : > { %4184 = vrot.lane.b32.xlu0 %v4183_v12, %s5035_s26  ;;  %4189 = vrot.lane.b32.xlu1 %v4188_v13, %s5035_s26 }
  0x45   : > { %4194 = vrot.lane.b32.xlu0 %v4193_v15, %s5036_s27  ;;  %4199 = vrot.lane.b32.xlu1 %v4198_v16, %s5036_s27 }
  0x49   : > { %4204 = vrot.lane.b32.xlu0 %v4183_v12, %s5037_s28  ;;  %4209 = vrot.lane.b32.xlu1 %v4188_v13, %s5037_s28 }
  0x4d   : > { %831 = vrot.lane.b32.xlu0 %v5173_v35, %s5042_s15  ;;  %833 = vrot.lane.b32.xlu1 %v636_v53, %s5042_s15  ;;  %v476_v35 = vld [vmem:[#allocation2 + $0x2c] sm:$0xf] }
  0x4e   : > { %v693_v38 = vcombine.low %v476_v35, %v476_v35 }
  0x51   : > { %835 = vrot.lane.b32.xlu0 %v5175_v36, %s5042_s15  ;;  %4214 = vrot.lane.b32.xlu1 %v4213_v18, %s5038_s29  ;;  %v4273_v36 = vpack.i.bf16 %v5187_v42, %v692_v34 }
  0x55   : > { %4219 = vrot.lane.b32.xlu0 %v4218_v21, %s5038_s29  ;;  %4224 = vrot.lane.b32.xlu1 %v4223_v22, %s5039_s30 }
  0x59   : > { %4229 = vrot.lane.b32.xlu0 %v4228_v24, %s5039_s30  ;;  %4234 = vrot.lane.b32.xlu1 %v4213_v18, %s5040_s11 }
  0x5d   : > { %4239 = vrot.lane.b32.xlu0 %v4218_v21, %s5040_s11  ;;  %4244 = vrot.lane.b32.xlu1 %v4223_v22, %s5041_s12 }
  0x61   : > { %4249 = vrot.lane.b32.xlu0 %v4228_v24, %s5041_s12  ;;  %4254 = vrot.lane.b32.xlu1 %v4253_v27, %s5035_s26 }
  0x65   : > { %519 = vrot.lane.b32.xlu0 %v498_v30, %s5035_s26  ;;  %4259 = vrot.lane.b32.xlu1 %v4258_v31, %s5036_s27 }
  0x69   : > { %563 = vrot.lane.b32.xlu0 %v5302_v29, %s5036_s27  ;;  %4264 = vrot.lane.b32.xlu1 %v4253_v27, %s5037_s28 }
  0x6d   : > { %607 = vrot.lane.b32.xlu0 %v498_v30, %s5037_s28  ;;  %837 = vrot.lane.b32.xlu1 %v5220_v54, %s5042_s15 }
  0x71   : > { %839 = vrot.lane.b32.xlu0 %v5177_v37, %s5042_s15  ;;  %841 = vrot.lane.b32.xlu1 %v638_v17, %s5042_s15 }
  0x75   : > { %843 = vrot.lane.b32.xlu0 %v5182_v39, %s5042_s15  ;;  %4269 = vrot.lane.b32.xlu1 %v4268_v33, %s5038_s29 }
  0x79   : > { %4274 = vrot.lane.b32.xlu0 %v4273_v36, %s5039_s30  ;;  %714 = vrot.lane.b32.xlu1 %v693_v38, %s5039_s30 }
  0x7d   : > { %4279 = vrot.lane.b32.xlu0 %v4268_v33, %s5040_s11  ;;  %763 = vrot.lane.b32.xlu1 %v476_v35, %s5040_s11 }
  0x81   : > { %4284 = vrot.lane.b32.xlu0 %v4273_v36, %s5041_s12  ;;  %807 = vrot.lane.b32.xlu1 %v693_v38, %s5041_s12 }
  0x85   : > { %845 = vrot.lane.b32.xlu0 %v639_v19, %s5042_s15  ;;  %847 = vrot.lane.b32.xlu1 %v5187_v42, %s5042_s15 }
  0x89   : > { %849 = vrot.lane.b32.xlu0 %v640_v32, %s5042_s15  ;;  %851 = vrot.lane.b32.xlu1 %v476_v35, %s5042_s15 }
  0x97   : > { %v4115_v37 = vpop.permute.xlu0 %4114  ;;  %v5341_v39 = vpop.permute.xlu1 %4124 }
  0x98   : > { %v4117_v16 = vunpack.i.h.bf16 %v4115_v37  ;;  %v4116_v17 = vunpack.i.l.bf16 %v4115_v37  ;;  %v4127_v26 = vunpack.i.h.bf16 %v5341_v39  ;;  %v4126_v27 = vunpack.i.l.bf16 %v5341_v39 }
  0x9a   : > { %v523_v35 = vsel %vm521_vm6, %v4116_v17, %v4117_v16 }
  0x9b   : > { %v5343_v40 = vpop.permute.xlu0 %4119  ;;  %v5345_v41 = vpop.permute.xlu1 %4129 }
  0x9c   : > { %v4121_v15 = vunpack.i.l.bf16 %v5343_v40  ;;  %v4122_v20 = vunpack.i.h.bf16 %v5343_v40  ;;  %v4132_v31 = vunpack.i.h.bf16 %v5345_v41  ;;  %v4131_v32 = vunpack.i.l.bf16 %v5345_v41 }
  0x9e   : > { %v524_v24 = vsel %vm521_vm6, %v4117_v16, %v4121_v15  ;;  %v522_v37 = vsel %vm521_vm6, %v4122_v20, %v4116_v17  ;;  %v567_v16 = vsel %vm565_vm7, %v4126_v27, %v4127_v26  ;;  %v568_v10 = vsel %vm565_vm7, %v4127_v26, %v4131_v32 }
  0x9f   : > { %v4135_v45 = vpop.permute.xlu0 %4134  ;;  %v5347_v47 = vpop.permute.xlu1 %4139  ;;  %v867_v36 = vsel %vm864_vm5, %v5192_v44, %v524_v24  ;;  %v866_v44 = vsel %vm864_vm5, %v5198_v46, %v523_v35  ;;  %v566_v9 = vsel %vm565_vm7, %v4132_v31, %v4126_v27 }
  0xa0   : > { %v4137_v21 = vunpack.i.h.bf16 %v4135_v45  ;;  %v4136_v22 = vunpack.i.l.bf16 %v4135_v45  ;;  %v4141_v23 = vunpack.i.l.bf16 %v5347_v47  ;;  %v4142_v30 = vunpack.i.h.bf16 %v5347_v47 }
  0xa1   : > { %v4293_v46 = vpack.i.bf16 %v867_v36, %v866_v44 }
  0xa2   : > { %v611_v38 = vsel %vm609_vm8, %v4136_v22, %v4137_v21  ;;  %v610_v17 = vsel %vm609_vm8, %v4142_v30, %v4136_v22 }
  0xa3   : > { %v5349_v49 = vpop.permute.xlu0 %4144  ;;  %v5351_v50 = vpop.permute.xlu1 %4149  ;;  %v877_v22 = vsel %vm864_vm5, %v567_v16, %v611_v38  ;;  %v876_v35 = vsel %vm864_vm5, %v566_v9, %v610_v17 }
  0xa4   : > { %v4146_v57 = vunpack.i.l.bf16 %v5349_v49  ;;  %v7130_v39 = vunpack.i.h.bf16 %v5351_v50  ;;  %v4151_v20 = vunpack.i.l.bf16 %v5351_v50  ;;  %v4147_v8 = vunpack.i.h.bf16 %v5349_v49 }
  0xa6   : > { %v663_v17 = vsel %vm661_vm9, %v4147_v8, %v4151_v20 }
  0xa7   : > { %v5353_v51 = vpop.permute.xlu0 %4154  ;;  %v5355_v42 = vpop.permute.xlu1 %4159 }
  0xa8   : > { %v4156_v54 = vunpack.i.l.bf16 %v5353_v51  ;;  %v4157_v45 = vunpack.i.h.bf16 %v5353_v51 }
  0xaa   : > { %v887_v60 = vsel %vm864_vm5, %v4146_v57, %v4156_v54  ;;  %v717_v26 = vsel %vm716_vm10, %v4156_v54, %v4157_v45 }
  0xab   : > { %v5357_v52 = vpop.permute.xlu0 %4164  ;;  %v5359_v53 = vpop.permute.xlu1 %4169 }
  0xac   : > { %v4166_v58 = vunpack.i.l.bf16 %v5357_v52  ;;  %v4167_v31 = vunpack.i.h.bf16 %v5357_v52 }
  0xaf   : > { %v5362_v55 = vpop.permute.xlu0 %4174  ;;  %v5364_v56 = vpop.permute.xlu1 %4179 }
  0xb0   : > { %v4176_v59 = vunpack.i.l.bf16 %v5362_v55  ;;  %v4177_v36 = vunpack.i.h.bf16 %v5362_v55  ;;  %v4181_v38 = vunpack.i.l.bf16 %v5364_v56 }
  0xb2   : > { %v898_v63 = vsel %vm864_vm5, %v4166_v58, %v4176_v59  ;;  %v811_v49 = vsel %vm809_vm11, %v4177_v36, %v4181_v38 }
  0xb3   : > { %v5379_v0 = vpop.permute.xlu0 %4184  ;;  %v5381_v12 = vpop.permute.xlu1 %4189  ;;  %v4288_v13 = vpack.i.bf16 %v898_v63, %v887_v60  ;;  %v4161_v60 = vunpack.i.l.bf16 %v5355_v42  ;;  %v612_v63 = vsel %vm609_vm8, %v4137_v21, %v4141_v23  ;;  %v865_v21 = vsel %vm864_vm5, %v5190_v43, %v522_v37 }
  0xb4   : > { %v878_v30 = vsel %vm864_vm5, %v568_v10, %v612_v63  ;;  %v664_v43 = vsel %vm661_vm9, %v4151_v20, %v7130_v39  ;;  %v4171_v10 = vunpack.i.l.bf16 %v5359_v53  ;;  %v4187_v51 = vunpack.i.h.bf16 %v5379_v0 }
  0xb5   : > { %4289 = vrot.lane.b32.xlu1 %v4288_v13, %s5043_s16  ;;  %v4162_v13 = vunpack.i.h.bf16 %v5355_v42  ;;  %v718_v27 = vsel %vm716_vm10, %v4157_v45, %v4161_v60  ;;  %v4191_v54 = vunpack.i.l.bf16 %v5381_v12  ;;  %v4192_v44 = vunpack.i.h.bf16 %v5381_v12 }
  0xb6   : > { %v4298_v7 = vpack.i.bf16 %v878_v30, %v877_v22  ;;  %v4303_v6 = vpack.i.bf16 %v876_v35, %v865_v21  ;;  %v4186_v39 = vunpack.i.l.bf16 %v5379_v0  ;;  %v766_v0 = vsel %vm765_vm13, %v4166_v58, %v4167_v31 }
  0xb7   : > { %v5385_v18 = vpop.permute.xlu0 %4194  ;;  %v5387_v19 = vpop.permute.xlu1 %4199  ;;  %v719_v9 = vsel %vm716_vm10, %v4161_v60, %v4162_v13  ;;  %v662_v60 = vsel %vm661_vm9, %v4146_v57, %v4147_v8  ;;  %v4172_v57 = vunpack.i.h.bf16 %v5359_v53  ;;  %v767_v55 = vsel %vm765_vm13, %v4167_v31, %v4171_v10 }
  0xb8   : > { %v888_v1 = vsel %vm864_vm5, %v662_v60, %v717_v26  ;;  %v5471_v8 = vsel %vm864_vm5, %v664_v43, %v719_v9  ;;  %v4202_v22 = vunpack.i.h.bf16 %v5387_v19  ;;  %v528_v52 = vsel %vm521_vm6, %v4191_v54, %v4192_v44 }
  0xb9   : > { %v900_v43 = vsel %vm864_vm5, %v767_v55, %v811_v49  ;;  %v4197_v31 = vunpack.i.h.bf16 %v5385_v18  ;;  %v526_v60 = vsel %vm521_vm6, %v4186_v39, %v4187_v51 }
  0xbb   : > { %v5399_v33 = vpop.permute.xlu0 %4204  ;;  %v5401_v34 = vpop.permute.xlu1 %4209 }
  0xbc   : > { %v4207_v30 = vunpack.i.h.bf16 %v5399_v33  ;;  %v4211_v35 = vunpack.i.l.bf16 %v5401_v34  ;;  %v4206_v58 = vunpack.i.l.bf16 %v5399_v33  ;;  %v4212_v26 = vunpack.i.h.bf16 %v5401_v34 }
  0xbf   : > { %v832_v24 = vpop.permute.xlu0 %831  ;;  %v834_v11 = vpop.permute.xlu1 %833 }
  0xc0   : > { %1048 = vrot.lane.b32.xlu0 %v832_v24, %s5043_s16  ;;  %v854_v63 = vsel %vm853_vm12, %v832_v24, %v834_v11  ;;  %v889_v24 = vsel %vm864_vm5, %v663_v17, %v718_v27 }
  0xc1   : > { %v4308_v9 = vpack.i.bf16 %v889_v24, %v888_v1  ;;  %v4182_v1 = vunpack.i.h.bf16 %v5364_v56  ;;  %v869_v24 = vsel %vm864_vm5, %v5237_v61, %v526_v60 }
  0xc3   : > { %v5447_v37 = vpop.permute.xlu0 %835  ;;  %v5449_v45 = vpop.permute.xlu1 %4214 }
  0xc4   : > { %1050 = vrot.lane.b32.xlu0 %v854_v63, %s5043_s16  ;;  %v855_v16 = vsel %vm853_vm12, %v834_v11, %v5447_v37  ;;  %v810_v11 = vsel %vm809_vm11, %v4176_v59, %v4177_v36  ;;  %v527_v59 = vsel %vm521_vm6, %v4187_v51, %v4191_v54  ;;  %v4201_v36 = vunpack.i.l.bf16 %v5387_v19 }
  0xc5   : > { %1052 = vrot.lane.b32.xlu1 %v855_v16, %s5043_s16  ;;  %v899_v27 = vsel %vm864_vm5, %v766_v0, %v810_v11  ;;  %v4196_v54 = vunpack.i.l.bf16 %v5385_v18  ;;  %v871_v16 = vsel %vm864_vm5, %v5239_v62, %v528_v52  ;;  %v615_v18 = vsel %vm609_vm8, %v4207_v30, %v4211_v35 }
  0xc6   : > { %v4313_v40 = vpack.i.bf16 %v900_v43, %v899_v27  ;;  %v616_v62 = vsel %vm609_vm8, %v4211_v35, %v4212_v26  ;;  %v571_v11 = vsel %vm565_vm7, %v4197_v31, %v4201_v36  ;;  %v4216_v49 = vunpack.i.l.bf16 %v5449_v45 }
  0xc7   : > { %v5474_v20 = vpop.permute.xlu0 %4219  ;;  %v5476_v21 = vpop.permute.xlu1 %4224  ;;  %v881_v47 = vsel %vm864_vm5, %v571_v11, %v615_v18  ;;  %v4217_v52 = vunpack.i.h.bf16 %v5449_v45  ;;  %v812_v45 = vsel %vm809_vm11, %v4181_v38, %v4182_v1 }
  0xc8   : > { %4294 = vrot.lane.b32.xlu0 %v4293_v46, %s5043_s16  ;;  %v525_v46 = vsel %vm521_vm6, %v4121_v15, %v4186_v39  ;;  %v572_v15 = vsel %vm565_vm7, %v4201_v36, %v4202_v22  ;;  %v4226_v17 = vunpack.i.l.bf16 %v5476_v21 }
  0xc9   : > { %4299 = vrot.lane.b32.xlu1 %v4298_v7, %s5043_s16  ;;  %v870_v7 = vsel %vm864_vm5, %v5249_v3, %v527_v59  ;;  %v613_v3 = vsel %vm609_vm8, %v4141_v23, %v4206_v58  ;;  %v868_v51 = vsel %vm864_vm5, %v5204_v48, %v525_v46  ;;  %v569_v23 = vsel %vm565_vm7, %v4131_v32, %v4196_v54 }
  0xca   : > { %v4323_v39 = vpack.i.bf16 %v871_v16, %v870_v7  ;;  %v570_v59 = vsel %vm565_vm7, %v4196_v54, %v4197_v31  ;;  %v882_v61 = vsel %vm864_vm5, %v572_v15, %v616_v62  ;;  %v720_v41 = vsel %vm716_vm10, %v4162_v13, %v4226_v17 }
  0xcb   : > { %v5503_v33 = vpop.permute.xlu0 %4229  ;;  %v5505_v63 = vpop.permute.xlu1 %4234  ;;  %v4227_v32 = vunpack.i.h.bf16 %v5476_v21  ;;  %v4318_v43 = vpack.i.bf16 %v869_v24, %v868_v51  ;;  %v768_v31 = vsel %vm765_vm13, %v4171_v10, %v4172_v57  ;;  %v4333_v46 = vpack.i.bf16 %v882_v61, %v881_v47 }
  0xcc   : > { %4304 = vrot.lane.b32.xlu0 %v4303_v6, %s5043_s16  ;;  %v614_v6 = vsel %vm609_vm8, %v4206_v58, %v4207_v30  ;;  %v4231_v48 = vunpack.i.l.bf16 %v5503_v33  ;;  %v879_v30 = vsel %vm864_vm5, %v569_v23, %v613_v3  ;;  %v4221_v58 = vunpack.i.l.bf16 %v5474_v20 }
  0xcd   : > { %4309 = vrot.lane.b32.xlu1 %v4308_v9, %s5043_s16  ;;  %v880_v35 = vsel %vm864_vm5, %v570_v59, %v614_v6  ;;  %v4236_v36 = vunpack.i.l.bf16 %v5505_v63  ;;  %v7134_v21 = vunpack.i.h.bf16 %v5351_v50  ;;  %v666_v60 = vsel %vm661_vm9, %v4216_v49, %v4217_v52 }
  0xce   : > { %v4328_v13 = vpack.i.bf16 %v880_v35, %v879_v30  ;;  %v722_v38 = vsel %vm716_vm10, %v4227_v32, %v4231_v48  ;;  %v667_v50 = vsel %vm661_vm9, %v4217_v52, %v4221_v58  ;;  %v4237_v15 = vunpack.i.h.bf16 %v5505_v63 }
  0xcf   : > { %v5533_v0 = vpop.permute.xlu0 %4239  ;;  %v4245_v55 = vpop.permute.xlu1 %4244  ;;  %v665_v54 = vsel %vm661_vm9, %v7134_v21, %v4216_v49  ;;  %v721_v3 = vsel %vm716_vm10, %v4226_v17, %v4227_v32  ;;  %v893_v24 = vsel %vm864_vm5, %v667_v50, %v722_v38  ;;  %v769_v11 = vsel %vm765_vm13, %v4172_v57, %v4236_v36 }
  0xd0   : > { %4314 = vrot.lane.b32.xlu0 %v4313_v40, %s5043_s16  ;;  %v4246_v27 = vunpack.i.l.bf16 %v4245_v55  ;;  %v891_v56 = vsel %vm864_vm5, %v665_v54, %v720_v41  ;;  %v4241_v18 = vunpack.i.l.bf16 %v5533_v0  ;;  %v4247_v62 = vunpack.i.h.bf16 %v4245_v55 }
  0xd1   : > { %4324 = vrot.lane.b32.xlu1 %v4323_v39, %s5043_s16  ;;  %v4338_v51 = vpack.i.bf16 %v891_v56, %v5471_v8  ;;  %v892_v8 = vsel %vm864_vm5, %v666_v60, %v721_v3  ;;  %v901_v53 = vsel %vm864_vm5, %v768_v31, %v812_v45  ;;  %v770_v47 = vsel %vm765_vm13, %v4236_v36, %v4237_v15 }
  0xd2   : > { %v813_v40 = vsel %vm809_vm11, %v4182_v1, %v4246_v27  ;;  %v4343_v55 = vpack.i.bf16 %v893_v24, %v892_v8  ;;  %v771_v23 = vsel %vm765_vm13, %v4237_v15, %v4241_v18  ;;  %v814_v12 = vsel %vm809_vm11, %v4246_v27, %v4247_v62 }
  0xd3   : > { %v5561_v9 = vpop.permute.xlu0 %4249  ;;  %v4255_v42 = vpop.permute.xlu1 %4254  ;;  %v902_v1 = vsel %vm864_vm5, %v769_v11, %v813_v40  ;;  %v903_v27 = vsel %vm864_vm5, %v770_v47, %v814_v12  ;;  %v4222_v50 = vunpack.i.h.bf16 %v5474_v20  ;;  %v4232_v40 = vunpack.i.h.bf16 %v5503_v33 }
  0xd4   : > { %v4251_v7 = vunpack.i.l.bf16 %v5561_v9  ;;  %v4256_v16 = vunpack.i.l.bf16 %v4255_v42  ;;  %4319 = vrot.lane.b32.xlu0 %v4318_v43, %s5043_s16  ;;  %v4257_v10 = vunpack.i.h.bf16 %v4255_v42  ;;  %v4348_v30 = vpack.i.bf16 %v902_v1, %v901_v53 }
  0xd5   : > { %4334 = vrot.lane.b32.xlu1 %v4333_v46, %s5043_s16  ;;  %v668_v1 = vsel %vm661_vm9, %v4221_v58, %v4222_v50 }
  0xd6   : > { %v815_v63 = vsel %vm809_vm11, %v4247_v62, %v4251_v7  ;;  %v529_v17 = vsel %vm521_vm6, %v4192_v44, %v4256_v16  ;;  %v530_v57 = vsel %vm521_vm6, %v4256_v16, %v4257_v10 }
  0xd7   : > { %v520_v6 = vpop.permute.xlu0 %519  ;;  %v4260_v39 = vpop.permute.xlu1 %4259  ;;  %v904_v35 = vsel %vm864_vm5, %v771_v23, %v815_v63  ;;  %v872_v52 = vsel %vm864_vm5, %v5257_v14, %v529_v17  ;;  %v873_v31 = vsel %vm864_vm5, %v5289_v25, %v530_v57  ;;  %v723_v63 = vsel %vm716_vm10, %v4231_v48, %v4232_v40 }
  0xd8   : > { %4329 = vrot.lane.b32.xlu0 %v4328_v13, %s5043_s16  ;;  %v4262_v49 = vunpack.i.h.bf16 %v4260_v39  ;;  %v4261_v59 = vunpack.i.l.bf16 %v4260_v39  ;;  %v531_v41 = vsel %vm521_vm6, %v4257_v10, %v520_v6  ;;  %v4353_v36 = vpack.i.bf16 %v904_v35, %v903_v27 }
  0xd9   : > { %4339 = vrot.lane.b32.xlu1 %v4338_v51, %s5043_s16  ;;  %v875_v46 = vsel %vm864_vm5, %v5302_v29, %v520_v6  ;;  %v4358_v54 = vpack.i.bf16 %v873_v31, %v872_v52  ;;  %v874_v25 = vsel %vm864_vm5, %v5300_v28, %v531_v41  ;;  %v4242_v57 = vunpack.i.h.bf16 %v5533_v0 }
  0xda   : > { %v574_v45 = vsel %vm565_vm7, %v4261_v59, %v4262_v49  ;;  %v573_v16 = vsel %vm565_vm7, %v4202_v22, %v4261_v59  ;;  %v4363_v38 = vpack.i.bf16 %v875_v46, %v874_v25  ;;  %v894_v58 = vsel %vm864_vm5, %v668_v1, %v723_v63 }
  0xdb   : > { %v564_v44 = vpop.permute.xlu0 %563  ;;  %v4265_v61 = vpop.permute.xlu1 %4264  ;;  %v4252_v23 = vunpack.i.h.bf16 %v5561_v9  ;;  %v772_v27 = vsel %vm765_vm13, %v4241_v18, %v4242_v57 }
  0xdc   : > { %v4267_v32 = vunpack.i.h.bf16 %v4265_v61  ;;  %v4266_v43 = vunpack.i.l.bf16 %v4265_v61  ;;  %4344 = vrot.lane.b32.xlu0 %v4343_v55, %s5043_s16  ;;  %v575_v56 = vsel %vm565_vm7, %v4262_v49, %v564_v44 }
  0xdd   : > { %4349 = vrot.lane.b32.xlu1 %v4348_v30, %s5043_s16 }
  0xde   : > { %v617_v14 = vsel %vm609_vm8, %v4212_v26, %v4266_v43  ;;  %v618_v42 = vsel %vm609_vm8, %v4266_v43, %v4267_v32 }
  0xdf   : > { %v608_v13 = vpop.permute.xlu0 %607  ;;  %v838_v21 = vpop.permute.xlu1 %837  ;;  %v883_v26 = vsel %vm864_vm5, %v573_v16, %v617_v14  ;;  %v884_v29 = vsel %vm864_vm5, %v574_v45, %v618_v42  ;;  %v816_v45 = vsel %vm809_vm11, %v4251_v7, %v4252_v23 }
  0xe0   : > { %v619_v34 = vsel %vm609_vm8, %v4267_v32, %v608_v13  ;;  %4354 = vrot.lane.b32.xlu0 %v4353_v36, %s5043_s16  ;;  %v886_v10 = vsel %vm864_vm5, %v564_v44, %v608_v13  ;;  %v4368_v19 = vpack.i.bf16 %v884_v29, %v883_v26  ;;  %v856_v39 = vsel %vm853_vm12, %v5447_v37, %v838_v21 }
  0xe1   : > { %4359 = vrot.lane.b32.xlu1 %v4358_v54, %s5043_s16  ;;  %v885_v22 = vsel %vm864_vm5, %v575_v56, %v619_v34  ;;  %v905_v7 = vsel %vm864_vm5, %v772_v27, %v816_v45 }
  0xe2   : > { %v4373_v15 = vpack.i.bf16 %v886_v10, %v885_v22  ;;  %v5044_v10 = vmov 0  }
  0xe3   : > { %v840_v28 = vpop.permute.xlu0 %839  ;;  %v842_v60 = vpop.permute.xlu1 %841  ;;  %4398 = vset.pattern.permute.xlu1 %v5044_v10  ;;  %4969 = vset.pattern.permute.xlu0 %v5044_v10 }
  0xe4   : > { %4364 = vrot.lane.b32.xlu0 %v4363_v38, %s5043_s16  ;;  %v857_v51 = vsel %vm853_vm12, %v838_v21, %v840_v28  ;;  %v858_v11 = vsel %vm853_vm12, %v840_v28, %v842_v60 }
  0xe5   : > { %4369 = vrot.lane.b32.xlu1 %v4368_v19, %s5043_s16 }
  0xe7   : > { %v844_v62 = vpop.permute.xlu0 %843  ;;  %v4270_v3 = vpop.permute.xlu1 %4269 }
  0xe8   : > { %v4272_v6 = vunpack.i.h.bf16 %v4270_v3  ;;  %4374 = vrot.lane.b32.xlu0 %v4373_v15, %s5043_s16  ;;  %v4271_v24 = vunpack.i.l.bf16 %v4270_v3  ;;  %v859_v20 = vsel %vm853_vm12, %v842_v60, %v844_v62 }
  0xe9   : > { %1054 = vrot.lane.b32.xlu1 %v856_v39, %s5043_s16 }
  0xea   : > { %v670_v37 = vsel %vm661_vm9, %v4271_v24, %v4272_v6  ;;  %v669_v48 = vsel %vm661_vm9, %v4222_v50, %v4271_v24  ;;  %v910_v50 = vld [vmem:[%s7116_s5] sm:$0xf] }
  0xeb   : > { %v4275_v17 = vpop.permute.xlu0 %4274  ;;  %v715_v49 = vpop.permute.xlu1 %714 }
  0xec   : > { %v4277_v8 = vunpack.i.h.bf16 %v4275_v17  ;;  %v4276_v53 = vunpack.i.l.bf16 %v4275_v17  ;;  %1056 = vrot.lane.b32.xlu0 %v857_v51, %s5043_s16 }
  0xed   : > { %1058 = vrot.lane.b32.xlu1 %v858_v11, %s5043_s16 }
  0xee   : > { %v726_v33 = vsel %vm716_vm10, %v4277_v8, %v715_v49  ;;  %v724_v55 = vsel %vm716_vm10, %v4232_v40, %v4276_v53  ;;  %v725_v47 = vsel %vm716_vm10, %v4276_v53, %v4277_v8 }
  0xef   : > { %v897_v12 = vsel %vm864_vm5, %v4272_v6, %v726_v33  ;;  %v4280_v59 = vpop.permute.xlu0 %4279  ;;  %v764_v44 = vpop.permute.xlu1 %763  ;;  %v895_v61 = vsel %vm864_vm5, %v669_v48, %v724_v55  ;;  %v896_v30 = vsel %vm864_vm5, %v670_v37, %v725_v47 }
  0xf0   : > { %v4282_v35 = vunpack.i.h.bf16 %v4280_v59  ;;  %1060 = vrot.lane.b32.xlu0 %v859_v20, %s5043_s16  ;;  %v4378_v52 = vpack.i.bf16 %v895_v61, %v894_v58  ;;  %v4383_v41 = vpack.i.bf16 %v897_v12, %v896_v30  ;;  %v4281_v32 = vunpack.i.l.bf16 %v4280_v59 }
  0xf2   : > { %4379 = vrot.lane.b32.xlu1 %v4378_v52, %s5043_s16  ;;  %v775_v36 = vsel %vm765_vm13, %v4282_v35, %v764_v44  ;;  %v774_v46 = vsel %vm765_vm13, %v4281_v32, %v4282_v35  ;;  %v773_v21 = vsel %vm765_vm13, %v4242_v57, %v4281_v32 }
  0xf3   : > { %v4285_v43 = vpop.permute.xlu0 %4284  ;;  %v808_v31 = vpop.permute.xlu1 %807 }
  0xf4   : > { %v4287_v14 = vunpack.i.h.bf16 %v4285_v43  ;;  %v4286_v42 = vunpack.i.l.bf16 %v4285_v43  ;;  %4384 = vrot.lane.b32.xlu0 %v4383_v41, %s5043_s16 }
  0xf6   : > { %v819_v13 = vsel %vm809_vm11, %v4287_v14, %v808_v31  ;;  %v817_v0 = vsel %vm809_vm11, %v4252_v23, %v4286_v42  ;;  %v818_v18 = vsel %vm809_vm11, %v4286_v42, %v4287_v14 }
  0xf7   : > { %v908_v9 = vsel %vm864_vm5, %v775_v36, %v819_v13  ;;  %v906_v54 = vsel %vm864_vm5, %v773_v21, %v817_v0  ;;  %v907_v25 = vsel %vm864_vm5, %v774_v46, %v818_v18  ;;  %v846_v16 = vpop.permute.xlu0 %845  ;;  %v848_v56 = vpop.permute.xlu1 %847 }
  0xf8   : > { %v4388_v34 = vpack.i.bf16 %v906_v54, %v905_v7  ;;  %v4393_v26 = vpack.i.bf16 %v908_v9, %v907_v25  ;;  %v860_v29 = vsel %vm853_vm12, %v844_v62, %v846_v16  ;;  %v861_v38 = vsel %vm853_vm12, %v846_v16, %v848_v56 }
  0xfa   : > { %4389 = vrot.lane.b32.xlu1 %v4388_v34, %s5043_s16  ;;  %4394 = vrot.lane.b32.xlu0 %v4393_v26, %s5043_s16 }
  0xfb   : > { %v850_v28 = vpop.permute.xlu0 %849  ;;  %v852_v60 = vpop.permute.xlu1 %851 }
  0xfc   : > { %v862_v19 = vsel %vm853_vm12, %v848_v56, %v850_v28  ;;  %v863_v22 = vsel %vm853_vm12, %v850_v28, %v852_v60  ;;  %v5734_v56 = vld [vmem:[%s7115_s4] sm:$0xf] }
  0xfe   : > { %1062 = vrot.lane.b32.xlu1 %v860_v29, %s5043_s16  ;;  %1064 = vrot.lane.b32.xlu0 %v861_v38, %s5043_s16 }
 0x102   : > { %1066 = vrot.lane.b32.xlu1 %v862_v19, %s5043_s16  ;;  %1068 = vrot.lane.b32.xlu0 %v863_v22, %s5043_s16 }
 0x106   : > { %913 = vperm.xlu1 %4398, %v910_v50  }
 0x127   : > { %v4290_v15 = vpop.permute.xlu1 %4289 }
 0x128   : > { %v4292_v23 = vunpack.i.h.bf16 %v4290_v15  ;;  %v4291_v12 = vunpack.i.l.bf16 %v4290_v15 }
 0x132   : > { %v1049_v40 = vpop.permute.xlu0 %1048 }
 0x136   : > { %v1051_v62 = vpop.permute.xlu0 %1050 }
 0x137   : > { %v5694_v3 = vpop.permute.xlu1 %1052  ;;  %v1111_v26 = vsel %vm1070_vm14, %v1049_v40, %v1051_v62 }
 0x138   : > { %v1112_v21 = vsel %vm1070_vm14, %v1051_v62, %v5694_v3 }
 0x13a   : > { %v4295_v6 = vpop.permute.xlu0 %4294 }
 0x13b   : > { %v4297_v39 = vunpack.i.h.bf16 %v4295_v6  ;;  %v4296_v51 = vunpack.i.l.bf16 %v4295_v6  ;;  %v4300_v24 = vpop.permute.xlu1 %4299 }
 0x13c   : > { %v4302_v11 = vunpack.i.h.bf16 %v4300_v24  ;;  %v4301_v1 = vunpack.i.l.bf16 %v4300_v24 }
 0x13d   : > { %v1072_v63 = vsel %vm1070_vm14, %v4296_v51, %v4297_v39 }
 0x13e   : > { %v4305_v17 = vpop.permute.xlu0 %4304  ;;  %v1082_v49 = vsel %vm1070_vm14, %v4301_v1, %v4302_v11 }
 0x13f   : > { %v4307_v8 = vunpack.i.h.bf16 %v4305_v17  ;;  %v4306_v53 = vunpack.i.l.bf16 %v4305_v17  ;;  %v5698_v37 = vpop.permute.xlu1 %4309  ;;  %v3972_v57 = vpack.c.bf16 %v1082_v49, %v1072_v63 }
 0x140   : > { %v4312_v20 = vunpack.i.h.bf16 %v5698_v37  ;;  %v4311_v58 = vunpack.i.l.bf16 %v5698_v37 }
 0x141   : > { %3973 = vmatprep.subr.bf16.mxu0 %v3972_v57  ;;  %v1071_v33 = vsel %vm1070_vm14, %v4306_v53, %v4296_v51  ;;  %v1081_v48 = vsel %vm1070_vm14, %v4307_v8, %v4301_v1 }
 0x142   : > { %v5704_v55 = vpop.permute.xlu0 %4314  ;;  %v3974_v47 = vpack.c.bf16 %v1081_v48, %v1071_v33  ;;  %v1092_v30 = vsel %vm1070_vm14, %v4311_v58, %v4312_v20  ;;  %v1091_v52 = vsel %vm1070_vm14, %v4291_v12, %v4311_v58 }
 0x143   : > { %v4317_v59 = vunpack.i.h.bf16 %v5704_v55  ;;  %v4316_v44 = vunpack.i.l.bf16 %v5704_v55  ;;  %v5708_v61 = vpop.permute.xlu1 %4324 }
 0x144   : > { %3975 = vmatpush1.bf16.msra.mxu0 %v3974_v47  ;;  %v4327_v32 = vunpack.i.h.bf16 %v5708_v61  ;;  %v4326_v43 = vunpack.i.l.bf16 %v5708_v61 }
 0x145   : > { %v1102_v35 = vsel %vm1070_vm14, %v4316_v44, %v4317_v59  ;;  %v1101_v41 = vsel %vm1070_vm14, %v4292_v23, %v4316_v44 }
 0x146   : > { %v4320_v31 = vpop.permute.xlu0 %4319  ;;  %v3976_v27 = vpack.c.bf16 %v1102_v35, %v1092_v30  ;;  %v3978_v45 = vpack.c.bf16 %v1101_v41, %v1091_v52  ;;  %v1076_v18 = vsel %vm1070_vm14, %v4326_v43, %v4327_v32 }
 0x147   : > { %v5718_v36 = vpop.permute.xlu1 %4334  ;;  %v4322_v14 = vunpack.i.h.bf16 %v4320_v31  ;;  %v4321_v42 = vunpack.i.l.bf16 %v4320_v31 }
 0x148   : > { %v4337_v46 = vunpack.i.h.bf16 %v5718_v36  ;;  %v4336_v13 = vunpack.i.l.bf16 %v5718_v36  ;;  %3977 = vmatprep.subr.bf16.mxu0 %v3976_v27 }
 0x149   : > { %3979 = vmatpush1.bf16.msra.mxu0 %v3978_v45  ;;  %v1075_v34 = vsel %vm1070_vm14, %v4322_v14, %v4326_v43  ;;  %v1074_v29 = vsel %vm1070_vm14, %v4321_v42, %v4322_v14  ;;  %v1073_v38 = vsel %vm1070_vm14, %v4297_v39, %v4321_v42  ;;  %v7135_v39 = vmov 0.0  }
 0x14a   : > { %v4330_v0 = vpop.permute.xlu0 %4329  ;;  %3925 = vmatprep.subr.msk.mxu0 %vm864_vm5, %v1112_v21  ;;  %v1086_v9 = vsel %vm1070_vm14, %v4336_v13, %v4337_v46 }
 0x14b   : > { %v4332_v7 = vunpack.i.h.bf16 %v4330_v0  ;;  %v4331_v54 = vunpack.i.l.bf16 %v4330_v0  ;;  %v4340_v25 = vpop.permute.xlu1 %4339  ;;  %v3988_v16 = vpack.c.bf16 %v1086_v9, %v1076_v18 }
 0x14c   : > { %v4342_v28 = vunpack.i.h.bf16 %v4340_v25  ;;  %v4341_v22 = vunpack.i.l.bf16 %v4340_v25 }
 0x14d   : > { %v1085_v10 = vsel %vm1070_vm14, %v4332_v7, %v4336_v13  ;;  %3926 = vmatpush1.msk.msra.mxu0 %vm864_vm5, %v1111_v26  ;;  %v1084_v60 = vsel %vm1070_vm14, %v4331_v54, %v4332_v7  ;;  %v1083_v19 = vsel %vm1070_vm14, %v4302_v11, %v4331_v54 }
 0x14e   : > { %v5744_v50 = vpop.permute.xlu0 %4344  ;;  %3989 = vmatprep.subr.bf16.mxu0 %v3988_v16  ;;  %3927 = vmatmul.mubr.msk.f32.vlgmr.msra.gmra.mrb[0].mxu0 %vm1161_vm15, %v5734_v56  ;;  %v3980_v40 = vpack.c.bf16 %v1084_v60, %v1074_v29  ;;  %v3990_v15 = vpack.c.bf16 %v1085_v10, %v1075_v34  ;;  %v3982_v62 = vpack.c.bf16 %v1083_v19, %v1073_v38 }
 0x14f   : > { %v4350_v6 = vpop.permute.xlu1 %4349  ;;  %1391 = vmatprep.mubr.f32.mxu0 %v7135_v39  ;;  %v4347_v1 = vunpack.i.h.bf16 %v5744_v50  ;;  %v4346_v11 = vunpack.i.l.bf16 %v5744_v50  ;;  %v1094_v17 = vsel %vm1070_vm14, %v4341_v22, %v4342_v28  ;;  %v1093_v8 = vsel %vm1070_vm14, %v4312_v20, %v4341_v22 }
 0x150   : > { %v4352_v51 = vunpack.i.h.bf16 %v4350_v6  ;;  %v4351_v24 = vunpack.i.l.bf16 %v4350_v6  ;;  %3981 = vmatprep.subr.bf16.mxu1 %v3980_v40  ;;  %3991 = vmatpush1.bf16.msra.mxu0 %v3990_v15 }
 0x151   : > { %3983 = vmatpush1.bf16.msra.mxu1 %v3982_v62  ;;  %v1095_v47 = vsel %vm1070_vm14, %v4342_v28, %v4346_v11  ;;  %v1096_v37 = vsel %vm1070_vm14, %v4346_v11, %v4347_v1 }
 0x152   : > { %v5751_v63 = vpop.permute.xlu0 %4354  ;;  %v1104_v49 = vsel %vm1070_vm14, %v4351_v24, %v4352_v51  ;;  %v1103_v53 = vsel %vm1070_vm14, %v4317_v59, %v4351_v24 }
 0x153   : > { %v4357_v57 = vunpack.i.h.bf16 %v5751_v63  ;;  %v4356_v58 = vunpack.i.l.bf16 %v5751_v63  ;;  %v4360_v33 = vpop.permute.xlu1 %4359  ;;  %v3984_v48 = vpack.c.bf16 %v1104_v49, %v1094_v17  ;;  %v3986_v55 = vpack.c.bf16 %v1103_v53, %v1093_v8 }
 0x154   : > { %v4362_v43 = vunpack.i.h.bf16 %v4360_v33  ;;  %v4361_v31 = vunpack.i.l.bf16 %v4360_v33 }
 0x155   : > { %v1105_v23 = vsel %vm1070_vm14, %v4352_v51, %v4356_v58  ;;  %3985 = vmatprep.subr.bf16.mxu1 %v3984_v48  ;;  %v1106_v20 = vsel %vm1070_vm14, %v4356_v58, %v4357_v57 }
 0x156   : > { %v4365_v12 = vpop.permute.xlu0 %4364  ;;  %3987 = vmatpush1.bf16.msra.mxu1 %v3986_v55  ;;  %v3992_v59 = vpack.c.bf16 %v1106_v20, %v1096_v37  ;;  %v3994_v44 = vpack.c.bf16 %v1105_v23, %v1095_v47  ;;  %v1078_v7 = vsel %vm1070_vm14, %v4361_v31, %v4362_v43  ;;  %v1077_v54 = vsel %vm1070_vm14, %v4327_v32, %v4361_v31 }
 0x157   : > { %v4370_v30 = vpop.permute.xlu1 %4369  ;;  %v4367_v0 = vunpack.i.h.bf16 %v4365_v12  ;;  %v4366_v18 = vunpack.i.l.bf16 %v4365_v12 }
 0x158   : > { %3993 = vmatprep.subr.bf16.mxu0 %v3992_v59  ;;  %v4372_v35 = vunpack.i.h.bf16 %v4370_v30  ;;  %v4371_v52 = vunpack.i.l.bf16 %v4370_v30 }
 0x159   : > { %3995 = vmatpush1.bf16.msra.mxu0 %v3994_v44  ;;  %v1080_v32 = vsel %vm1070_vm14, %v4366_v18, %v4367_v0 }
 0x15a   : > { %v4375_v41 = vpop.permute.xlu0 %4374  ;;  %v1088_v42 = vsel %vm1070_vm14, %v4371_v52, %v4372_v35  ;;  %v1087_v13 = vsel %vm1070_vm14, %v4337_v46, %v4371_v52 }
 0x15b   : > { %v1055_v27 = vpop.permute.xlu1 %1054  ;;  %v4377_v45 = vunpack.i.h.bf16 %v4375_v41  ;;  %v4376_v14 = vunpack.i.l.bf16 %v4375_v41  ;;  %v3996_v16 = vpack.c.bf16 %v1088_v42, %v1078_v7  ;;  %v3998_v46 = vpack.c.bf16 %v1087_v13, %v1077_v54 }
 0x15c   : > { %v1113_v25 = vsel %vm1070_vm14, %v5694_v3, %v1055_v27  ;;  %v1079_v3 = vsel %vm1070_vm14, %v4362_v43, %v4366_v18  ;;  %v392_v43 = vld [vmem:[%s7114_s3] sm:$0xff] }
 0x15d   : > { %v1090_v34 = vsel %vm1070_vm14, %v4376_v14, %v4377_v45  ;;  %v1089_v26 = vsel %vm1070_vm14, %v4372_v35, %v4376_v14  ;;  %v5829_v14 = vrot.slane %v392_v43, %v5125_v4 }
 0x15e   : > { %v1057_v21 = vpop.permute.xlu0 %1056  ;;  %v4004_v10 = vpack.c.bf16 %v1090_v34, %v1080_v32  ;;  %v4006_v28 = vpack.c.bf16 %v1089_v26, %v1079_v3  ;;  %v7137_v34 = vsub.s32 3, %v5118_v2 }
 0x15f   : > { %v1114_v9 = vsel %vm1070_vm14, %v1055_v27, %v1057_v21  ;;  %v1059_v36 = vpop.permute.xlu1 %1058 }
 0x160   : > { %3928 = vmatprep.subr.msk.mxu1 %vm864_vm5, %v1114_v9  ;;  %v1115_v38 = vsel %vm1070_vm14, %v1057_v21, %v1059_v36  ;;  %v5853_v26 = vrot.slane %v392_v43, %v7137_v34 }
 0x161   : > { %3929 = vmatpush1.msk.msra.mxu1 %vm864_vm5, %v1113_v25  ;;  %v7136_v25 = vsub.s32 2, %v5118_v2 }
 0x162   : > { %v1061_v29 = vpop.permute.xlu0 %1060  ;;  %3930 = vmatmul.mubr.msk.f32.vlgmr.msra.gmra.mrb[0].mxu1 %vm1161_vm15, %v5734_v56  ;;  %3997 = vmatprep.subr.bf16.mxu1 %v3996_v16 }
 0x163   : > { %3999 = vmatpush1.bf16.msra.mxu1 %v3998_v46  ;;  %v1116_v61 = vsel %vm1070_vm14, %v1059_v36, %v1061_v29  ;;  %1462 = vmatprep.mubr.f32.mxu1 %v7135_v39  ;;  %v5848_v16 = vrot.slane %v392_v43, %v7136_v25 }
 0x164   : > { %3931 = vmatprep.subr.msk.mxu0 %vm864_vm5, %v1116_v61  ;;  %v4380_v60 = vpop.permute.xlu1 %4379 }
 0x165   : > { %3932 = vmatpush1.msk.msra.mxu0 %vm864_vm5, %v1115_v38  ;;  %v4382_v40 = vunpack.i.h.bf16 %v4380_v60  ;;  %v4381_v15 = vunpack.i.l.bf16 %v4380_v60 }
 0x166   : > { %3933 = vmatmul.mubr.msk.f32.vlgmr.msra.gmra.mrb[2].mxu0 %vm1161_vm15, %v5734_v56  ;;  %4005 = vmatprep.subr.bf16.mxu0 %v4004_v10  ;;  %v4385_v19 = vpop.permute.xlu0 %4384  ;;  %v7138_v10 = vsub.s32 4, %v5118_v2 }
 0x167   : > { %4007 = vmatpush1.bf16.msra.mxu0 %v4006_v28  ;;  %1533 = vmatprep.mubr.f32.mxu0 %v7135_v39  ;;  %v4387_v22 = vunpack.i.h.bf16 %v4385_v19  ;;  %v4386_v62 = vunpack.i.l.bf16 %v4385_v19  ;;  %v1097_v53 = vsel %vm1070_vm14, %v4347_v1, %v4381_v15  ;;  %v1098_v33 = vsel %vm1070_vm14, %v4381_v15, %v4382_v40 }
 0x168   : > { %v5859_v28 = vrot.slane %v392_v43, %v7138_v10 }
 0x169   : > { %v1100_v24 = vsel %vm1070_vm14, %v4386_v62, %v4387_v22  ;;  %v1099_v58 = vsel %vm1070_vm14, %v4382_v40, %v4386_v62  ;;  %v7139_v40 = vsub.s32 5, %v5118_v2 }
 0x16b   : > { %v5865_v15 = vrot.slane %v392_v43, %v7139_v40 }
 0x16c   : > { %v4390_v6 = vpop.permute.xlu1 %4389  ;;  %v4395_v51 = vpop.permute.xlu0 %4394 }
 0x16d   : > { %v4392_v11 = vunpack.i.h.bf16 %v4390_v6  ;;  %v4391_v17 = vunpack.i.l.bf16 %v4390_v6  ;;  %v4397_v49 = vunpack.i.h.bf16 %v4395_v51  ;;  %v4396_v8 = vunpack.i.l.bf16 %v4395_v51 }
 0x16f   : > { %v1107_v48 = vsel %vm1070_vm14, %v4357_v57, %v4391_v17  ;;  %v1109_v55 = vsel %vm1070_vm14, %v4392_v11, %v4396_v8  ;;  %v1108_v47 = vsel %vm1070_vm14, %v4391_v17, %v4392_v11  ;;  %v1110_v23 = vsel %vm1070_vm14, %v4396_v8, %v4397_v49 }
 0x170   : > { %v1063_v37 = vpop.permute.xlu1 %1062  ;;  %v1065_v20 = vpop.permute.xlu0 %1064  ;;  %v4000_v12 = vpack.c.bf16 %v1108_v47, %v1098_v33  ;;  %v4008_v50 = vpack.c.bf16 %v1110_v23, %v1100_v24  ;;  %v4002_v59 = vpack.c.bf16 %v1107_v48, %v1097_v53  ;;  %v4010_v1 = vpack.c.bf16 %v1109_v55, %v1099_v58  ;;  %v393_v55 = vld [vmem:[%s7114_s3 + $0x8] sm:$0x3] }
 0x171   : > { %v1118_v44 = vsel %vm1070_vm14, %v1063_v37, %v1065_v20  ;;  %v1117_v63 = vsel %vm1070_vm14, %v1061_v29, %v1063_v37  ;;  %v7140_v37 = vsub.s32 6, %v5118_v2 }
 0x172   : > { %4001 = vmatprep.subr.bf16.mxu1 %v4000_v12  ;;  %4009 = vmatprep.subr.bf16.mxu0 %v4008_v50  ;;  %v5901_v50 = vrot.slane %v393_v55, %v5125_v4 }
 0x173   : > { %4003 = vmatpush1.bf16.msra.mxu1 %v4002_v59  ;;  %4011 = vmatpush1.bf16.msra.mxu0 %v4010_v1 }
 0x174   : > { %v1067_v57 = vpop.permute.xlu1 %1066  ;;  %v1069_v30 = vpop.permute.xlu0 %1068  ;;  %3934 = vmatprep.subr.msk.mxu1 %vm864_vm5, %v1118_v44 }
 0x175   : > { %v1119_v35 = vsel %vm1070_vm14, %v1065_v20, %v1067_v57  ;;  %v1120_v52 = vsel %vm1070_vm14, %v1067_v57, %v1069_v30  ;;  %v5898_v20 = vrot.slane %v392_v43, %v7140_v37  ;;  %v7141_v30 = vsub.s32 7, %v5118_v2 }
 0x176   : > { %3937 = vmatprep.subr.msk.mxu0 %vm864_vm5, %v1120_v52 }
 0x177   : > { %3935 = vmatpush1.msk.msra.mxu1 %vm864_vm5, %v1117_v63  ;;  %3938 = vmatpush1.msk.msra.mxu0 %vm864_vm5, %v1119_v35  ;;  %v5909_v35 = vrot.slane %v392_v43, %v7141_v30  ;;  %v1653_v30 = vld [vmem:[#allocation2 + $0x2c] sm:$0xf] }
 0x178   : > { %3936 = vmatmul.mubr.msk.f32.vlgmr.msra.gmra.mrb[2].mxu1 %vm1161_vm15, %v5734_v56  ;;  %3939 = vmatmul.mubr.msk.f32.vlgmr.msra.gmra.mrb[4].mxu0 %vm1161_vm15, %v5734_v56  ;;  %v5833_v56 = vrot.slane %v392_v43, %v5128_v5 }
 0x179   : > { %2415 = vmatprep.mubr.f32.mxu1 %v7135_v39  ;;  %2486 = vmatprep.mubr.f32.mxu0 %v7135_v39  ;;  %7142 = vst [vmem:[#allocation3_spill] sm:$0xff] %v5909_v35 }
 0x185   : > { %v5822_v41 = vpop.permute.xlu1 %913 }
 0x221   : > { %v1251_v31 = vpop.f32.mrb[0].mxu0 }
 0x222   : > { %v1252_v27 = vadd.f32 %v1251_v31, %v5822_v41  ;;  %v1253_v45 = vpop.f32.mrb[1].mxu0  ;;  %v5912_v31 = vrot.slane %v393_v55, %v5128_v5 }
 0x223   : > { %v1254_v42 = vadd.f32 %v1253_v45, %v5822_v41 }
 0x224   : > { %v1540_v13 = vmax.f32 %v1252_v27, 0.0  ;;  %7143 = vst [vmem:[#allocation4_spill] sm:$0xff] %v5912_v31 }
 0x225   : > { %v1541_v21 = vmax.f32 %v1254_v42, 0.0 }
 0x226   : > { %v5836_v0 = vmul.f32 %v5829_v14, %v1540_v13 }
 0x227   : > { %v1603_v18 = vmul.f32 %v5833_v56, %v1541_v21 }
 0x228   : > { %v5009_v25 = vcombine.low %v5836_v0, %v5836_v0 }
 0x229   : > { %v5840_v9 = vcombine.low %v5836_v0, %v1603_v18  ;;  %v5006_v48 = vcombine.low %v1603_v18, %v1603_v18 }
 0x22b   : > { %1632 = vst [vmem:[#allocation2 + $0x4] sm:$0xff] %v5840_v9  ;;  %2001 = vrot.lane.b32.xlu1 %v5840_v9, %s5042_s15  ;;  %v4414_v59 = vpack.i.bf16 %v5006_v48, %v5840_v9  ;;  %v4424_v34 = vpack.i.bf16 %v5840_v9, %v5009_v25 }
 0x232   : > { %v5874_v17 = vld [vmem:[#allocation2] sm:$0xff] }
 0x233   : > { %v5883_v8 = vcombine.high %v5874_v17, %v5874_v17 }
 0x235   : > { %v1322_v7 = vpop.f32.mrb[0].mxu1 }
 0x236   : > { %v1323_v54 = vadd.f32 %v1322_v7, %v5822_v41  ;;  %v1324_v36 = vpop.f32.mrb[1].mxu1 }
 0x237   : > { %v1325_v46 = vadd.f32 %v1324_v36, %v5822_v41 }
 0x238   : > { %v1542_v29 = vmax.f32 %v1323_v54, 0.0 }
 0x239   : > { %v1543_v61 = vmax.f32 %v1325_v46, 0.0  ;;  %v1393_v32 = vpop.f32.mrb[2].mxu0 }
 0x23a   : > { %v1604_v3 = vmul.f32 %v5848_v16, %v1542_v29  ;;  %v1394_v38 = vadd.f32 %v1393_v32, %v5822_v41  ;;  %v1395_v60 = vpop.f32.mrb[3].mxu0 }
 0x23b   : > { %v1605_v19 = vmul.f32 %v5853_v26, %v1543_v61  ;;  %v1396_v22 = vadd.f32 %v1395_v60, %v5822_v41 }
 0x23c   : > { %v1544_v62 = vmax.f32 %v1394_v38, 0.0  ;;  %v5007_v1 = vcombine.low %v1604_v3, %v1604_v3 }
 0x23d   : > { %v1623_v6 = vcombine.low %v1604_v3, %v1605_v19  ;;  %v1545_v51 = vmax.f32 %v1396_v22, 0.0  ;;  %v5008_v45 = vcombine.low %v1605_v19, %v1605_v19  ;;  %v1670_v3 = vcombine.low %v5874_v17, %v5874_v17 }
 0x23e   : > { %v5868_v24 = vmul.f32 %v5859_v28, %v1544_v62 }
 0x23f   : > { %1633 = vst [vmem:[#allocation2 + $0xc] sm:$0xff] %v1623_v6  ;;  %v5871_v11 = vmul.f32 %v5865_v15, %v1545_v51  ;;  %2005 = vrot.lane.b32.xlu1 %v1623_v6, %s5042_s15  ;;  %v4429_v2 = vpack.i.bf16 %v1623_v6, %v5007_v1 }
 0x241   : > { %v5878_v49 = vcombine.low %v5868_v24, %v5871_v11  ;;  %v5010_v38 = vcombine.low %v5871_v11, %v5871_v11  ;;  %v5011_v11 = vcombine.low %v5868_v24, %v5868_v24 }
 0x243   : > { %1634 = vst [vmem:[#allocation2 + $0x14] sm:$0xff] %v5878_v49  ;;  %v4484_v19 = vpack.i.bf16 %v5010_v38, %v5878_v49 }
 0x246   : > { %v5885_v53 = vld [vmem:[#allocation2 + $0x8] sm:$0xff] }
 0x247   : > { %v1671_v58 = vcombine.low %v5885_v53, %v5885_v53  ;;  %v4404_v33 = vpack.i.bf16 %v5885_v53, %v5883_v8  ;;  %v5964_v60 = vcombine.high %v5885_v53, %v5885_v53 }
 0x249   : > { %v4399_v47 = vpack.i.bf16 %v1671_v58, %v5874_v17  ;;  %4405 = vrot.lane.b32.xlu1 %v4404_v33, %s5036_s27  ;;  %v4489_v33 = vpack.i.bf16 %v5878_v49, %v5011_v11 }
 0x24a   : > { %v5935_v29 = vld [vmem:[#allocation2 + $0x10] sm:$0xff] }
 0x24b   : > { %v1464_v23 = vpop.f32.mrb[2].mxu1  ;;  %v1535_v12 = vpop.f32.mrb[4].mxu0  ;;  %4400 = vrot.lane.b32.xlu0 %v4399_v47, %s5035_s26  ;;  %v1672_v0 = vcombine.low %v5935_v29, %v5935_v29  ;;  %v5947_v61 = vcombine.high %v5935_v29, %v5935_v29  ;;  %v4454_v10 = vpack.i.bf16 %v1670_v3, %v5935_v29  ;;  %v4459_v40 = vpack.i.bf16 %v5935_v29, %v5964_v60 }
 0x24c   : > { %v1465_v44 = vadd.f32 %v1464_v23, %v5822_v41  ;;  %v1536_v63 = vadd.f32 %v1535_v12, %v5822_v41  ;;  %v1466_v57 = vpop.f32.mrb[3].mxu1  ;;  %v1537_v52 = vpop.f32.mrb[5].mxu0 }
 0x24d   : > { %v1467_v4 = vadd.f32 %v1466_v57, %v5822_v41  ;;  %v1538_v27 = vadd.f32 %v1537_v52, %v5822_v41  ;;  %4415 = vrot.lane.b32.xlu1 %v4414_v59, %s5038_s29  ;;  %v4419_v41 = vpack.i.bf16 %v5008_v45, %v1623_v6  ;;  %v4469_v9 = vpack.i.bf16 %v1672_v0, %v5885_v53 }
 0x24e   : > { %v1546_v42 = vmax.f32 %v1465_v44, 0.0  ;;  %v1548_v13 = vmax.f32 %v1536_v63, 0.0  ;;  %v4474_v32 = vpack.i.bf16 %v5874_v17, %v5947_v61 }
 0x24f   : > { %v1547_v21 = vmax.f32 %v1467_v4, 0.0  ;;  %v1549_v18 = vmax.f32 %v1538_v27, 0.0  ;;  %4410 = vrot.lane.b32.xlu0 %v4399_v47, %s5037_s28  ;;  %v1866_v4 = vcombine.low %v1653_v30, %v1653_v30 }
 0x250   : > { %v1608_v43 = vmul.f32 %v5898_v20, %v1546_v42  ;;  %v5920_v7 = vmul.f32 %v5901_v50, %v1548_v13 }
 0x251   : > { %v1609_v5 = vmul.f32 %v5909_v35, %v1547_v21  ;;  %v1611_v54 = vmul.f32 %v5912_v31, %v1549_v18  ;;  %4430 = vrot.lane.b32.xlu1 %v4429_v2, %s5039_s30 }
 0x252   : > { %v5013_v24 = vcombine.low %v1608_v43, %v1608_v43  ;;  %v5015_v12 = vcombine.low %v5920_v7, %v5920_v7 }
 0x253   : > { %v1625_v36 = vcombine.low %v1608_v43, %v1609_v5  ;;  %v5928_v46 = vcombine.low %v5920_v7, %v1611_v54  ;;  %4420 = vrot.lane.b32.xlu0 %v4419_v41, %s5038_s29 }
 0x255   : > { %1635 = vst [vmem:[#allocation2 + $0x1c] sm:$0xff] %v1625_v36  ;;  %1636 = vst [vmem:[#allocation2 + $0x24] sm:$0xff] %v5928_v46  ;;  %4435 = vrot.lane.b32.xlu1 %v4414_v59, %s5040_s11  ;;  %v4524_v47 = vpack.i.bf16 %v1625_v36, %v5013_v24  ;;  %v4559_v1 = vpack.i.bf16 %v5928_v46, %v5015_v12 }
 0x257   : > { %4425 = vrot.lane.b32.xlu0 %v4424_v34, %s5039_s30 }
 0x259   : > { %4450 = vrot.lane.b32.xlu1 %v4429_v2, %s5041_s12 }
 0x25b   : > { %4440 = vrot.lane.b32.xlu0 %v4419_v41, %s5040_s11 }
 0x25c   : > { %v5967_v22 = vld [vmem:[#allocation2 + $0x18] sm:$0xff]  ;;  %v5997_v23 = vld [vmem:[#allocation2 + $0x28] sm:$0xf]  ;;  %v6006_v59 = vld [vmem:[#allocation2 + $0x20] sm:$0xff] }
 0x25d   : > { %2009 = vrot.lane.b32.xlu1 %v5878_v49, %s5042_s15  ;;  %v1673_v62 = vcombine.low %v5967_v22, %v5967_v22  ;;  %v5980_v51 = vcombine.high %v5967_v22, %v5967_v22  ;;  %v5014_v49 = vcombine.low %v1611_v54, %v1611_v54  ;;  %v1674_v44 = vcombine.low %v6006_v59, %v6006_v59 }
 0x25e   : > { %v6019_v57 = vcombine.high %v6006_v59, %v6006_v59  ;;  %v1675_v27 = vcombine.low %v5997_v23, %v5997_v23 }
 0x25f   : > { %4445 = vrot.lane.b32.xlu0 %v4424_v34, %s5041_s12  ;;  %v4504_v6 = vpack.i.bf16 %v5967_v22, %v1673_v62  ;;  %v4509_v58 = vpack.i.bf16 %v5980_v51, %v5967_v22  ;;  %v4554_v37 = vpack.i.bf16 %v5014_v49, %v5928_v46  ;;  %v4539_v63 = vpack.i.bf16 %v6006_v59, %v1674_v44 }
 0x260   : > { %v4544_v52 = vpack.i.bf16 %v6019_v57, %v6006_v59 }
 0x261   : > { %4470 = vrot.lane.b32.xlu1 %v4469_v9, %s5035_s26 }
 0x263   : > { %2003 = vrot.lane.b32.xlu0 %v5006_v48, %s5042_s15  ;;  %v5012_v48 = vcombine.low %v1609_v5, %v1609_v5 }
 0x265   : > { %4475 = vrot.lane.b32.xlu1 %v4474_v32, %s5036_s27  ;;  %v4519_v55 = vpack.i.bf16 %v5012_v48, %v1625_v36 }
 0x267   : > { %2007 = vrot.lane.b32.xlu0 %v5008_v45, %s5042_s15 }
 0x269   : > { %4480 = vrot.lane.b32.xlu1 %v4469_v9, %s5037_s28 }
 0x26b   : > { %4455 = vrot.lane.b32.xlu0 %v4454_v10, %s5035_s26 }
 0x26d   : > { %4485 = vrot.lane.b32.xlu1 %v4484_v19, %s5038_s29 }
 0x26f   : > { %4460 = vrot.lane.b32.xlu0 %v4459_v40, %s5036_s27 }
 0x271   : > { %4495 = vrot.lane.b32.xlu1 %v4484_v19, %s5040_s11 }
 0x273   : > { %4465 = vrot.lane.b32.xlu0 %v4454_v10, %s5037_s28 }
 0x275   : > { %4505 = vrot.lane.b32.xlu1 %v4504_v6, %s5035_s26 }
 0x277   : > { %2013 = vrot.lane.b32.xlu0 %v1625_v36, %s5042_s15 }
 0x279   : > { %4510 = vrot.lane.b32.xlu1 %v4509_v58, %s5036_s27 }
 0x27b   : > { %4490 = vrot.lane.b32.xlu0 %v4489_v33, %s5039_s30 }
 0x27d   : > { %4515 = vrot.lane.b32.xlu1 %v4504_v6, %s5037_s28 }
 0x27f   : > { %4500 = vrot.lane.b32.xlu0 %v4489_v33, %s5041_s12 }
 0x281   : > { %2011 = vrot.lane.b32.xlu1 %v5010_v38, %s5042_s15 }
 0x283   : > { %4520 = vrot.lane.b32.xlu0 %v4519_v55, %s5038_s29 }
 0x285   : > { %2015 = vrot.lane.b32.xlu1 %v5012_v48, %s5042_s15 }
 0x287   : > { %4525 = vrot.lane.b32.xlu0 %v4524_v47, %s5039_s30 }
 0x289   : > { %1739 = vrot.lane.b32.xlu1 %v5997_v23, %s5036_s27 }
 0x28b   : > { %4530 = vrot.lane.b32.xlu0 %v4519_v55, %s5040_s11 }
 0x28d   : > { %4555 = vrot.lane.b32.xlu1 %v4554_v37, %s5038_s29 }
 0x28f   : > { %4535 = vrot.lane.b32.xlu0 %v4524_v47, %s5041_s12 }
 0x291   : > { %4560 = vrot.lane.b32.xlu1 %v4559_v1, %s5039_s30 }
 0x293   : > { %2017 = vrot.lane.b32.xlu0 %v5928_v46, %s5042_s15 }
 0x295   : > { %4565 = vrot.lane.b32.xlu1 %v4554_v37, %s5040_s11 }
 0x297   : > { %4540 = vrot.lane.b32.xlu0 %v4539_v63, %s5035_s26 }
 0x299   : > { %4570 = vrot.lane.b32.xlu1 %v4559_v1, %s5041_s12 }
 0x29b   : > { %4545 = vrot.lane.b32.xlu0 %v4544_v52, %s5036_s27 }
 0x29d   : > { %1887 = vrot.lane.b32.xlu1 %v1866_v4, %s5039_s30  ;;  %v2002_v45 = vpop.permute.xlu1 %2001 }
 0x29f   : > { %4550 = vrot.lane.b32.xlu0 %v4539_v63, %s5037_s28 }
 0x2a1   : > { %1978 = vrot.lane.b32.xlu1 %v1866_v4, %s5041_s12 }
 0x2a3   : > { %1935 = vrot.lane.b32.xlu0 %v1653_v30, %s5040_s11 }
 0x2a5   : > { %2021 = vrot.lane.b32.xlu1 %v1653_v30, %s5042_s15 }
 0x2a7   : > { %1696 = vrot.lane.b32.xlu0 %v1675_v27, %s5035_s26 }
 0x2ab   : > { %1782 = vrot.lane.b32.xlu0 %v1675_v27, %s5037_s28 }
 0x2af   : > { %2019 = vrot.lane.b32.xlu0 %v5014_v49, %s5042_s15 }
 0x2b1   : > { %v2006_v42 = vpop.permute.xlu1 %2005 }
 0x2b3   : > { %2216 = vrot.lane.b32.xlu0 %v2002_v45, %s5043_s16 }
 0x2bb   : > { %v6037_v13 = vpop.permute.xlu1 %4405 }
 0x2bd   : > { %v6039_v21 = vpop.permute.xlu0 %4400 }
 0x2be   : > { %v4403_v38 = vunpack.i.h.bf16 %v6039_v21  ;;  %v4402_v10 = vunpack.i.l.bf16 %v6039_v21 }
 0x2bf   : > { %v4416_v18 = vpop.permute.xlu1 %4415 }
 0x2c0   : > { %v4417_v0 = vunpack.i.l.bf16 %v4416_v18  ;;  %v4418_v40 = vunpack.i.h.bf16 %v4416_v18  ;;  %v1699_v44 = vsel %vm521_vm6, %v4402_v10, %v4403_v38 }
 0x2c1   : > { %v6041_v2 = vpop.permute.xlu0 %4410 }
 0x2c2   : > { %v1835_v63 = vsel %vm661_vm9, %v4417_v0, %v4418_v40 }
 0x2c3   : > { %v6043_v43 = vpop.permute.xlu1 %4430 }
 0x2c4   : > { %v4432_v58 = vunpack.i.l.bf16 %v6043_v43 }
 0x2c5   : > { %v6045_v7 = vpop.permute.xlu0 %4420 }
 0x2c6   : > { %v4422_v62 = vunpack.i.l.bf16 %v6045_v7 }
 0x2c7   : > { %v4436_v5 = vpop.permute.xlu1 %4435 }
 0x2c8   : > { %v4437_v32 = vunpack.i.l.bf16 %v4436_v5  ;;  %v1836_v30 = vsel %vm661_vm9, %v4418_v40, %v4422_v62  ;;  %v4438_v52 = vunpack.i.h.bf16 %v4436_v5  ;;  %v4413_v40 = vunpack.i.h.bf16 %v6041_v2 }
 0x2c9   : > { %v4426_v54 = vpop.permute.xlu0 %4425 }
 0x2ca   : > { %v4427_v46 = vunpack.i.l.bf16 %v4426_v54  ;;  %v4428_v9 = vunpack.i.h.bf16 %v4426_v54 }
 0x2cb   : > { %v6047_v41 = vpop.permute.xlu1 %4450 }
 0x2cc   : > { %v2055_v6 = vsel %vm864_vm5, %v4417_v0, %v4427_v46  ;;  %v1889_v24 = vsel %vm716_vm10, %v4427_v46, %v4428_v9  ;;  %v1890_v49 = vsel %vm716_vm10, %v4428_v9, %v4432_v58  ;;  %v4452_v27 = vunpack.i.l.bf16 %v6047_v41 }
 0x2cd   : > { %v6049_v25 = vpop.permute.xlu0 %4440  ;;  %v2056_v18 = vsel %vm864_vm5, %v1835_v63, %v1889_v24  ;;  %v4408_v24 = vunpack.i.h.bf16 %v6037_v13 }
 0x2ce   : > { %v4442_v4 = vunpack.i.l.bf16 %v6049_v25 }
 0x2cf   : > { %v6051_v36 = vpop.permute.xlu1 %2009 }
 0x2d1   : > { %v4446_v34 = vpop.permute.xlu0 %4445 }
 0x2d2   : > { %v4447_v3 = vunpack.i.l.bf16 %v4446_v34  ;;  %v4448_v37 = vunpack.i.h.bf16 %v4446_v34  ;;  %v2057_v34 = vsel %vm864_vm5, %v1836_v30, %v1890_v49 }
 0x2d3   : > { %v4471_v19 = vpop.permute.xlu1 %4470 }
 0x2d4   : > { %v2066_v11 = vsel %vm864_vm5, %v4437_v32, %v4447_v3  ;;  %v4472_v48 = vunpack.i.l.bf16 %v4471_v19  ;;  %v1980_v9 = vsel %vm809_vm11, %v4447_v3, %v4448_v37  ;;  %v1981_v5 = vsel %vm809_vm11, %v4448_v37, %v4452_v27 }
 0x2d5   : > { %v2004_v33 = vpop.permute.xlu0 %2003  ;;  %v4574_v55 = vpack.i.bf16 %v2066_v11, %v2055_v6  ;;  %v2034_v6 = vsel %vm864_vm5, %v5883_v8, %v1699_v44  ;;  %v1938_v3 = vsel %vm765_vm13, %v4438_v52, %v4442_v4  ;;  %v4473_v37 = vunpack.i.h.bf16 %v4471_v19 }
 0x2d6   : > { %v2023_v47 = vsel %vm853_vm12, %v2002_v45, %v2004_v33  ;;  %v1700_v12 = vsel %vm521_vm6, %v4403_v38, %v4472_v48  ;;  %v2024_v46 = vsel %vm853_vm12, %v2004_v33, %v2006_v42  ;;  %v4594_v33 = vpack.i.bf16 %v2057_v34, %v2056_v18 }
 0x2d7   : > { %2218 = vrot.lane.b32.xlu0 %v2023_v47, %s5043_s16  ;;  %4575 = vrot.lane.b32.xlu1 %v4574_v55, %s5043_s16  ;;  %v6067_v1 = vpop.permute.xlu1 %4475  ;;  %v2035_v0 = vsel %vm864_vm5, %v5885_v53, %v1700_v12  ;;  %v1937_v53 = vsel %vm765_vm13, %v4437_v32, %v4438_v52  ;;  %v4407_v47 = vunpack.i.l.bf16 %v6037_v13  ;;  %v1701_v19 = vsel %vm521_vm6, %v4472_v48, %v4473_v37 }
 0x2d8   : > { %v4579_v55 = vpack.i.bf16 %v2035_v0, %v2034_v6  ;;  %v2067_v49 = vsel %vm864_vm5, %v1937_v53, %v1980_v9  ;;  %v4478_v0 = vunpack.i.h.bf16 %v6067_v1 }
 0x2d9   : > { %v2008_v45 = vpop.permute.xlu0 %2007  ;;  %v1742_v52 = vsel %vm565_vm7, %v4407_v47, %v4408_v24 }
 0x2da   : > { %v2025_v54 = vsel %vm853_vm12, %v2006_v42, %v2008_v45  ;;  %v4412_v42 = vunpack.i.l.bf16 %v6041_v2  ;;  %v2068_v2 = vsel %vm864_vm5, %v1938_v3, %v1981_v5  ;;  %v2026_v6 = vsel %vm853_vm12, %v2008_v45, %v6051_v36 }
 0x2db   : > { %2222 = vrot.lane.b32.xlu0 %v2025_v54, %s5043_s16  ;;  %2220 = vrot.lane.b32.xlu1 %v2024_v46, %s5043_s16  ;;  %v4481_v38 = vpop.permute.xlu1 %4480  ;;  %v4599_v13 = vpack.i.bf16 %v2068_v2, %v2067_v49  ;;  %v4477_v45 = vunpack.i.l.bf16 %v6067_v1 }
 0x2dc   : > { %v1785_v12 = vsel %vm609_vm8, %v4412_v42, %v4413_v40  ;;  %v4482_v44 = vunpack.i.l.bf16 %v4481_v38  ;;  %v4483_v53 = vunpack.i.h.bf16 %v4481_v38  ;;  %v1741_v38 = vsel %vm565_vm7, %v4478_v0, %v4407_v47 }
 0x2dd   : > { %v6098_v11 = vpop.permute.xlu0 %4455  ;;  %v2045_v34 = vsel %vm864_vm5, %v1742_v52, %v1785_v12  ;;  %v4433_v0 = vunpack.i.h.bf16 %v6043_v43 }
 0x2de   : > { %v4457_v8 = vunpack.i.l.bf16 %v6098_v11  ;;  %v4458_v63 = vunpack.i.h.bf16 %v6098_v11  ;;  %v1786_v9 = vsel %vm609_vm8, %v4413_v40, %v4482_v44 }
 0x2df   : > { %4595 = vrot.lane.b32.xlu1 %v4594_v33, %s5043_s16  ;;  %4580 = vrot.lane.b32.xlu0 %v4579_v55, %s5043_s16  ;;  %v6107_v32 = vpop.permute.xlu1 %4485 }
 0x2e0   : > { %v1702_v54 = vsel %vm521_vm6, %v4473_v37, %v4457_v8  ;;  %v1698_v48 = vsel %vm521_vm6, %v4458_v63, %v4402_v10  ;;  %v2036_v10 = vsel %vm864_vm5, %v5964_v60, %v1701_v19  ;;  %v4423_v19 = vunpack.i.h.bf16 %v6045_v7 }
 0x2e1   : > { %v4461_v30 = vpop.permute.xlu0 %4460  ;;  %v1891_v7 = vsel %vm716_vm10, %v4432_v58, %v4433_v0 }
 0x2e2   : > { %v4462_v18 = vunpack.i.l.bf16 %v4461_v30  ;;  %v4463_v3 = vunpack.i.h.bf16 %v4461_v30 }
 0x2e3   : > { %4600 = vrot.lane.b32.xlu1 %v4599_v13, %s5043_s16  ;;  %v6117_v46 = vpop.permute.xlu1 %4495 }
 0x2e4   : > { %v1743_v5 = vsel %vm565_vm7, %v4408_v24, %v4462_v18  ;;  %v2037_v24 = vsel %vm864_vm5, %v5935_v29, %v1702_v54  ;;  %v2033_v29 = vsel %vm864_vm5, %v5874_v17, %v1698_v48  ;;  %v1744_v63 = vsel %vm565_vm7, %v4462_v18, %v4463_v3 }
 0x2e5   : > { %v6128_v33 = vpop.permute.xlu0 %4465  ;;  %v2046_v55 = vsel %vm864_vm5, %v1743_v5, %v1786_v9  ;;  %v1745_v30 = vsel %vm565_vm7, %v4463_v3, %v4477_v45  ;;  %v4604_v47 = vpack.i.bf16 %v2037_v24, %v2036_v10  ;;  %v1787_v54 = vsel %vm609_vm8, %v4482_v44, %v4483_v53 }
 0x2e6   : > { %v4468_v49 = vunpack.i.h.bf16 %v6128_v33  ;;  %v4467_v2 = vunpack.i.l.bf16 %v6128_v33  ;;  %v4584_v40 = vpack.i.bf16 %v2046_v55, %v2045_v34  ;;  %v4487_v18 = vunpack.i.l.bf16 %v6107_v32 }
 0x2e7   : > { %2224 = vrot.lane.b32.xlu1 %v2026_v6, %s5043_s16  ;;  %v6137_v21 = vpop.permute.xlu1 %4505  ;;  %v2047_v34 = vsel %vm864_vm5, %v1744_v63, %v1787_v54  ;;  %v4443_v9 = vunpack.i.h.bf16 %v6049_v25  ;;  %v1837_v44 = vsel %vm661_vm9, %v4422_v62, %v4423_v19 }
 0x2e8   : > { %v1784_v37 = vsel %vm609_vm8, %v4468_v49, %v4412_v42  ;;  %v1788_v12 = vsel %vm609_vm8, %v4483_v53, %v4467_v2  ;;  %4585 = vrot.lane.b32.xlu0 %v4584_v40, %s5043_s16  ;;  %v4453_v53 = vunpack.i.h.bf16 %v6047_v41  ;;  %v1838_v55 = vsel %vm661_vm9, %v4423_v19, %v4487_v18 }
 0x2e9   : > { %v6153_v60 = vpop.permute.xlu0 %2013  ;;  %v2044_v42 = vsel %vm864_vm5, %v1741_v38, %v1784_v37  ;;  %v2048_v52 = vsel %vm864_vm5, %v1745_v30, %v1788_v12  ;;  %v4497_v49 = vunpack.i.l.bf16 %v6117_v46  ;;  %v4507_v40 = vunpack.i.l.bf16 %v6137_v21 }
 0x2ea   : > { %v4589_v13 = vpack.i.bf16 %v2044_v42, %v2033_v29  ;;  %v4609_v6 = vpack.i.bf16 %v2048_v52, %v2047_v34  ;;  %v1939_v62 = vsel %vm765_vm13, %v4442_v4, %v4443_v9  ;;  %v4508_v10 = vunpack.i.h.bf16 %v6137_v21 }
 0x2eb   : > { %4605 = vrot.lane.b32.xlu1 %v4604_v47, %s5043_s16  ;;  %v6160_v17 = vpop.permute.xlu1 %4510  ;;  %v2058_v29 = vsel %vm864_vm5, %v1837_v44, %v1891_v7  ;;  %v1982_v43 = vsel %vm809_vm11, %v4452_v27, %v4453_v53  ;;  %v1940_v25 = vsel %vm765_vm13, %v4443_v9, %v4497_v49  ;;  %v1703_v4 = vsel %vm521_vm6, %v4457_v8, %v4507_v40 }
 0x2ec   : > { %4590 = vrot.lane.b32.xlu0 %v4589_v13, %s5043_s16  ;;  %v2069_v47 = vsel %vm864_vm5, %v1939_v62, %v1982_v43  ;;  %v1704_v41 = vsel %vm521_vm6, %v4507_v40, %v4508_v10  ;;  %v4488_v8 = vunpack.i.h.bf16 %v6107_v32  ;;  %v4513_v54 = vunpack.i.h.bf16 %v6160_v17 }
 0x2ed   : > { %v4491_v5 = vpop.permute.xlu0 %4490  ;;  %v4512_v34 = vunpack.i.l.bf16 %v6160_v17  ;;  %v2039_v44 = vsel %vm864_vm5, %v5967_v22, %v1704_v41 }
 0x2ee   : > { %v4492_v48 = vunpack.i.l.bf16 %v4491_v5  ;;  %v4493_v11 = vunpack.i.h.bf16 %v4491_v5 }
 0x2ef   : > { %4610 = vrot.lane.b32.xlu1 %v4609_v6, %s5043_s16  ;;  %v6172_v3 = vpop.permute.xlu1 %4515  ;;  %v2038_v6 = vsel %vm864_vm5, %v5947_v61, %v1703_v4  ;;  %v1746_v61 = vsel %vm565_vm7, %v4477_v45, %v4512_v34  ;;  %v1747_v22 = vsel %vm565_vm7, %v4512_v34, %v4513_v54 }
 0x2f0   : > { %v1892_v24 = vsel %vm716_vm10, %v4433_v0, %v4492_v48  ;;  %v4518_v27 = vunpack.i.h.bf16 %v6172_v3  ;;  %v4517_v42 = vunpack.i.l.bf16 %v6172_v3  ;;  %v4624_v33 = vpack.i.bf16 %v2039_v44, %v2038_v6 }
 0x2f1   : > { %v6185_v38 = vpop.permute.xlu0 %4500  ;;  %v2059_v37 = vsel %vm864_vm5, %v1838_v55, %v1892_v24  ;;  %v1893_v55 = vsel %vm716_vm10, %v4492_v48, %v4493_v11  ;;  %v1839_v24 = vsel %vm661_vm9, %v4487_v18, %v4488_v8 }
 0x2f2   : > { %v4502_v12 = vunpack.i.l.bf16 %v6185_v38  ;;  %v4614_v63 = vpack.i.bf16 %v2059_v37, %v2058_v29  ;;  %v1789_v5 = vsel %vm609_vm8, %v4467_v2, %v4517_v42  ;;  %v1790_v32 = vsel %vm609_vm8, %v4517_v42, %v4518_v27 }
 0x2f3   : > { %v6193_v58 = vpop.permute.xlu1 %2011  ;;  %v2049_v48 = vsel %vm864_vm5, %v1746_v61, %v1789_v5  ;;  %v2050_v37 = vsel %vm864_vm5, %v1747_v22, %v1790_v32  ;;  %v2060_v45 = vsel %vm864_vm5, %v1839_v24, %v1893_v55  ;;  %v4503_v29 = vunpack.i.h.bf16 %v6185_v38 }
 0x2f4   : > { %v1983_v30 = vsel %vm809_vm11, %v4453_v53, %v4502_v12  ;;  %4615 = vrot.lane.b32.xlu0 %v4614_v63, %s5043_s16  ;;  %v4498_v63 = vunpack.i.h.bf16 %v6117_v46 }
 0x2f5   : > { %v4521_v13 = vpop.permute.xlu0 %4520  ;;  %v2070_v52 = vsel %vm864_vm5, %v1940_v25, %v1983_v30  ;;  %v4629_v25 = vpack.i.bf16 %v2050_v37, %v2049_v48  ;;  %v1984_v42 = vsel %vm809_vm11, %v4502_v12, %v4503_v29 }
 0x2f6   : > { %v4619_v19 = vpack.i.bf16 %v2070_v52, %v2069_v47  ;;  %v4522_v9 = vunpack.i.l.bf16 %v4521_v13  ;;  %v4523_v52 = vunpack.i.h.bf16 %v4521_v13  ;;  %v1941_v38 = vsel %vm765_vm13, %v4497_v49, %v4498_v63 }
 0x2f7   : > { %v6213_v0 = vpop.permute.xlu1 %2015  ;;  %v2071_v46 = vsel %vm864_vm5, %v1941_v38, %v1984_v42 }
 0x2f8   : > { %4620 = vrot.lane.b32.xlu0 %v4619_v19, %s5043_s16  ;;  %v1840_v7 = vsel %vm661_vm9, %v4488_v8, %v4522_v9  ;;  %v2028_v8 = vsel %vm853_vm12, %v6193_v58, %v6153_v60  ;;  %v1841_v32 = vsel %vm661_vm9, %v4522_v9, %v4523_v52 }
 0x2f9   : > { %v4526_v53 = vpop.permute.xlu0 %4525 }
 0x2fa   : > { %v4527_v40 = vunpack.i.l.bf16 %v4526_v53  ;;  %v4528_v30 = vunpack.i.h.bf16 %v4526_v53 }
 0x2fb   : > { %v6234_v2 = vpop.permute.xlu1 %1739 }
 0x2fc   : > { %v1894_v62 = vsel %vm716_vm10, %v4493_v11, %v4527_v40  ;;  %4625 = vrot.lane.b32.xlu0 %v4624_v33, %s5043_s16  ;;  %v1895_v6 = vsel %vm716_vm10, %v4527_v40, %v4528_v30 }
 0x2fd   : > { %v4531_v1 = vpop.permute.xlu0 %4530  ;;  %v2061_v18 = vsel %vm864_vm5, %v1840_v7, %v1894_v62  ;;  %v2062_v61 = vsel %vm864_vm5, %v1841_v32, %v1895_v6 }
 0x2fe   : > { %v4634_v43 = vpack.i.bf16 %v2061_v18, %v2060_v45  ;;  %v4532_v47 = vunpack.i.l.bf16 %v4531_v1  ;;  %v4533_v62 = vunpack.i.h.bf16 %v4531_v1 }
 0x2ff   : > { %v6245_v4 = vpop.permute.xlu1 %4555 }
 0x300   : > { %4635 = vrot.lane.b32.xlu1 %v4634_v43, %s5043_s16  ;;  %4630 = vrot.lane.b32.xlu0 %v4629_v25, %s5043_s16  ;;  %v4557_v19 = vunpack.i.l.bf16 %v6245_v4  ;;  %v1942_v44 = vsel %vm765_vm13, %v4498_v63, %v4532_v47  ;;  %v1943_v42 = vsel %vm765_vm13, %v4532_v47, %v4533_v62 }
 0x301   : > { %v4536_v41 = vpop.permute.xlu0 %4535 }
 0x302   : > { %v4537_v11 = vunpack.i.l.bf16 %v4536_v41  ;;  %v1842_v53 = vsel %vm661_vm9, %v4523_v52, %v4557_v19  ;;  %v4538_v33 = vunpack.i.h.bf16 %v4536_v41 }
 0x303   : > { %v6257_v34 = vpop.permute.xlu1 %4560 }
 0x304   : > { %v1985_v12 = vsel %vm809_vm11, %v4503_v29, %v4537_v11  ;;  %v4562_v13 = vunpack.i.l.bf16 %v6257_v34  ;;  %2228 = vrot.lane.b32.xlu0 %v2028_v8, %s5043_s16  ;;  %v1986_v29 = vsel %vm809_vm11, %v4537_v11, %v4538_v33 }
 0x305   : > { %v6264_v5 = vpop.permute.xlu0 %2017  ;;  %v2072_v49 = vsel %vm864_vm5, %v1942_v44, %v1985_v12  ;;  %v2073_v21 = vsel %vm864_vm5, %v1943_v42, %v1986_v29  ;;  %v2029_v29 = vsel %vm853_vm12, %v6153_v60, %v6213_v0 }
 0x306   : > { %v1896_v55 = vsel %vm716_vm10, %v4528_v30, %v4562_v13  ;;  %v4639_v40 = vpack.i.bf16 %v2072_v49, %v2071_v46 }
 0x307   : > { %v6275_v24 = vpop.permute.xlu1 %4565  ;;  %v2063_v22 = vsel %vm864_vm5, %v1842_v53, %v1896_v55 }
 0x308   : > { %4640 = vrot.lane.b32.xlu1 %v4639_v40, %s5043_s16  ;;  %v4654_v7 = vpack.i.bf16 %v2063_v22, %v2062_v61  ;;  %v4567_v45 = vunpack.i.l.bf16 %v6275_v24  ;;  %v2030_v61 = vsel %vm853_vm12, %v6213_v0, %v6264_v5  ;;  %v4568_v22 = vunpack.i.h.bf16 %v6275_v24 }
 0x309   : > { %v4541_v9 = vpop.permute.xlu0 %4540 }
 0x30a   : > { %v4543_v48 = vunpack.i.h.bf16 %v4541_v9  ;;  %v4542_v37 = vunpack.i.l.bf16 %v4541_v9  ;;  %4655 = vrot.lane.b32.xlu0 %v4654_v7, %s5043_s16  ;;  %v1944_v52 = vsel %vm765_vm13, %v4533_v62, %v4567_v45  ;;  %v4563_v9 = vunpack.i.h.bf16 %v6257_v34 }
 0x30b   : > { %v4571_v18 = vpop.permute.xlu1 %4570  ;;  %v1945_v42 = vsel %vm765_vm13, %v4567_v45, %v4568_v22 }
 0x30c   : > { %v1705_v43 = vsel %vm521_vm6, %v4508_v10, %v4542_v37  ;;  %v1706_v63 = vsel %vm521_vm6, %v4542_v37, %v4543_v48  ;;  %v4572_v25 = vunpack.i.l.bf16 %v4571_v18 }
 0x30d   : > { %v4546_v30 = vpop.permute.xlu0 %4545  ;;  %v2040_v1 = vsel %vm864_vm5, %v5980_v51, %v1705_v43  ;;  %v2041_v41 = vsel %vm864_vm5, %v6006_v59, %v1706_v63 }
 0x30e   : > { %v1987_v11 = vsel %vm809_vm11, %v4538_v33, %v4572_v25  ;;  %v4644_v38 = vpack.i.bf16 %v2041_v41, %v2040_v1  ;;  %v4548_v8 = vunpack.i.h.bf16 %v4546_v30  ;;  %v4547_v6 = vunpack.i.l.bf16 %v4546_v30 }
 0x30f   : > { %v2074_v10 = vsel %vm864_vm5, %v1944_v52, %v1987_v11  ;;  %v4573_v33 = vunpack.i.h.bf16 %v4571_v18 }
 0x310   : > { %v4659_v44 = vpack.i.bf16 %v2074_v10, %v2073_v21  ;;  %4645 = vrot.lane.b32.xlu1 %v4644_v38, %s5043_s16  ;;  %v1748_v59 = vsel %vm565_vm7, %v4513_v54, %v4547_v6  ;;  %v1749_v47 = vsel %vm565_vm7, %v4547_v6, %v4548_v8  ;;  %v1888_v54 = vpop.permute.xlu1 %1887 }
 0x311   : > { %v4551_v51 = vpop.permute.xlu0 %4550  ;;  %v1988_v0 = vsel %vm809_vm11, %v4572_v25, %v4573_v33  ;;  %v1898_v30 = vsel %vm716_vm10, %v4563_v9, %v1888_v54 }
 0x312   : > { %v4553_v12 = vunpack.i.h.bf16 %v4551_v51  ;;  %v4552_v46 = vunpack.i.l.bf16 %v4551_v51  ;;  %4660 = vrot.lane.b32.xlu0 %v4659_v44, %s5043_s16  ;;  %v2075_v52 = vsel %vm864_vm5, %v1945_v42, %v1988_v0 }
 0x314   : > { %v1791_v49 = vsel %vm609_vm8, %v4518_v27, %v4552_v46  ;;  %v1792_v32 = vsel %vm609_vm8, %v4552_v46, %v4553_v12  ;;  %v2027_v27 = vsel %vm853_vm12, %v6051_v36, %v6193_v58  ;;  %v1979_v62 = vpop.permute.xlu1 %1978  ;;  %v1750_v36 = vsel %vm565_vm7, %v4548_v8, %v6234_v2 }
 0x315   : > { %v1936_v53 = vpop.permute.xlu0 %1935  ;;  %v2051_v55 = vsel %vm864_vm5, %v1748_v59, %v1791_v49  ;;  %v2052_v40 = vsel %vm864_vm5, %v1749_v47, %v1792_v32  ;;  %v1989_v1 = vsel %vm809_vm11, %v4573_v33, %v1979_v62 }
 0x316   : > { %v4649_v17 = vpack.i.bf16 %v2052_v40, %v2051_v55  ;;  %2232 = vrot.lane.b32.xlu0 %v2030_v61, %s5043_s16  ;;  %v1946_v43 = vsel %vm765_vm13, %v4568_v22, %v1936_v53 }
 0x318   : > { %4650 = vrot.lane.b32.xlu1 %v4649_v17, %s5043_s16  ;;  %v2022_v10 = vpop.permute.xlu1 %2021 }
 0x319   : > { %v1697_v3 = vpop.permute.xlu0 %1696 }
 0x31a   : > { %v1707_v7 = vsel %vm521_vm6, %v4543_v48, %v1697_v3  ;;  %v4558_v48 = vunpack.i.h.bf16 %v6245_v4  ;;  %v2043_v63 = vsel %vm864_vm5, %v5997_v23, %v1697_v3 }
 0x31b   : > { %v2042_v18 = vsel %vm864_vm5, %v6019_v57, %v1707_v7  ;;  %v1897_v57 = vsel %vm716_vm10, %v4562_v13, %v4563_v9 }
 0x31c   : > { %2226 = vrot.lane.b32.xlu1 %v2027_v27, %s5043_s16  ;;  %v4664_v23 = vpack.i.bf16 %v2043_v63, %v2042_v18  ;;  %v2065_v25 = vsel %vm864_vm5, %v4558_v48, %v1898_v30  ;;  %v1843_v11 = vsel %vm661_vm9, %v4557_v19, %v4558_v48  ;;  %v2078_v19 = vld [vmem:[%s7118_s7] sm:$0xf] }
 0x31d   : > { %v1783_v37 = vpop.permute.xlu0 %1782  ;;  %v2064_v34 = vsel %vm864_vm5, %v1843_v11, %v1897_v57 }
 0x31e   : > { %v1793_v58 = vsel %vm609_vm8, %v4553_v12, %v1783_v37  ;;  %v2054_v24 = vsel %vm864_vm5, %v6234_v2, %v1783_v37  ;;  %v2076_v2 = vsel %vm864_vm5, %v1946_v43, %v1989_v1  ;;  %v4674_v21 = vpack.i.bf16 %v2065_v25, %v2064_v34 }
 0x31f   : > { %v2053_v60 = vsel %vm864_vm5, %v1750_v36, %v1793_v58  ;;  %v4679_v38 = vpack.i.bf16 %v2076_v2, %v2075_v52 }
 0x320   : > { %v4669_v41 = vpack.i.bf16 %v2054_v24, %v2053_v60  ;;  %2230 = vrot.lane.b32.xlu1 %v2029_v29, %s5043_s16 }
 0x321   : > { %v2020_v13 = vpop.permute.xlu0 %2019 }
 0x322   : > { %4670 = vrot.lane.b32.xlu0 %v4669_v41, %s5043_s16  ;;  %v2032_v45 = vsel %vm853_vm12, %v2020_v13, %v2022_v10  ;;  %v2031_v4 = vsel %vm853_vm12, %v6264_v5, %v2020_v13 }
 0x324   : > { %4665 = vrot.lane.b32.xlu1 %v4664_v23, %s5043_s16 }
 0x325   : > { %v2217_v8 = vpop.permute.xlu0 %2216 }
 0x326   : > { %4680 = vrot.lane.b32.xlu0 %v4679_v38, %s5043_s16 }
 0x328   : > { %4675 = vrot.lane.b32.xlu1 %v4674_v21, %s5043_s16 }
 0x32a   : > { %2236 = vrot.lane.b32.xlu0 %v2032_v45, %s5043_s16 }
 0x32c   : > { %2234 = vrot.lane.b32.xlu1 %v2031_v4, %s5043_s16  ;;  %v6390_v4 = vld [vmem:[%s7117_s6] sm:$0xf] }
 0x330   : > { %2081 = vperm.xlu1 %4398, %v2078_v19  }
 0x349   : > { %v4576_v6 = vpop.permute.xlu1 %4575  ;;  %v2219_v44 = vpop.permute.xlu0 %2218 }
 0x34a   : > { %v4578_v58 = vunpack.i.h.bf16 %v4576_v6  ;;  %v4577_v1 = vunpack.i.l.bf16 %v4576_v6  ;;  %v2278_v19 = vsel %vm1070_vm14, %v2217_v8, %v2219_v44 }
 0x34d   : > { %v6362_v51 = vpop.permute.xlu1 %2220  ;;  %v6364_v12 = vpop.permute.xlu0 %2222 }
 0x34e   : > { %v2279_v13 = vsel %vm1070_vm14, %v2219_v44, %v6362_v51 }
 0x351   : > { %v4596_v46 = vpop.permute.xlu1 %4595  ;;  %v4581_v47 = vpop.permute.xlu0 %4580 }
 0x352   : > { %v4583_v49 = vunpack.i.h.bf16 %v4581_v47  ;;  %v4582_v32 = vunpack.i.l.bf16 %v4581_v47  ;;  %v4598_v22 = vunpack.i.h.bf16 %v4596_v46  ;;  %v4597_v33 = vunpack.i.l.bf16 %v4596_v46 }
 0x354   : > { %v2239_v3 = vsel %vm1070_vm14, %v4582_v32, %v4583_v49  ;;  %v2259_v30 = vsel %vm1070_vm14, %v4597_v33, %v4598_v22  ;;  %v2258_v52 = vsel %vm1070_vm14, %v4577_v1, %v4597_v33 }
 0x355   : > { %v4601_v59 = vpop.permute.xlu1 %4600 }
 0x356   : > { %v4603_v61 = vunpack.i.h.bf16 %v4601_v59  ;;  %v4602_v17 = vunpack.i.l.bf16 %v4601_v59 }
 0x358   : > { %v2269_v36 = vsel %vm1070_vm14, %v4602_v17, %v4603_v61  ;;  %v2268_v41 = vsel %vm1070_vm14, %v4578_v58, %v4602_v17 }
 0x359   : > { %v6366_v5 = vpop.permute.xlu1 %2224  ;;  %v4016_v2 = vpack.c.bf16 %v2269_v36, %v2259_v30  ;;  %v4018_v34 = vpack.c.bf16 %v2268_v41, %v2258_v52 }
 0x35a   : > { %v4586_v53 = vpop.permute.xlu0 %4585 }
 0x35b   : > { %v4588_v55 = vunpack.i.h.bf16 %v4586_v53  ;;  %v4587_v40 = vunpack.i.l.bf16 %v4586_v53 }
 0x35d   : > { %v6368_v54 = vpop.permute.xlu1 %4605  ;;  %v2249_v27 = vsel %vm1070_vm14, %v4587_v40, %v4588_v55 }
 0x35e   : > { %v4591_v7 = vpop.permute.xlu0 %4590  ;;  %v4012_v9 = vpack.c.bf16 %v2249_v27, %v2239_v3  ;;  %v4608_v29 = vunpack.i.h.bf16 %v6368_v54  ;;  %v4607_v43 = vunpack.i.l.bf16 %v6368_v54  ;;  %v2281_v54 = vsel %vm1070_vm14, %v6364_v12, %v6366_v5 }
 0x35f   : > { %v4593_v62 = vunpack.i.h.bf16 %v4591_v7  ;;  %v4592_v37 = vunpack.i.l.bf16 %v4591_v7 }
 0x360   : > { %4013 = vmatprep.subr.bf16.mxu1 %v4012_v9  ;;  %v2240_v57 = vsel %vm1070_vm14, %v4583_v49, %v4607_v43  ;;  %v2241_v23 = vsel %vm1070_vm14, %v4607_v43, %v4608_v29 }
 0x361   : > { %v2238_v24 = vsel %vm1070_vm14, %v4592_v37, %v4582_v32  ;;  %v2248_v48 = vsel %vm1070_vm14, %v4593_v62, %v4587_v40  ;;  %v4611_v18 = vpop.permute.xlu1 %4610 }
 0x362   : > { %v4613_v63 = vunpack.i.h.bf16 %v4611_v18  ;;  %v4612_v60 = vunpack.i.l.bf16 %v4611_v18  ;;  %v4014_v0 = vpack.c.bf16 %v2248_v48, %v2238_v24 }
 0x364   : > { %v2250_v42 = vsel %vm1070_vm14, %v4588_v55, %v4612_v60  ;;  %4015 = vmatpush1.bf16.msra.mxu1 %v4014_v0  ;;  %v2251_v25 = vsel %vm1070_vm14, %v4612_v60, %v4613_v63 }
 0x365   : > { %4017 = vmatprep.subr.bf16.mxu1 %v4016_v2  ;;  %v4020_v11 = vpack.c.bf16 %v2251_v25, %v2241_v23  ;;  %v4022_v38 = vpack.c.bf16 %v2250_v42, %v2240_v57 }
 0x366   : > { %v4616_v21 = vpop.permute.xlu0 %4615 }
 0x367   : > { %4021 = vmatprep.subr.bf16.mxu0 %v4020_v11  ;;  %v4618_v10 = vunpack.i.h.bf16 %v4616_v21  ;;  %v4617_v45 = vunpack.i.l.bf16 %v4616_v21 }
 0x368   : > { %4019 = vmatpush1.bf16.msra.mxu1 %v4018_v34  ;;  %4023 = vmatpush1.bf16.msra.mxu0 %v4022_v38 }
 0x369   : > { %3940 = vmatprep.subr.msk.mxu1 %vm864_vm5, %v2279_v13  ;;  %v2260_v47 = vsel %vm1070_vm14, %v4598_v22, %v4617_v45  ;;  %v2261_v32 = vsel %vm1070_vm14, %v4617_v45, %v4618_v10  ;;  %v2280_v22 = vsel %vm1070_vm14, %v6362_v51, %v6364_v12 }
 0x36a   : > { %v4621_v6 = vpop.permute.xlu0 %4620 }
 0x36b   : > { %v4623_v46 = vunpack.i.h.bf16 %v4621_v6  ;;  %v4622_v59 = vunpack.i.l.bf16 %v4621_v6 }
 0x36c   : > { %3941 = vmatpush1.msk.msra.mxu1 %vm864_vm5, %v2278_v19 }
 0x36d   : > { %3942 = vmatmul.mubr.msk.f32.vlgmr.msra.gmra.mrb[4].mxu1 %vm1161_vm15, %v6390_v4  ;;  %v2270_v49 = vsel %vm1070_vm14, %v4603_v61, %v4622_v59  ;;  %v2271_v53 = vsel %vm1070_vm14, %v4622_v59, %v4623_v46 }
 0x36e   : > { %2557 = vmatprep.mubr.f32.mxu1 %v7135_v39  ;;  %v4626_v55 = vpop.permute.xlu0 %4625  ;;  %v4024_v8 = vpack.c.bf16 %v2271_v53, %v2261_v32  ;;  %v4026_v44 = vpack.c.bf16 %v2270_v49, %v2260_v47 }
 0x36f   : > { %v4628_v40 = vunpack.i.h.bf16 %v4626_v55  ;;  %v4627_v17 = vunpack.i.l.bf16 %v4626_v55 }
 0x370   : > { %4025 = vmatprep.subr.bf16.mxu0 %v4024_v8 }
 0x371   : > { %4027 = vmatpush1.bf16.msra.mxu0 %v4026_v44  ;;  %v2242_v33 = vsel %vm1070_vm14, %v4608_v29, %v4627_v17  ;;  %v2243_v62 = vsel %vm1070_vm14, %v4627_v17, %v4628_v40 }
 0x372   : > { %v4631_v3 = vpop.permute.xlu0 %4630  ;;  %3943 = vmatprep.subr.msk.mxu0 %vm864_vm5, %v2281_v54  ;;  %v4636_v7 = vpop.permute.xlu1 %4635 }
 0x373   : > { %v4633_v61 = vunpack.i.h.bf16 %v4631_v3  ;;  %v4632_v27 = vunpack.i.l.bf16 %v4631_v3  ;;  %v4638_v58 = vunpack.i.h.bf16 %v4636_v7  ;;  %v4637_v51 = vunpack.i.l.bf16 %v4636_v7 }
 0x375   : > { %v2252_v9 = vsel %vm1070_vm14, %v4613_v63, %v4632_v27  ;;  %3944 = vmatpush1.msk.msra.mxu0 %vm864_vm5, %v2280_v22  ;;  %v2253_v37 = vsel %vm1070_vm14, %v4632_v27, %v4633_v61  ;;  %v2262_v48 = vsel %vm1070_vm14, %v4618_v10, %v4637_v51  ;;  %v2263_v63 = vsel %vm1070_vm14, %v4637_v51, %v4638_v58 }
 0x376   : > { %3945 = vmatmul.mubr.msk.f32.vlgmr.msra.gmra.mrb[6].mxu0 %vm1161_vm15, %v6390_v4  ;;  %v4028_v43 = vpack.c.bf16 %v2253_v37, %v2243_v62  ;;  %v4030_v36 = vpack.c.bf16 %v2252_v9, %v2242_v33  ;;  %v2229_v0 = vpop.permute.xlu0 %2228 }
 0x377   : > { %2628 = vmatprep.mubr.f32.mxu0 %v7135_v39 }
 0x378   : > { %4029 = vmatprep.subr.bf16.mxu1 %v4028_v43 }
 0x379   : > { %4031 = vmatpush1.bf16.msra.mxu1 %v4030_v36 }
 0x37a   : > { %v4641_v12 = vpop.permute.xlu1 %4640 }
 0x37b   : > { %v4643_v29 = vunpack.i.h.bf16 %v4641_v12  ;;  %v4642_v24 = vunpack.i.l.bf16 %v4641_v12 }
 0x37c   : > { %v6420_v41 = vpop.permute.xlu0 %4655 }
 0x37d   : > { %v2272_v18 = vsel %vm1070_vm14, %v4623_v46, %v4642_v24  ;;  %v2273_v60 = vsel %vm1070_vm14, %v4642_v24, %v4643_v29  ;;  %v4658_v38 = vunpack.i.h.bf16 %v6420_v41  ;;  %v4657_v34 = vunpack.i.l.bf16 %v6420_v41 }
 0x37e   : > { %v4032_v30 = vpack.c.bf16 %v2273_v60, %v2263_v63  ;;  %v4034_v1 = vpack.c.bf16 %v2272_v18, %v2262_v48 }
 0x37f   : > { %v2265_v55 = vsel %vm1070_vm14, %v4657_v34, %v4658_v38  ;;  %v2264_v17 = vsel %vm1070_vm14, %v4638_v58, %v4657_v34 }
 0x380   : > { %4033 = vmatprep.subr.bf16.mxu1 %v4032_v30 }
 0x381   : > { %4035 = vmatpush1.bf16.msra.mxu1 %v4034_v1 }
 0x382   : > { %v4646_v2 = vpop.permute.xlu1 %4645 }
 0x383   : > { %v4647_v42 = vunpack.i.l.bf16 %v4646_v2  ;;  %v4648_v23 = vunpack.i.h.bf16 %v4646_v2 }
 0x384   : > { %v4661_v57 = vpop.permute.xlu0 %4660 }
 0x385   : > { %v4663_v25 = vunpack.i.h.bf16 %v4661_v57  ;;  %v4662_v52 = vunpack.i.l.bf16 %v4661_v57  ;;  %v2244_v10 = vsel %vm1070_vm14, %v4628_v40, %v4647_v42  ;;  %v2245_v19 = vsel %vm1070_vm14, %v4647_v42, %v4648_v23 }
 0x387   : > { %v2275_v46 = vsel %vm1070_vm14, %v4662_v52, %v4663_v25  ;;  %v2274_v8 = vsel %vm1070_vm14, %v4643_v29, %v4662_v52 }
 0x388   : > { %v2233_v44 = vpop.permute.xlu0 %2232  ;;  %v4040_v40 = vpack.c.bf16 %v2275_v46, %v2265_v55 }
 0x38a   : > { %v4651_v11 = vpop.permute.xlu1 %4650 }
 0x38b   : > { %v4653_v21 = vunpack.i.h.bf16 %v4651_v11  ;;  %v4652_v13 = vunpack.i.l.bf16 %v4651_v11 }
 0x38d   : > { %v2254_v45 = vsel %vm1070_vm14, %v4633_v61, %v4652_v13  ;;  %v2255_v6 = vsel %vm1070_vm14, %v4652_v13, %v4653_v21 }
 0x38e   : > { %v2227_v59 = vpop.permute.xlu1 %2226  ;;  %v4036_v47 = vpack.c.bf16 %v2255_v6, %v2245_v19  ;;  %v4038_v49 = vpack.c.bf16 %v2254_v45, %v2244_v10 }
 0x38f   : > { %v2282_v32 = vsel %vm1070_vm14, %v6366_v5, %v2227_v59  ;;  %v2283_v53 = vsel %vm1070_vm14, %v2227_v59, %v2229_v0  ;;  %v4042_v5 = vpack.c.bf16 %v2274_v8, %v2264_v17 }
 0x390   : > { %3946 = vmatprep.subr.msk.mxu1 %vm864_vm5, %v2283_v53  ;;  %4037 = vmatprep.subr.bf16.mxu0 %v4036_v47 }
 0x391   : > { %3947 = vmatpush1.msk.msra.mxu1 %vm864_vm5, %v2282_v32  ;;  %4039 = vmatpush1.bf16.msra.mxu0 %v4038_v49 }
 0x392   : > { %v2231_v54 = vpop.permute.xlu1 %2230  ;;  %3948 = vmatmul.mubr.msk.f32.vlgmr.msra.gmra.mrb[6].mxu1 %vm1161_vm15, %v6390_v4  ;;  %4041 = vmatprep.subr.bf16.mxu0 %v4040_v40 }
 0x393   : > { %2699 = vmatprep.mubr.f32.mxu1 %v7135_v39  ;;  %v2285_v61 = vsel %vm1070_vm14, %v2231_v54, %v2233_v44  ;;  %v2284_v62 = vsel %vm1070_vm14, %v2229_v0, %v2231_v54 }
 0x394   : > { %v4671_v3 = vpop.permute.xlu0 %4670 }
 0x395   : > { %v4673_v27 = vunpack.i.h.bf16 %v4671_v3  ;;  %v4672_v22 = vunpack.i.l.bf16 %v4671_v3  ;;  %4043 = vmatpush1.bf16.msra.mxu0 %v4042_v5 }
 0x396   : > { %v4666_v33 = vpop.permute.xlu1 %4665  ;;  %3949 = vmatprep.subr.msk.mxu0 %vm864_vm5, %v2285_v61 }
 0x397   : > { %v4668_v7 = vunpack.i.h.bf16 %v4666_v33  ;;  %v4667_v9 = vunpack.i.l.bf16 %v4666_v33  ;;  %v2256_v37 = vsel %vm1070_vm14, %v4653_v21, %v4672_v22  ;;  %v2257_v36 = vsel %vm1070_vm14, %v4672_v22, %v4673_v27 }
 0x398   : > { %v4681_v43 = vpop.permute.xlu0 %4680 }
 0x399   : > { %v2246_v58 = vsel %vm1070_vm14, %v4648_v23, %v4667_v9  ;;  %v4683_v51 = vunpack.i.h.bf16 %v4681_v43  ;;  %v4682_v12 = vunpack.i.l.bf16 %v4681_v43  ;;  %3950 = vmatpush1.msk.msra.mxu0 %vm864_vm5, %v2284_v62  ;;  %v2247_v29 = vsel %vm1070_vm14, %v4667_v9, %v4668_v7 }
 0x39a   : > { %v4046_v24 = vpack.c.bf16 %v2256_v37, %v2246_v58  ;;  %v4676_v48 = vpop.permute.xlu1 %4675  ;;  %3951 = vmatmul.mubr.msk.f32.vlgmr.msra.gmra.mrb[8].mxu0 %vm1161_vm15, %v6390_v4  ;;  %v4044_v18 = vpack.c.bf16 %v2257_v36, %v2247_v29 }
 0x39b   : > { %v4678_v63 = vunpack.i.h.bf16 %v4676_v48  ;;  %v4677_v60 = vunpack.i.l.bf16 %v4676_v48  ;;  %3529 = vmatprep.mubr.f32.mxu0 %v7135_v39  ;;  %v2276_v0 = vsel %vm1070_vm14, %v4663_v25, %v4682_v12  ;;  %v2277_v41 = vsel %vm1070_vm14, %v4682_v12, %v4683_v51  ;;  %v6462_v25 = vld [vmem:[#allocation2 + $0x2c] sm:$0xf] }
 0x39c   : > { %4045 = vmatprep.subr.bf16.mxu1 %v4044_v18  ;;  %v2237_v23 = vpop.permute.xlu0 %2236 }
 0x39d   : > { %v2266_v30 = vsel %vm1070_vm14, %v4658_v38, %v4677_v60  ;;  %4047 = vmatpush1.bf16.msra.mxu1 %v4046_v24  ;;  %v2267_v1 = vsel %vm1070_vm14, %v4677_v60, %v4678_v63  ;;  %v2980_v38 = vcombine.low %v6462_v25, %v6462_v25 }
 0x39e   : > { %v4050_v2 = vpack.c.bf16 %v2276_v0, %v2266_v30  ;;  %v2235_v57 = vpop.permute.xlu1 %2234  ;;  %v4048_v42 = vpack.c.bf16 %v2277_v41, %v2267_v1 }
 0x39f   : > { %v2287_v52 = vsel %vm1070_vm14, %v2235_v57, %v2237_v23  ;;  %v2286_v11 = vsel %vm1070_vm14, %v2233_v44, %v2235_v57  ;;  %3001 = vrot.lane.b32.xlu1 %v2980_v38, %s5039_s30 }
 0x3a0   : > { %4049 = vmatprep.subr.bf16.mxu1 %v4048_v42 }
 0x3a1   : > { %4051 = vmatpush1.bf16.msra.mxu1 %v4050_v2 }
 0x3a2   : > { %3952 = vmatprep.subr.msk.mxu1 %vm864_vm5, %v2287_v52 }
 0x3a3   : > { %3049 = vrot.lane.b32.xlu1 %v6462_v25, %s5040_s11 }
 0x3a5   : > { %3953 = vmatpush1.msk.msra.mxu1 %vm864_vm5, %v2286_v11 }
 0x3a6   : > { %3954 = vmatmul.mubr.msk.f32.vlgmr.msra.gmra.mrb[8].mxu1 %vm1161_vm15, %v6390_v4 }
 0x3a7   : > { %3600 = vmatprep.mubr.f32.mxu1 %v7135_v39  ;;  %3092 = vrot.lane.b32.xlu1 %v2980_v38, %s5041_s12 }
 0x3af   : > { %v6470_v34 = vpop.permute.xlu1 %2081 }
 0x440   : > { %v2417_v21 = vpop.f32.mrb[4].mxu1 }
 0x441   : > { %v2418_v13 = vadd.f32 %v2417_v21, %v6470_v34  ;;  %v2419_v4 = vpop.f32.mrb[5].mxu1 }
 0x442   : > { %v2420_v10 = vadd.f32 %v2419_v4, %v6470_v34 }
 0x443   : > { %v2706_v45 = vmax.f32 %v2418_v13, 0.0 }
 0x444   : > { %v2707_v19 = vmax.f32 %v2420_v10, 0.0 }
 0x445   : > { %v2716_v6 = vmul.f32 %v2706_v45, %v5829_v14 }
 0x446   : > { %v2717_v46 = vmul.f32 %v2707_v19, %v5833_v56 }
 0x447   : > { %v5017_v44 = vcombine.low %v2716_v6, %v2716_v6 }
 0x448   : > { %v2736_v59 = vcombine.low %v2716_v6, %v2717_v46  ;;  %v5016_v49 = vcombine.low %v2717_v46, %v2717_v46 }
 0x449   : > { %v2488_v47 = vpop.f32.mrb[6].mxu0 }
 0x44a   : > { %2746 = vst [vmem:[#allocation2 + $0x4] sm:$0xff] %v2736_v59  ;;  %3115 = vrot.lane.b32.xlu0 %v2736_v59, %s5042_s15  ;;  %v2489_v32 = vadd.f32 %v2488_v47, %v6470_v34  ;;  %v2490_v53 = vpop.f32.mrb[7].mxu0  ;;  %3117 = vrot.lane.b32.xlu1 %v5016_v49, %s5042_s15  ;;  %v4684_v8 = vpack.i.bf16 %v5016_v49, %v2736_v59 }
 0x44b   : > { %v2491_v55 = vadd.f32 %v2490_v53, %v6470_v34  ;;  %v4689_v3 = vpack.i.bf16 %v2736_v59, %v5017_v44 }
 0x44c   : > { %v2708_v40 = vmax.f32 %v2489_v32, 0.0 }
 0x44d   : > { %v2709_v17 = vmax.f32 %v2491_v55, 0.0 }
 0x44e   : > { %4685 = vrot.lane.b32.xlu0 %v4684_v8, %s5038_s29  ;;  %v2718_v54 = vmul.f32 %v2708_v40, %v5848_v16 }
 0x44f   : > { %v2719_v5 = vmul.f32 %v2709_v17, %v5853_v26 }
 0x450   : > { %v5019_v18 = vcombine.low %v2718_v54, %v2718_v54 }
 0x451   : > { %v2737_v61 = vcombine.low %v2718_v54, %v2719_v5  ;;  %v6485_v27 = vld [vmem:[#allocation2] sm:$0xff]  ;;  %v5018_v36 = vcombine.low %v2719_v5, %v2719_v5 }
 0x452   : > { %4690 = vrot.lane.b32.xlu0 %v4689_v3, %s5039_s30  ;;  %v2784_v22 = vcombine.low %v6485_v27, %v6485_v27  ;;  %v6492_v33 = vcombine.high %v6485_v27, %v6485_v27 }
 0x453   : > { %2747 = vst [vmem:[#allocation2 + $0xc] sm:$0xff] %v2737_v61  ;;  %v4734_v48 = vpack.i.bf16 %v5018_v36, %v2737_v61  ;;  %v4739_v30 = vpack.i.bf16 %v2737_v61, %v5019_v18 }
 0x456   : > { %4695 = vrot.lane.b32.xlu0 %v4684_v8, %s5040_s11 }
 0x45a   : > { %4700 = vrot.lane.b32.xlu0 %v4689_v3, %s5041_s12  ;;  %v6494_v7 = vld [vmem:[#allocation2 + $0x8] sm:$0xff] }
 0x45b   : > { %v4704_v9 = vpack.i.bf16 %v2784_v22, %v6494_v7  ;;  %v4709_v62 = vpack.i.bf16 %v6494_v7, %v6492_v33  ;;  %v6503_v37 = vcombine.high %v6494_v7, %v6494_v7  ;;  %v2785_v2 = vcombine.low %v6494_v7, %v6494_v7 }
 0x45d   : > { %4705 = vrot.lane.b32.xlu1 %v4704_v9, %s5035_s26  ;;  %v4724_v43 = vpack.i.bf16 %v6485_v27, %v6503_v37  ;;  %v4719_v38 = vpack.i.bf16 %v2785_v2, %v6485_v27  ;;  %v6595_v2 = vpop.permute.xlu1 %3001 }
 0x45e   : > { %4710 = vrot.lane.b32.xlu0 %v4709_v62, %s5036_s27 }
 0x461   : > { %4715 = vrot.lane.b32.xlu1 %v4704_v9, %s5037_s28 }
 0x462   : > { %3119 = vrot.lane.b32.xlu0 %v2737_v61, %s5042_s15 }
 0x465   : > { %v2559_v58 = vpop.f32.mrb[6].mxu1  ;;  %4725 = vrot.lane.b32.xlu1 %v4724_v43, %s5036_s27 }
 0x466   : > { %v2560_v51 = vadd.f32 %v2559_v58, %v6470_v34  ;;  %v2561_v12 = vpop.f32.mrb[7].mxu1 }
 0x467   : > { %v2562_v29 = vadd.f32 %v2561_v12, %v6470_v34 }
 0x468   : > { %v2710_v24 = vmax.f32 %v2560_v51, 0.0 }
 0x469   : > { %v2711_v63 = vmax.f32 %v2562_v29, 0.0  ;;  %4735 = vrot.lane.b32.xlu1 %v4734_v48, %s5038_s29 }
 0x46a   : > { %v2720_v60 = vmul.f32 %v2710_v24, %v5859_v28 }
 0x46b   : > { %v2721_v0 = vmul.f32 %v2711_v63, %v5865_v15 }
 0x46c   : > { %v5021_v46 = vcombine.low %v2720_v60, %v2720_v60 }
 0x46d   : > { %v2738_v1 = vcombine.low %v2720_v60, %v2721_v0  ;;  %v2630_v41 = vpop.f32.mrb[8].mxu0  ;;  %4740 = vrot.lane.b32.xlu1 %v4739_v30, %s5039_s30  ;;  %v5020_v4 = vcombine.low %v2721_v0, %v2721_v0 }
 0x46e   : > { %v2631_v57 = vadd.f32 %v2630_v41, %v6470_v34  ;;  %v2632_v42 = vpop.f32.mrb[9].mxu0 }
 0x46f   : > { %2748 = vst [vmem:[#allocation2 + $0x14] sm:$0xff] %v2738_v1  ;;  %v2633_v23 = vadd.f32 %v2632_v42, %v6470_v34  ;;  %3123 = vrot.lane.b32.xlu0 %v2738_v1, %s5042_s15  ;;  %v4769_v6 = vpack.i.bf16 %v5020_v4, %v2738_v1  ;;  %v4774_v44 = vpack.i.bf16 %v2738_v1, %v5021_v46 }
 0x470   : > { %v2712_v52 = vmax.f32 %v2631_v57, 0.0  ;;  %v6602_v57 = vpop.permute.xlu1 %3049 }
 0x471   : > { %v2713_v11 = vmax.f32 %v2633_v23, 0.0  ;;  %4745 = vrot.lane.b32.xlu1 %v4734_v48, %s5040_s11 }
 0x472   : > { %v2722_v21 = vmul.f32 %v2712_v52, %v5898_v20 }
 0x473   : > { %v2723_v13 = vmul.f32 %v2713_v11, %v5909_v35  ;;  %4720 = vrot.lane.b32.xlu0 %v4719_v38, %s5035_s26 }
 0x474   : > { %v5023_v43 = vcombine.low %v2722_v21, %v2722_v21  ;;  %v6605_v42 = vpop.permute.xlu1 %3092 }
 0x475   : > { %v2739_v10 = vcombine.low %v2722_v21, %v2723_v13  ;;  %4750 = vrot.lane.b32.xlu1 %v4739_v30, %s5041_s12  ;;  %v5022_v22 = vcombine.low %v2723_v13, %v2723_v13 }
 0x476   : > { %v6527_v45 = vld [vmem:[#allocation2 + $0x10] sm:$0xff] }
 0x477   : > { %2749 = vst [vmem:[#allocation2 + $0x1c] sm:$0xff] %v2739_v10  ;;  %4730 = vrot.lane.b32.xlu0 %v4719_v38, %s5037_s28  ;;  %v2786_v19 = vcombine.low %v6527_v45, %v6527_v45  ;;  %v6535_v49 = vcombine.high %v6527_v45, %v6527_v45  ;;  %v4804_v62 = vpack.i.bf16 %v5022_v22, %v2739_v10 }
 0x478   : > { %v4809_v51 = vpack.i.bf16 %v2739_v10, %v5023_v43 }
 0x479   : > { %v2701_v59 = vpop.f32.mrb[8].mxu1  ;;  %v4754_v47 = vpack.i.bf16 %v6527_v45, %v2786_v19  ;;  %4770 = vrot.lane.b32.xlu1 %v4769_v6, %s5038_s29  ;;  %v4759_v17 = vpack.i.bf16 %v6535_v49, %v6527_v45 }
 0x47a   : > { %v2702_v32 = vadd.f32 %v2701_v59, %v6470_v34  ;;  %v2703_v53 = vpop.f32.mrb[9].mxu1 }
 0x47b   : > { %v2704_v55 = vadd.f32 %v2703_v53, %v6470_v34  ;;  %4755 = vrot.lane.b32.xlu0 %v4754_v47, %s5035_s26 }
 0x47c   : > { %v2714_v8 = vmax.f32 %v2702_v32, 0.0 }
 0x47d   : > { %v2715_v40 = vmax.f32 %v2704_v55, 0.0  ;;  %4775 = vrot.lane.b32.xlu1 %v4774_v44, %s5039_s30 }
 0x47e   : > { %v2724_v54 = vmul.f32 %v2714_v8, %v5901_v50  ;;  %v6555_v61 = vld [vmem:[#allocation2 + $0x18] sm:$0xff] }
 0x47f   : > { %v2725_v5 = vmul.f32 %v2715_v40, %v5912_v31  ;;  %4760 = vrot.lane.b32.xlu0 %v4759_v17, %s5036_s27  ;;  %v2787_v9 = vcombine.low %v6555_v61, %v6555_v61  ;;  %v6566_v58 = vcombine.high %v6555_v61, %v6555_v61 }
 0x480   : > { %v5024_v0 = vcombine.low %v2724_v54, %v2724_v54 }
 0x481   : > { %v2740_v3 = vcombine.low %v2724_v54, %v2725_v5  ;;  %4780 = vrot.lane.b32.xlu1 %v4769_v6, %s5040_s11  ;;  %v4794_v12 = vpack.i.bf16 %v6566_v58, %v6555_v61  ;;  %v5025_v30 = vcombine.low %v2725_v5, %v2725_v5 }
 0x483   : > { %2750 = vst [vmem:[#allocation2 + $0x24] sm:$0xff] %v2740_v3  ;;  %4765 = vrot.lane.b32.xlu0 %v4754_v47, %s5037_s28  ;;  %v4844_v1 = vpack.i.bf16 %v2740_v3, %v5024_v0  ;;  %v4839_v41 = vpack.i.bf16 %v5025_v30, %v2740_v3 }
 0x485   : > { %4785 = vrot.lane.b32.xlu1 %v4774_v44, %s5041_s12 }
 0x489   : > { %3121 = vrot.lane.b32.xlu1 %v5018_v36, %s5042_s15  ;;  %v4789_v36 = vpack.i.bf16 %v6555_v61, %v2787_v9 }
 0x48a   : > { %v6551_v34 = vld [vmem:[#allocation2 + $0x28] sm:$0xf]  ;;  %v6572_v29 = vld [vmem:[#allocation2 + $0x20] sm:$0xff] }
 0x48b   : > { %2853 = vrot.lane.b32.xlu0 %v6551_v34, %s5036_s27  ;;  %v2788_v24 = vcombine.low %v6572_v29, %v6572_v29  ;;  %v6583_v18 = vcombine.high %v6572_v29, %v6572_v29  ;;  %v2789_v63 = vcombine.low %v6551_v34, %v6551_v34 }
 0x48d   : > { %3125 = vrot.lane.b32.xlu1 %v5020_v4, %s5042_s15  ;;  %v4824_v48 = vpack.i.bf16 %v6572_v29, %v2788_v24  ;;  %v4829_v60 = vpack.i.bf16 %v6583_v18, %v6572_v29 }
 0x48f   : > { %3127 = vrot.lane.b32.xlu0 %v2739_v10, %s5042_s15 }
 0x491   : > { %3131 = vrot.lane.b32.xlu1 %v2740_v3, %s5042_s15 }
 0x493   : > { %4805 = vrot.lane.b32.xlu0 %v4804_v62, %s5038_s29 }
 0x495   : > { %4790 = vrot.lane.b32.xlu1 %v4789_v36, %s5035_s26 }
 0x497   : > { %4810 = vrot.lane.b32.xlu0 %v4809_v51, %s5039_s30 }
 0x499   : > { %4795 = vrot.lane.b32.xlu1 %v4794_v12, %s5036_s27 }
 0x49b   : > { %4815 = vrot.lane.b32.xlu0 %v4804_v62, %s5040_s11 }
 0x49d   : > { %4800 = vrot.lane.b32.xlu1 %v4789_v36, %s5037_s28 }
 0x49f   : > { %4820 = vrot.lane.b32.xlu0 %v4809_v51, %s5041_s12 }
 0x4a1   : > { %4825 = vrot.lane.b32.xlu1 %v4824_v48, %s5035_s26 }
 0x4a3   : > { %2810 = vrot.lane.b32.xlu0 %v2789_v63, %s5035_s26 }
 0x4a5   : > { %4830 = vrot.lane.b32.xlu1 %v4829_v60, %s5036_s27 }
 0x4a7   : > { %2896 = vrot.lane.b32.xlu0 %v2789_v63, %s5037_s28 }
 0x4a9   : > { %4835 = vrot.lane.b32.xlu1 %v4824_v48, %s5037_s28 }
 0x4ab   : > { %4845 = vrot.lane.b32.xlu0 %v4844_v1, %s5039_s30  ;;  %s4093_s30 = smul.u32 80, %s7154_s14 }
 0x4ad   : > { %4840 = vrot.lane.b32.xlu1 %v4839_v41, %s5038_s29 }
 0x4af   : > { %4850 = vrot.lane.b32.xlu0 %v4839_v41, %s5040_s11 }
 0x4b1   : > { %3135 = vrot.lane.b32.xlu1 %v6462_v25, %s5042_s15 }
 0x4b3   : > { %4855 = vrot.lane.b32.xlu0 %v4844_v1, %s5041_s12 }
 0x4b7   : > { %3129 = vrot.lane.b32.xlu0 %v5022_v22, %s5042_s15 }
 0x4bb   : > { %3133 = vrot.lane.b32.xlu0 %v5025_v30, %s5042_s15  ;;  %s7086_s15 = scalar_lea.vmem %s7121_s10, %s4093_s30 }
 0x4bc   : > { %v3116_v23 = vpop.permute.xlu0 %3115  ;;  %v3118_v52 = vpop.permute.xlu1 %3117 }
 0x4bd   : > { %v3137_v38 = vsel %vm853_vm12, %v3116_v23, %v3118_v52 }
 0x4bf   : > { %3330 = vrot.lane.b32.xlu0 %v3116_v23, %s5043_s16 }
 0x4c0   : > { %v6609_v11 = vpop.permute.xlu0 %4685 }
 0x4c1   : > { %v4687_v10 = vunpack.i.l.bf16 %v6609_v11 }
 0x4c3   : > { %3332 = vrot.lane.b32.xlu0 %v3137_v38, %s5043_s16 }
 0x4c4   : > { %v6613_v25 = vpop.permute.xlu0 %4690 }
 0x4c5   : > { %v4692_v13 = vunpack.i.l.bf16 %v6613_v25 }
 0x4c7   : > { %v3169_v46 = vsel %vm864_vm5, %v4687_v10, %v4692_v13 }
 0x4c8   : > { %v6615_v21 = vpop.permute.xlu0 %4695 }
 0x4c9   : > { %v4697_v19 = vunpack.i.l.bf16 %v6615_v21 }
 0x4cc   : > { %v6618_v4 = vpop.permute.xlu0 %4700 }
 0x4cd   : > { %v4702_v6 = vunpack.i.l.bf16 %v6618_v4 }
 0x4cf   : > { %v3180_v59 = vsel %vm864_vm5, %v4697_v19, %v4702_v6  ;;  %v6625_v47 = vpop.permute.xlu1 %4705 }
 0x4d0   : > { %v4859_v32 = vpack.i.bf16 %v3180_v59, %v3169_v46  ;;  %v6627_v53 = vpop.permute.xlu0 %4710  ;;  %v4708_v62 = vunpack.i.h.bf16 %v6625_v47 }
 0x4d1   : > { %v4712_v24 = vunpack.i.l.bf16 %v6627_v53 }
 0x4d2   : > { %4860 = vrot.lane.b32.xlu1 %v4859_v32, %s5043_s16 }
 0x4d3   : > { %v6630_v55 = vpop.permute.xlu1 %4715 }
 0x4d4   : > { %v3120_v8 = vpop.permute.xlu0 %3119  ;;  %v4718_v12 = vunpack.i.h.bf16 %v6630_v55 }
 0x4d5   : > { %v3138_v44 = vsel %vm853_vm12, %v3118_v52, %v3120_v8 }
 0x4d6   : > { %3334 = vrot.lane.b32.xlu1 %v3138_v44, %s5043_s16  ;;  %v4688_v44 = vunpack.i.h.bf16 %v6609_v11 }
 0x4d7   : > { %v6634_v40 = vpop.permute.xlu1 %4725 }
 0x4d8   : > { %v4728_v43 = vunpack.i.h.bf16 %v6634_v40 }
 0x4da   : > { %v2855_v60 = vsel %vm565_vm7, %v4728_v43, %v4712_v24  ;;  %v4698_v43 = vunpack.i.h.bf16 %v6615_v21 }
 0x4db   : > { %v6636_v17 = vpop.permute.xlu1 %4735 }
 0x4dc   : > { %v3051_v11 = vsel %vm765_vm13, %v4697_v19, %v4698_v43 }
 0x4df   : > { %v6638_v54 = vpop.permute.xlu1 %4740 }
 0x4e1   : > { %v6640_v5 = vpop.permute.xlu0 %3123 }
 0x4e3   : > { %v6642_v3 = vpop.permute.xlu1 %4745 }
 0x4e5   : > { %v4721_v22 = vpop.permute.xlu0 %4720 }
 0x4e6   : > { %v4722_v9 = vunpack.i.l.bf16 %v4721_v22  ;;  %v4723_v59 = vunpack.i.h.bf16 %v4721_v22  ;;  %v2949_v22 = vsel %vm661_vm9, %v4687_v10, %v4688_v44  ;;  %v4742_v10 = vunpack.i.l.bf16 %v6638_v54 }
 0x4e7   : > { %v6646_v36 = vpop.permute.xlu1 %4750 }
 0x4e8   : > { %v2812_v48 = vsel %vm521_vm6, %v4708_v62, %v4722_v9  ;;  %v4693_v62 = vunpack.i.h.bf16 %v6613_v25 }
 0x4e9   : > { %v4731_v51 = vpop.permute.xlu0 %4730  ;;  %v3147_v41 = vsel %vm864_vm5, %v6485_v27, %v2812_v48  ;;  %v4703_v27 = vunpack.i.h.bf16 %v6618_v4  ;;  %v7133_v48 = vunpack.i.l.bf16 %v6646_v36  ;;  %v4717_v4 = vunpack.i.l.bf16 %v6630_v55 }
 0x4ea   : > { %v4732_v63 = vunpack.i.l.bf16 %v4731_v51 }
 0x4eb   : > { %v6652_v0 = vpop.permute.xlu1 %4770 }
 0x4ec   : > { %v2898_v30 = vsel %vm609_vm8, %v4718_v12, %v4732_v63  ;;  %v4707_v12 = vunpack.i.l.bf16 %v6625_v47  ;;  %v3094_v47 = vsel %vm809_vm11, %v4702_v6, %v4703_v27 }
 0x4ed   : > { %v6655_v1 = vpop.permute.xlu0 %4755  ;;  %v3158_v23 = vsel %vm864_vm5, %v2855_v60, %v2898_v30  ;;  %v2813_v60 = vsel %vm521_vm6, %v4722_v9, %v4723_v59  ;;  %v4733_v30 = vunpack.i.h.bf16 %v4731_v51  ;;  %v4713_v9 = vunpack.i.h.bf16 %v6627_v53 }
 0x4ee   : > { %v4864_v52 = vpack.i.bf16 %v3158_v23, %v3147_v41  ;;  %v3003_v23 = vsel %vm716_vm10, %v4692_v13, %v4693_v62  ;;  %v2814_v25 = vsel %vm521_vm6, %v4723_v59, %v4707_v12  ;;  %v4737_v51 = vunpack.i.l.bf16 %v6636_v17 }
 0x4ef   : > { %v6660_v38 = vpop.permute.xlu1 %4775  ;;  %v3148_v19 = vsel %vm864_vm5, %v6492_v33, %v2813_v60  ;;  %v3095_v59 = vsel %vm809_vm11, %v4703_v27, %v7133_v48  ;;  %v2900_v55 = vsel %vm609_vm8, %v4733_v30, %v4717_v4  ;;  %v2899_v6 = vsel %vm609_vm8, %v4732_v63, %v4733_v30 }
 0x4f0   : > { %4865 = vrot.lane.b32.xlu0 %v4864_v52, %s5043_s16  ;;  %v3149_v53 = vsel %vm864_vm5, %v6494_v7, %v2814_v25  ;;  %v4757_v35 = vunpack.i.l.bf16 %v6655_v1  ;;  %v2856_v27 = vsel %vm565_vm7, %v4712_v24, %v4713_v9  ;;  %v4738_v48 = vunpack.i.h.bf16 %v6636_v17 }
 0x4f1   : > { %v6663_v46 = vpop.permute.xlu0 %4760  ;;  %v4743_v63 = vunpack.i.h.bf16 %v6638_v54  ;;  %v3181_v7 = vsel %vm864_vm5, %v3051_v11, %v3094_v47  ;;  %v7144_v30 = vunpack.i.l.bf16 %v6634_v40  ;;  %v2950_v25 = vsel %vm661_vm9, %v4688_v44, %v4737_v51 }
 0x4f2   : > { %v7145_v24 = vunpack.i.l.bf16 %v6642_v3  ;;  %v4869_v54 = vpack.i.bf16 %v3149_v53, %v3148_v19  ;;  %v4777_v47 = vunpack.i.l.bf16 %v6660_v38  ;;  %v7146_v44 = vunpack.i.h.bf16 %v6655_v1 }
 0x4f3   : > { %v6665_v32 = vpop.permute.xlu1 %4780  ;;  %v2951_v19 = vsel %vm661_vm9, %v4737_v51, %v4738_v48  ;;  %v4762_v51 = vunpack.i.l.bf16 %v6663_v46 }
 0x4f4   : > { %v3052_v17 = vsel %vm765_vm13, %v4698_v43, %v7145_v24 }
 0x4f5   : > { %v6680_v21 = vpop.permute.xlu0 %4765  ;;  %v3182_v11 = vsel %vm864_vm5, %v3052_v17, %v3095_v59  ;;  %v4748_v17 = vunpack.i.h.bf16 %v6642_v3 }
 0x4f6   : > { %v4768_v59 = vunpack.i.h.bf16 %v6680_v21  ;;  %v4884_v53 = vpack.i.bf16 %v3182_v11, %v3181_v7  ;;  %v3006_v7 = vsel %vm716_vm10, %v4743_v63, %v4777_v47  ;;  %v4773_v11 = vunpack.i.h.bf16 %v6652_v0 }
 0x4f7   : > { %v6674_v41 = vpop.permute.xlu1 %4785 }
 0x4fb   : > { %v3122_v52 = vpop.permute.xlu1 %3121 }
 0x4fc   : > { %v3139_v13 = vsel %vm853_vm12, %v3120_v8, %v3122_v52  ;;  %v3140_v33 = vsel %vm853_vm12, %v3122_v52, %v6640_v5  ;;  %v2857_v8 = vsel %vm565_vm7, %v4713_v9, %v7144_v30  ;;  %v3004_v52 = vsel %vm716_vm10, %v4693_v62, %v4742_v10 }
 0x4fd   : > { %v6703_v60 = vpop.permute.xlu0 %2853  ;;  %3336 = vrot.lane.b32.xlu1 %v3139_v13, %s5043_s16  ;;  %3338 = vrot.lane.b32.xlu0 %v3140_v33, %s5043_s16  ;;  %v3159_v13 = vsel %vm864_vm5, %v2856_v27, %v2899_v6  ;;  %v3160_v33 = vsel %vm864_vm5, %v2857_v8, %v2900_v55  ;;  %v2815_v9 = vsel %vm521_vm6, %v4707_v12, %v4757_v35  ;;  %v4767_v6 = vunpack.i.l.bf16 %v6680_v21 }
 0x4fe   : > { %v2816_v62 = vsel %vm521_vm6, %v4757_v35, %v7146_v44  ;;  %v3005_v55 = vsel %vm716_vm10, %v4742_v10, %v4743_v63  ;;  %v4772_v35 = vunpack.i.l.bf16 %v6652_v0  ;;  %v4874_v12 = vpack.i.bf16 %v3160_v33, %v3159_v13 }
 0x4ff   : > { %v6719_v31 = vpop.permute.xlu1 %3125  ;;  %v4763_v27 = vunpack.i.h.bf16 %v6663_v46  ;;  %v3150_v10 = vsel %vm864_vm5, %v6503_v37, %v2815_v9  ;;  %v3151_v24 = vsel %vm864_vm5, %v6527_v45, %v2816_v62  ;;  %v4787_v13 = vunpack.i.l.bf16 %v6674_v41 }
 0x500   : > { %v3141_v43 = vsel %vm853_vm12, %v6640_v5, %v6719_v31  ;;  %v3171_v5 = vsel %vm864_vm5, %v2950_v25, %v3004_v52  ;;  %v3170_v25 = vsel %vm864_vm5, %v2949_v22, %v3003_v23  ;;  %v3172_v52 = vsel %vm864_vm5, %v2951_v19, %v3005_v55 }
 0x501   : > { %v6732_v30 = vpop.permute.xlu0 %3127  ;;  %3340 = vrot.lane.b32.xlu1 %v3141_v43, %s5043_s16  ;;  %4870 = vrot.lane.b32.xlu0 %v4869_v54, %s5043_s16  ;;  %v2901_v33 = vsel %vm609_vm8, %v4717_v4, %v4767_v6  ;;  %v2902_v37 = vsel %vm609_vm8, %v4767_v6, %v4768_v59  ;;  %v4879_v45 = vpack.i.bf16 %v3171_v5, %v3170_v25  ;;  %v4753_v63 = vunpack.i.h.bf16 %v6646_v36 }
 0x502   : > { %v2952_v22 = vsel %vm661_vm9, %v4738_v48, %v4772_v35  ;;  %v4889_v23 = vpack.i.bf16 %v3151_v24, %v3150_v10  ;;  %v4782_v9 = vunpack.i.l.bf16 %v6665_v32  ;;  %v7147_v4 = vunpack.i.l.bf16 %v6634_v40 }
 0x503   : > { %v6744_v8 = vpop.permute.xlu1 %3131  ;;  %v2859_v62 = vsel %vm565_vm7, %v4762_v51, %v4763_v27  ;;  %v3173_v19 = vsel %vm864_vm5, %v2952_v22, %v3006_v7  ;;  %v3097_v5 = vsel %vm809_vm11, %v4753_v63, %v4787_v13  ;;  %v7148_v10 = vunpack.i.l.bf16 %v6642_v3 }
 0x504   : > { %v2858_v44 = vsel %vm565_vm7, %v7147_v4, %v4762_v51  ;;  %v3162_v40 = vsel %vm864_vm5, %v2859_v62, %v2902_v37  ;;  %v7149_v7 = vunpack.i.l.bf16 %v6646_v36  ;;  %v4899_v37 = vpack.i.bf16 %v3173_v19, %v3172_v52 }
 0x505   : > { %v6754_v54 = vpop.permute.xlu0 %4805  ;;  %4875 = vrot.lane.b32.xlu1 %v4874_v12, %s5043_s16  ;;  %4885 = vrot.lane.b32.xlu0 %v4884_v53, %s5043_s16  ;;  %v3161_v6 = vsel %vm864_vm5, %v2858_v44, %v2901_v33  ;;  %v4778_v12 = vunpack.i.h.bf16 %v6660_v38  ;;  %v4788_v53 = vunpack.i.h.bf16 %v6674_v41  ;;  %v3053_v24 = vsel %vm765_vm13, %v7148_v10, %v4748_v17 }
 0x506   : > { %v3096_v25 = vsel %vm809_vm11, %v7149_v7, %v4753_v63  ;;  %v4807_v33 = vunpack.i.l.bf16 %v6754_v54  ;;  %v3054_v41 = vsel %vm765_vm13, %v4748_v17, %v4782_v9  ;;  %v7150_v22 = vunpack.i.h.bf16 %v6655_v1 }
 0x507   : > { %v6775_v43 = vpop.permute.xlu1 %4790  ;;  %v4894_v4 = vpack.i.bf16 %v3162_v40, %v3161_v6  ;;  %v2953_v36 = vsel %vm661_vm9, %v4772_v35, %v4773_v11  ;;  %v4783_v63 = vunpack.i.h.bf16 %v6665_v32  ;;  %v3184_v1 = vsel %vm864_vm5, %v3054_v41, %v3097_v5 }
 0x508   : > { %v4793_v55 = vunpack.i.h.bf16 %v6775_v43  ;;  %v4792_v0 = vunpack.i.l.bf16 %v6775_v43  ;;  %v3007_v44 = vsel %vm716_vm10, %v4777_v47, %v4778_v12  ;;  %v3098_v62 = vsel %vm809_vm11, %v4787_v13, %v4788_v53 }
 0x509   : > { %v6780_v48 = vpop.permute.xlu0 %4810  ;;  %4880 = vrot.lane.b32.xlu1 %v4879_v45, %s5043_s16  ;;  %4890 = vrot.lane.b32.xlu0 %v4889_v23, %s5043_s16  ;;  %v3183_v32 = vsel %vm864_vm5, %v3053_v24, %v3096_v25  ;;  %v2954_v35 = vsel %vm661_vm9, %v4773_v11, %v4807_v33  ;;  %v3055_v5 = vsel %vm765_vm13, %v4782_v9, %v4783_v63 }
 0x50a   : > { %v4812_v51 = vunpack.i.l.bf16 %v6780_v48  ;;  %v2817_v45 = vsel %vm521_vm6, %v7150_v22, %v4792_v0  ;;  %v2818_v23 = vsel %vm521_vm6, %v4792_v0, %v4793_v55  ;;  %v4904_v40 = vpack.i.bf16 %v3184_v1, %v3183_v32 }
 0x50b   : > { %v6804_v3 = vpop.permute.xlu1 %4795  ;;  %v3152_v0 = vsel %vm864_vm5, %v6535_v49, %v2817_v45  ;;  %v3153_v38 = vsel %vm864_vm5, %v6555_v61, %v2818_v23  ;;  %v3142_v11 = vsel %vm853_vm12, %v6719_v31, %v6732_v30  ;;  %v3174_v25 = vsel %vm864_vm5, %v2953_v36, %v3007_v44 }
 0x50c   : > { %v3008_v52 = vsel %vm716_vm10, %v4778_v12, %v4812_v51  ;;  %v4797_v19 = vunpack.i.l.bf16 %v6804_v3  ;;  %v4798_v47 = vunpack.i.h.bf16 %v6804_v3  ;;  %v4909_v7 = vpack.i.bf16 %v3153_v38, %v3152_v0 }
 0x50d   : > { %v6811_v17 = vpop.permute.xlu0 %4815  ;;  %4900 = vrot.lane.b32.xlu1 %v4899_v37, %s5043_s16  ;;  %4895 = vrot.lane.b32.xlu0 %v4894_v4, %s5043_s16  ;;  %v3175_v12 = vsel %vm864_vm5, %v2954_v35, %v3008_v52  ;;  %v3185_v9 = vsel %vm864_vm5, %v3055_v5, %v3098_v62  ;;  %v4808_v32 = vunpack.i.h.bf16 %v6754_v54  ;;  %v4813_v35 = vunpack.i.h.bf16 %v6780_v48 }
 0x50e   : > { %v4817_v6 = vunpack.i.l.bf16 %v6811_v17  ;;  %v2860_v31 = vsel %vm565_vm7, %v4763_v27, %v4797_v19  ;;  %v4919_v22 = vpack.i.bf16 %v3175_v12, %v3174_v25  ;;  %v2861_v45 = vsel %vm565_vm7, %v4797_v19, %v4798_v47 }
 0x50f   : > { %v6830_v13 = vpop.permute.xlu1 %4800  ;;  %v2955_v5 = vsel %vm661_vm9, %v4807_v33, %v4808_v32 }
 0x510   : > { %v4803_v49 = vunpack.i.h.bf16 %v6830_v13  ;;  %v4802_v10 = vunpack.i.l.bf16 %v6830_v13  ;;  %v3056_v23 = vsel %vm765_vm13, %v4783_v63, %v4817_v6 }
 0x511   : > { %v6840_v61 = vpop.permute.xlu0 %4820  ;;  %4905 = vrot.lane.b32.xlu1 %v4904_v40, %s5043_s16  ;;  %3342 = vrot.lane.b32.xlu0 %v3142_v11, %s5043_s16 }
 0x512   : > { %v4822_v24 = vunpack.i.l.bf16 %v6840_v61  ;;  %v2903_v37 = vsel %vm609_vm8, %v4768_v59, %v4802_v10  ;;  %v2904_v41 = vsel %vm609_vm8, %v4802_v10, %v4803_v49 }
 0x513   : > { %v4826_v4 = vpop.permute.xlu1 %4825  ;;  %v3163_v21 = vsel %vm864_vm5, %v2860_v31, %v2903_v37  ;;  %v3164_v52 = vsel %vm864_vm5, %v2861_v45, %v2904_v41  ;;  %v4823_v31 = vunpack.i.h.bf16 %v6840_v61 }
 0x514   : > { %v3099_v46 = vsel %vm809_vm11, %v4788_v53, %v4822_v24  ;;  %v4828_v27 = vunpack.i.h.bf16 %v4826_v4  ;;  %v4827_v59 = vunpack.i.l.bf16 %v4826_v4  ;;  %v4914_v0 = vpack.i.bf16 %v3164_v52, %v3163_v21 }
 0x515   : > { %v2811_v36 = vpop.permute.xlu0 %2810  ;;  %v3186_v1 = vsel %vm864_vm5, %v3056_v23, %v3099_v46  ;;  %4910 = vrot.lane.b32.xlu1 %v4909_v7, %s5043_s16  ;;  %4920 = vrot.lane.b32.xlu0 %v4919_v22, %s5043_s16  ;;  %v4818_v7 = vunpack.i.h.bf16 %v6811_v17 }
 0x516   : > { %v4924_v44 = vpack.i.bf16 %v3186_v1, %v3185_v9  ;;  %v2819_v63 = vsel %vm521_vm6, %v4793_v55, %v4827_v59  ;;  %v2820_v53 = vsel %vm521_vm6, %v4827_v59, %v4828_v27  ;;  %v2821_v62 = vsel %vm521_vm6, %v4828_v27, %v2811_v36 }
 0x517   : > { %v4831_v19 = vpop.permute.xlu1 %4830  ;;  %v3156_v38 = vsel %vm864_vm5, %v6583_v18, %v2821_v62  ;;  %v3157_v13 = vsel %vm864_vm5, %v6551_v34, %v2811_v36  ;;  %v3154_v43 = vsel %vm864_vm5, %v6566_v58, %v2819_v63  ;;  %v3155_v55 = vsel %vm864_vm5, %v6572_v29, %v2820_v53 }
 0x518   : > { %v4833_v12 = vunpack.i.h.bf16 %v4831_v19  ;;  %v4832_v18 = vunpack.i.l.bf16 %v4831_v19  ;;  %v4934_v11 = vpack.i.bf16 %v3157_v13, %v3156_v38  ;;  %v4929_v34 = vpack.i.bf16 %v3155_v55, %v3154_v43 }
 0x519   : > { %v2897_v40 = vpop.permute.xlu0 %2896  ;;  %4915 = vrot.lane.b32.xlu1 %v4914_v0, %s5043_s16  ;;  %4925 = vrot.lane.b32.xlu0 %v4924_v44, %s5043_s16  ;;  %v3009_v58 = vsel %vm716_vm10, %v4812_v51, %v4813_v35 }
 0x51a   : > { %v3168_v54 = vsel %vm864_vm5, %v6703_v60, %v2897_v40  ;;  %v2864_v41 = vsel %vm565_vm7, %v4833_v12, %v6703_v60  ;;  %v2862_v45 = vsel %vm565_vm7, %v4798_v47, %v4832_v18  ;;  %v2863_v23 = vsel %vm565_vm7, %v4832_v18, %v4833_v12 }
 0x51b   : > { %v4836_v10 = vpop.permute.xlu1 %4835  ;;  %v3176_v19 = vsel %vm864_vm5, %v2955_v5, %v3009_v58  ;;  %v3057_v12 = vsel %vm765_vm13, %v4817_v6, %v4818_v7 }
 0x51c   : > { %v4838_v29 = vunpack.i.h.bf16 %v4836_v10  ;;  %v4837_v25 = vunpack.i.l.bf16 %v4836_v10 }
 0x51d   : > { %v4846_v9 = vpop.permute.xlu0 %4845  ;;  %4930 = vrot.lane.b32.xlu1 %v4929_v34, %s5043_s16  ;;  %4935 = vrot.lane.b32.xlu0 %v4934_v11, %s5043_s16 }
 0x51e   : > { %v4848_v33 = vunpack.i.h.bf16 %v4846_v9  ;;  %v4847_v37 = vunpack.i.l.bf16 %v4846_v9  ;;  %v2905_v48 = vsel %vm609_vm8, %v4803_v49, %v4837_v25  ;;  %v2906_v51 = vsel %vm609_vm8, %v4837_v25, %v4838_v29 }
 0x51f   : > { %v2907_v22 = vsel %vm609_vm8, %v4838_v29, %v2897_v40  ;;  %v4841_v46 = vpop.permute.xlu1 %4840  ;;  %v3165_v36 = vsel %vm864_vm5, %v2862_v45, %v2905_v48  ;;  %v3166_v3 = vsel %vm864_vm5, %v2863_v23, %v2906_v51 }
 0x520   : > { %v3167_v4 = vsel %vm864_vm5, %v2864_v41, %v2907_v22  ;;  %v3012_v21 = vsel %vm716_vm10, %v4848_v33, %v6595_v2  ;;  %v4843_v27 = vunpack.i.h.bf16 %v4841_v46  ;;  %v4842_v59 = vunpack.i.l.bf16 %v4841_v46 }
 0x521   : > { %v4944_v49 = vpack.i.bf16 %v3168_v54, %v3167_v4  ;;  %v4851_v60 = vpop.permute.xlu0 %4850  ;;  %v3010_v52 = vsel %vm716_vm10, %v4813_v35, %v4847_v37  ;;  %v4939_v53 = vpack.i.bf16 %v3166_v3, %v3165_v36  ;;  %v3011_v62 = vsel %vm716_vm10, %v4847_v37, %v4848_v33  ;;  %v3192_v37 = vld [vmem:[%s7120_s9] sm:$0x3f] }
 0x522   : > { %v4853_v1 = vunpack.i.h.bf16 %v4851_v60  ;;  %v4852_v47 = vunpack.i.l.bf16 %v4851_v60  ;;  %v2956_v44 = vsel %vm661_vm9, %v4808_v32, %v4842_v59  ;;  %v2957_v63 = vsel %vm661_vm9, %v4842_v59, %v4843_v27 }
 0x523   : > { %4945 = vrot.lane.b32.xlu0 %v4944_v49, %s5043_s16  ;;  %v3179_v2 = vsel %vm864_vm5, %v4843_v27, %v3012_v21  ;;  %v3177_v0 = vsel %vm864_vm5, %v2956_v44, %v3010_v52  ;;  %4940 = vrot.lane.b32.xlu1 %v4939_v53, %s5043_s16  ;;  %v3178_v38 = vsel %vm864_vm5, %v2957_v63, %v3011_v62  ;;  %v3136_v9 = vpop.permute.xlu1 %3135 }
 0x524   : > { %v4949_v35 = vpack.i.bf16 %v3177_v0, %v3176_v19  ;;  %v3100_v32 = vsel %vm809_vm11, %v4822_v24, %v4823_v31  ;;  %v4954_v40 = vpack.i.bf16 %v3179_v2, %v3178_v38  ;;  %v3060_v5 = vsel %vm765_vm13, %v4853_v1, %v6602_v57 }
 0x525   : > { %v4856_v13 = vpop.permute.xlu0 %4855  ;;  %v3058_v18 = vsel %vm765_vm13, %v4818_v7, %v4852_v47  ;;  %v3059_v11 = vsel %vm765_vm13, %v4852_v47, %v4853_v1  ;;  %v3187_v17 = vsel %vm864_vm5, %v3057_v12, %v3100_v32 }
 0x526   : > { %v4858_v43 = vunpack.i.h.bf16 %v4856_v13  ;;  %v4857_v55 = vunpack.i.l.bf16 %v4856_v13 }
 0x527   : > { %4955 = vrot.lane.b32.xlu0 %v4954_v40, %s5043_s16  ;;  %4950 = vrot.lane.b32.xlu1 %v4949_v35, %s5043_s16 }
 0x528   : > { %v3103_v61 = vsel %vm809_vm11, %v4858_v43, %v6605_v42  ;;  %v3101_v24 = vsel %vm809_vm11, %v4823_v31, %v4857_v55  ;;  %v3102_v10 = vsel %vm809_vm11, %v4857_v55, %v4858_v43 }
 0x529   : > { %v3188_v6 = vsel %vm864_vm5, %v3058_v18, %v3101_v24  ;;  %v3189_v57 = vsel %vm864_vm5, %v3059_v11, %v3102_v10  ;;  %v3190_v34 = vsel %vm864_vm5, %v3060_v5, %v3103_v61  ;;  %v3130_v58 = vpop.permute.xlu0 %3129 }
 0x52a   : > { %v4959_v7 = vpack.i.bf16 %v3188_v6, %v3187_v17  ;;  %v4964_v29 = vpack.i.bf16 %v3190_v34, %v3189_v57  ;;  %v3144_v42 = vsel %vm853_vm12, %v3130_v58, %v6744_v8  ;;  %v3143_v25 = vsel %vm853_vm12, %v6732_v30, %v3130_v58 }
 0x52c   : > { %4965 = vrot.lane.b32.xlu0 %v4964_v29, %s5043_s16  ;;  %4960 = vrot.lane.b32.xlu1 %v4959_v7, %s5043_s16 }
 0x52d   : > { %v3134_v31 = vpop.permute.xlu0 %3133 }
 0x52e   : > { %v3146_v54 = vsel %vm853_vm12, %v3134_v31, %v3136_v9  ;;  %v3145_v33 = vsel %vm853_vm12, %v6744_v8, %v3134_v31 }
 0x530   : > { %3346 = vrot.lane.b32.xlu0 %v3144_v42, %s5043_s16  ;;  %3344 = vrot.lane.b32.xlu1 %v3143_v25, %s5043_s16 }
 0x531   : > { %v6957_v30 = vpop.permute.xlu0 %3330 }
 0x534   : > { %3350 = vrot.lane.b32.xlu0 %v3146_v54, %s5043_s16  ;;  %3348 = vrot.lane.b32.xlu1 %v3145_v33, %s5043_s16 }
 0x535   : > { %v3333_v51 = vpop.permute.xlu0 %3332 }
 0x538   : > { %3195 = vperm.xlu1 %4398, %v3192_v37  }
 0x544   : > { %v4861_v48 = vpop.permute.xlu1 %4860 }
 0x545   : > { %v4863_v2 = vunpack.i.h.bf16 %v4861_v48  ;;  %v4862_v38 = vunpack.i.l.bf16 %v4861_v48 }
 0x548   : > { %v6959_v41 = vpop.permute.xlu1 %3334 }
 0x549   : > { %v3393_v57 = vsel %vm1070_vm14, %v3333_v51, %v6959_v41 }
 0x562   : > { %v4866_v22 = vpop.permute.xlu0 %4865 }
 0x563   : > { %v4867_v49 = vunpack.i.l.bf16 %v4866_v22  ;;  %v4868_v36 = vunpack.i.h.bf16 %v4866_v22  ;;  %v6995_v22 = vld [vmem:[%s7119_s8] sm:$0x3f] }
 0x56f   : > { %v6961_v45 = vpop.permute.xlu1 %3336  ;;  %v6963_v23 = vpop.permute.xlu0 %3338 }
 0x573   : > { %v6965_v8 = vpop.permute.xlu1 %3340  ;;  %v4871_v4 = vpop.permute.xlu0 %4870 }
 0x574   : > { %v4872_v46 = vunpack.i.l.bf16 %v4871_v4  ;;  %v4873_v21 = vunpack.i.h.bf16 %v4871_v4  ;;  %v3392_v4 = vsel %vm1070_vm14, %v6957_v30, %v3333_v51 }
 0x576   : > { %v3352_v3 = vsel %vm1070_vm14, %v4867_v49, %v4872_v46  ;;  %v3353_v63 = vsel %vm1070_vm14, %v4872_v46, %v4873_v21 }
 0x577   : > { %v4876_v27 = vpop.permute.xlu1 %4875  ;;  %v4886_v59 = vpop.permute.xlu0 %4885 }
 0x578   : > { %v4878_v60 = vunpack.i.h.bf16 %v4876_v27  ;;  %v4877_v52 = vunpack.i.l.bf16 %v4876_v27  ;;  %v4887_v1 = vunpack.i.l.bf16 %v4886_v59  ;;  %v4888_v44 = vunpack.i.h.bf16 %v4886_v59 }
 0x57a   : > { %v3362_v47 = vsel %vm1070_vm14, %v4868_v36, %v4877_v52  ;;  %v3363_v53 = vsel %vm1070_vm14, %v4877_v52, %v4878_v60  ;;  %v3382_v40 = vsel %vm1070_vm14, %v4863_v2, %v4887_v1  ;;  %v3383_v18 = vsel %vm1070_vm14, %v4887_v1, %v4888_v44 }
 0x57b   : > { %v4054_v62 = vpack.c.bf16 %v3362_v47, %v3352_v3  ;;  %v4881_v19 = vpop.permute.xlu1 %4880  ;;  %v6971_v0 = vpop.permute.xlu0 %4890  ;;  %v4052_v35 = vpack.c.bf16 %v3363_v53, %v3353_v63  ;;  %v3395_v52 = vsel %vm1070_vm14, %v6961_v45, %v6963_v23 }
 0x57c   : > { %v4883_v13 = vunpack.i.h.bf16 %v4881_v19  ;;  %v4882_v32 = vunpack.i.l.bf16 %v4881_v19  ;;  %v4892_v43 = vunpack.i.l.bf16 %v6971_v0  ;;  %v4893_v12 = vunpack.i.h.bf16 %v6971_v0 }
 0x57d   : > { %4053 = vmatprep.subr.bf16.mxu0 %v4052_v35  ;;  %v3394_v0 = vsel %vm1070_vm14, %v6959_v41, %v6961_v45 }
 0x57e   : > { %v3372_v55 = vsel %vm1070_vm14, %v4862_v38, %v4882_v32  ;;  %4055 = vmatpush1.bf16.msra.mxu0 %v4054_v62  ;;  %v3373_v5 = vsel %vm1070_vm14, %v4882_v32, %v4883_v13  ;;  %v3354_v34 = vsel %vm1070_vm14, %v4873_v21, %v4892_v43  ;;  %v3355_v42 = vsel %vm1070_vm14, %v4892_v43, %v4893_v12 }
 0x57f   : > { %v4058_v11 = vpack.c.bf16 %v3382_v40, %v3372_v55  ;;  %v6979_v61 = vpop.permute.xlu1 %4900  ;;  %v4896_v24 = vpop.permute.xlu0 %4895  ;;  %v4056_v10 = vpack.c.bf16 %v3383_v18, %v3373_v5 }
 0x580   : > { %v4898_v17 = vunpack.i.h.bf16 %v4896_v24  ;;  %v4897_v6 = vunpack.i.l.bf16 %v4896_v24  ;;  %v4902_v58 = vunpack.i.l.bf16 %v6979_v61  ;;  %v4903_v7 = vunpack.i.h.bf16 %v6979_v61 }
 0x581   : > { %4057 = vmatprep.subr.bf16.mxu0 %v4056_v10 }
 0x582   : > { %v3364_v29 = vsel %vm1070_vm14, %v4878_v60, %v4897_v6  ;;  %4059 = vmatpush1.bf16.msra.mxu0 %v4058_v11  ;;  %v3365_v25 = vsel %vm1070_vm14, %v4897_v6, %v4898_v17  ;;  %v3374_v46 = vsel %vm1070_vm14, %v4883_v13, %v4902_v58  ;;  %v3375_v49 = vsel %vm1070_vm14, %v4902_v58, %v4903_v7 }
 0x583   : > { %v4062_v9 = vpack.c.bf16 %v3364_v29, %v3354_v34  ;;  %v4906_v31 = vpop.permute.xlu1 %4905  ;;  %v6989_v54 = vpop.permute.xlu0 %3342  ;;  %3955 = vmatprep.subr.msk.mxu0 %vm864_vm5, %v3393_v57  ;;  %v4060_v33 = vpack.c.bf16 %v3365_v25, %v3355_v42 }
 0x584   : > { %v4908_v37 = vunpack.i.h.bf16 %v4906_v31  ;;  %v4907_v48 = vunpack.i.l.bf16 %v4906_v31  ;;  %v3397_v29 = vsel %vm1070_vm14, %v6965_v8, %v6989_v54 }
 0x585   : > { %4061 = vmatprep.subr.bf16.mxu1 %v4060_v33  ;;  %v3396_v33 = vsel %vm1070_vm14, %v6963_v23, %v6965_v8 }
 0x586   : > { %v3384_v21 = vsel %vm1070_vm14, %v4888_v44, %v4907_v48  ;;  %3956 = vmatpush1.msk.msra.mxu0 %vm864_vm5, %v3392_v4  ;;  %4063 = vmatpush1.bf16.msra.mxu1 %v4062_v9  ;;  %v3385_v27 = vsel %vm1070_vm14, %v4907_v48, %v4908_v37 }
 0x587   : > { %v4066_v59 = vpack.c.bf16 %v3384_v21, %v3374_v46  ;;  %v4911_v36 = vpop.permute.xlu1 %4910  ;;  %v7004_v60 = vpop.permute.xlu0 %4920  ;;  %3957 = vmatmul.mubr.msk.f32.vlgmr.msra.gmra.mrb[10].mxu0 %vm1161_vm15, %v6995_v22  ;;  %v4064_v30 = vpack.c.bf16 %v3385_v27, %v3375_v49 }
 0x588   : > { %3671 = vmatprep.mubr.f32.mxu0 %v7135_v39  ;;  %v4912_v51 = vunpack.i.l.bf16 %v4911_v36  ;;  %v4913_v3 = vunpack.i.h.bf16 %v4911_v36  ;;  %v4923_v1 = vunpack.i.h.bf16 %v7004_v60  ;;  %v4922_v47 = vunpack.i.l.bf16 %v7004_v60 }
 0x589   : > { %4065 = vmatprep.subr.bf16.mxu1 %v4064_v30 }
 0x58a   : > { %4067 = vmatpush1.bf16.msra.mxu1 %v4066_v59  ;;  %v3356_v35 = vsel %vm1070_vm14, %v4893_v12, %v4912_v51  ;;  %v3357_v13 = vsel %vm1070_vm14, %v4912_v51, %v4913_v3  ;;  %v3377_v12 = vsel %vm1070_vm14, %v4922_v47, %v4923_v1  ;;  %v3376_v11 = vsel %vm1070_vm14, %v4903_v7, %v4922_v47 }
 0x58b   : > { %v4916_v44 = vpop.permute.xlu1 %4915  ;;  %3958 = vmatprep.subr.msk.mxu1 %vm864_vm5, %v3395_v52  ;;  %v7015_v63 = vpop.permute.xlu0 %4925 }
 0x58c   : > { %v4918_v53 = vunpack.i.h.bf16 %v4916_v44  ;;  %v4917_v2 = vunpack.i.l.bf16 %v4916_v44  ;;  %v4928_v62 = vunpack.i.h.bf16 %v7015_v63  ;;  %v4927_v19 = vunpack.i.l.bf16 %v7015_v63 }
 0x58e   : > { %v3366_v38 = vsel %vm1070_vm14, %v4898_v17, %v4917_v2  ;;  %3959 = vmatpush1.msk.msra.mxu1 %vm864_vm5, %v3394_v0  ;;  %v3367_v32 = vsel %vm1070_vm14, %v4917_v2, %v4918_v53  ;;  %v3387_v40 = vsel %vm1070_vm14, %v4927_v19, %v4928_v62  ;;  %v3386_v5 = vsel %vm1070_vm14, %v4908_v37, %v4927_v19 }
 0x58f   : > { %v4070_v43 = vpack.c.bf16 %v3366_v38, %v3356_v35  ;;  %3960 = vmatmul.mubr.msk.f32.vlgmr.msra.gmra.mrb[10].mxu1 %vm1161_vm15, %v6995_v22  ;;  %v4936_v55 = vpop.permute.xlu0 %4935  ;;  %v4068_v41 = vpack.c.bf16 %v3367_v32, %v3357_v13  ;;  %v4931_v45 = vpop.permute.xlu1 %4930  ;;  %v4072_v18 = vpack.c.bf16 %v3387_v40, %v3377_v12  ;;  %v4074_v10 = vpack.c.bf16 %v3386_v5, %v3376_v11 }
 0x590   : > { %3742 = vmatprep.mubr.f32.mxu1 %v7135_v39  ;;  %v4938_v61 = vunpack.i.h.bf16 %v4936_v55  ;;  %v4937_v24 = vunpack.i.l.bf16 %v4936_v55  ;;  %v4932_v17 = vunpack.i.l.bf16 %v4931_v45  ;;  %v4933_v57 = vunpack.i.h.bf16 %v4931_v45 }
 0x591   : > { %4069 = vmatprep.subr.bf16.mxu0 %v4068_v41 }
 0x592   : > { %4071 = vmatpush1.bf16.msra.mxu0 %v4070_v43  ;;  %v3361_v7 = vsel %vm1070_vm14, %v4937_v24, %v4938_v61  ;;  %v3358_v37 = vsel %vm1070_vm14, %v4913_v3, %v4932_v17  ;;  %v3360_v4 = vsel %vm1070_vm14, %v4933_v57, %v4937_v24  ;;  %v3359_v51 = vsel %vm1070_vm14, %v4932_v17, %v4933_v57 }
 0x593   : > { %4073 = vmatprep.subr.bf16.mxu0 %v4072_v18 }
 0x595   : > { %v4946_v6 = vpop.permute.xlu0 %4945  ;;  %v4941_v42 = vpop.permute.xlu1 %4940 }
 0x596   : > { %v4948_v34 = vunpack.i.h.bf16 %v4946_v6  ;;  %v4947_v58 = vunpack.i.l.bf16 %v4946_v6  ;;  %4075 = vmatpush1.bf16.msra.mxu0 %v4074_v10  ;;  %v4943_v25 = vunpack.i.h.bf16 %v4941_v42  ;;  %v4942_v9 = vunpack.i.l.bf16 %v4941_v42 }
 0x597   : > { %3961 = vmatprep.subr.msk.mxu0 %vm864_vm5, %v3397_v29 }
 0x598   : > { %v3371_v31 = vsel %vm1070_vm14, %v4947_v58, %v4948_v34  ;;  %v3368_v46 = vsel %vm1070_vm14, %v4918_v53, %v4942_v9  ;;  %v3370_v21 = vsel %vm1070_vm14, %v4943_v25, %v4947_v58  ;;  %v3369_v27 = vsel %vm1070_vm14, %v4942_v9, %v4943_v25 }
 0x599   : > { %v4084_v48 = vpack.c.bf16 %v3371_v31, %v3361_v7  ;;  %v4956_v49 = vpop.permute.xlu0 %4955  ;;  %v4078_v59 = vpack.c.bf16 %v3368_v46, %v3358_v37  ;;  %v4086_v36 = vpack.c.bf16 %v3370_v21, %v3360_v4  ;;  %v4951_v30 = vpop.permute.xlu1 %4950  ;;  %v4076_v52 = vpack.c.bf16 %v3369_v27, %v3359_v51 }
 0x59a   : > { %3962 = vmatpush1.msk.msra.mxu0 %vm864_vm5, %v3396_v33  ;;  %v4958_v23 = vunpack.i.h.bf16 %v4956_v49  ;;  %v4957_v8 = vunpack.i.l.bf16 %v4956_v49  ;;  %v4953_v3 = vunpack.i.h.bf16 %v4951_v30  ;;  %v4952_v47 = vunpack.i.l.bf16 %v4951_v30 }
 0x59b   : > { %3963 = vmatmul.mubr.msk.f32.vlgmr.msra.gmra.mrb[12].mxu0 %vm1161_vm15, %v6995_v22  ;;  %4085 = vmatprep.subr.bf16.mxu0 %v4084_v48 }
 0x59c   : > { %4087 = vmatpush1.bf16.msra.mxu0 %v4086_v36  ;;  %3813 = vmatprep.mubr.f32.mxu0 %v7135_v39  ;;  %v3381_v38 = vsel %vm1070_vm14, %v4957_v8, %v4958_v23  ;;  %v3378_v13 = vsel %vm1070_vm14, %v4923_v1, %v4952_v47  ;;  %v3380_v32 = vsel %vm1070_vm14, %v4953_v3, %v4957_v8 }
 0x59d   : > { %4077 = vmatprep.subr.bf16.mxu1 %v4076_v52  ;;  %v3379_v40 = vsel %vm1070_vm14, %v4952_v47, %v4953_v3 }
 0x59e   : > { %v4966_v44 = vpop.permute.xlu0 %4965  ;;  %4079 = vmatpush1.bf16.msra.mxu1 %v4078_v59  ;;  %v4961_v53 = vpop.permute.xlu1 %4960 }
 0x59f   : > { %v4968_v2 = vunpack.i.h.bf16 %v4966_v44  ;;  %v4967_v19 = vunpack.i.l.bf16 %v4966_v44  ;;  %v4963_v0 = vunpack.i.h.bf16 %v4961_v53  ;;  %v4962_v35 = vunpack.i.l.bf16 %v4961_v53 }
 0x5a1   : > { %v3391_v39 = vsel %vm1070_vm14, %v4967_v19, %v4968_v2  ;;  %v3388_v43 = vsel %vm1070_vm14, %v4928_v62, %v4962_v35  ;;  %v3390_v55 = vsel %vm1070_vm14, %v4963_v0, %v4967_v19  ;;  %v3389_v45 = vsel %vm1070_vm14, %v4962_v35, %v4963_v0  ;;  %v7151_v19 = vld [vmem:[#allocation3_spill] sm:$0xff]  ;;  %v7152_v35 = vld [vmem:[#allocation4_spill] sm:$0xff] }
 0x5a2   : > { %v3347_v41 = vpop.permute.xlu0 %3346  ;;  %v4088_v12 = vpack.c.bf16 %v3391_v39, %v3381_v38  ;;  %v4082_v5 = vpack.c.bf16 %v3388_v43, %v3378_v13  ;;  %v4090_v60 = vpack.c.bf16 %v3390_v55, %v3380_v32  ;;  %v3345_v18 = vpop.permute.xlu1 %3344  ;;  %v4080_v1 = vpack.c.bf16 %v3389_v45, %v3379_v40 }
 0x5a3   : > { %v3399_v11 = vsel %vm1070_vm14, %v3345_v18, %v3347_v41  ;;  %v3398_v10 = vsel %vm1070_vm14, %v6989_v54, %v3345_v18 }
 0x5a4   : > { %4089 = vmatprep.subr.bf16.mxu0 %v4088_v12  ;;  %4081 = vmatprep.subr.bf16.mxu1 %v4080_v1 }
 0x5a5   : > { %4091 = vmatpush1.bf16.msra.mxu0 %v4090_v60  ;;  %4083 = vmatpush1.bf16.msra.mxu1 %v4082_v5 }
 0x5a6   : > { %v3351_v63 = vpop.permute.xlu0 %3350  ;;  %v3349_v61 = vpop.permute.xlu1 %3348  ;;  %3964 = vmatprep.subr.msk.mxu1 %vm864_vm5, %v3399_v11 }
 0x5a7   : > { %v3400_v62 = vsel %vm1070_vm14, %v3347_v41, %v3349_v61  ;;  %v3401_v24 = vsel %vm1070_vm14, %v3349_v61, %v3351_v63 }
 0x5a8   : > { %3967 = vmatprep.subr.msk.mxu0 %vm864_vm5, %v3401_v24 }
 0x5a9   : > { %3965 = vmatpush1.msk.msra.mxu1 %vm864_vm5, %v3398_v10  ;;  %3968 = vmatpush1.msk.msra.mxu0 %vm864_vm5, %v3400_v62 }
 0x5aa   : > { %3966 = vmatmul.mubr.msk.f32.vlgmr.msra.gmra.mrb[12].mxu1 %vm1161_vm15, %v6995_v22  ;;  %3969 = vmatmul.mubr.msk.f32.vlgmr.msra.gmra.mrb[14].mxu0 %vm1161_vm15, %v6995_v22 }
 0x5b7   : > { %v3196_v17 = vpop.permute.xlu1 %3195 }
 0x65a   : > { %v3531_v6 = vpop.f32.mrb[10].mxu0 }
 0x65b   : > { %v3532_v57 = vadd.f32 %v3531_v6, %v3196_v17  ;;  %v3533_v34 = vpop.f32.mrb[11].mxu0 }
 0x65c   : > { %v3534_v58 = vadd.f32 %v3533_v34, %v3196_v17 }
 0x65d   : > { %v3820_v29 = vmax.f32 %v3532_v57, 0.0 }
 0x65e   : > { %v3821_v54 = vmax.f32 %v3534_v58, 0.0 }
 0x65f   : > { %v3830_v42 = vmul.f32 %v3820_v29, %v5829_v14 }
 0x660   : > { %v3831_v22 = vmul.f32 %v3821_v54, %v5833_v56 }
 0x661   : > { %3840 = vst [vmem:[%s7086_s15] sm:$0x3f] %v3830_v42 }
 0x662   : > { %3841 = vst [vmem:[%s7086_s15 + $0x8] sm:$0x3f] %v3831_v22  ;;  %v3602_v25 = vpop.f32.mrb[10].mxu1 }
 0x663   : > { %v3603_v9 = vadd.f32 %v3602_v25, %v3196_v17  ;;  %v3604_v7 = vpop.f32.mrb[11].mxu1 }
 0x664   : > { %v3605_v31 = vadd.f32 %v3604_v7, %v3196_v17 }
 0x665   : > { %v3822_v33 = vmax.f32 %v3603_v9, 0.0 }
 0x666   : > { %v3823_v37 = vmax.f32 %v3605_v31, 0.0 }
 0x667   : > { %v3832_v48 = vmul.f32 %v3822_v33, %v5848_v16 }
 0x668   : > { %v3833_v4 = vmul.f32 %v3823_v37, %v5853_v26 }
 0x669   : > { %3842 = vst [vmem:[%s7086_s15 + $0x10] sm:$0x3f] %v3832_v48 }
 0x66a   : > { %3843 = vst [vmem:[%s7086_s15 + $0x18] sm:$0x3f] %v3833_v4 }
 0x66e   : > { %v3673_v46 = vpop.f32.mrb[12].mxu0 }
 0x66f   : > { %v3674_v14 = vadd.f32 %v3673_v46, %v3196_v17  ;;  %v3675_v21 = vpop.f32.mrb[13].mxu0 }
 0x670   : > { %v3676_v56 = vadd.f32 %v3675_v21, %v3196_v17 }
 0x671   : > { %v3824_v49 = vmax.f32 %v3674_v14, 0.0 }
 0x672   : > { %v3825_v27 = vmax.f32 %v3676_v56, 0.0 }
 0x673   : > { %v3834_v59 = vmul.f32 %v3824_v49, %v5859_v28 }
 0x674   : > { %v3835_v36 = vmul.f32 %v3825_v27, %v5865_v15 }
 0x675   : > { %3844 = vst [vmem:[%s7086_s15 + $0x20] sm:$0x3f] %v3834_v59 }
 0x676   : > { %3845 = vst [vmem:[%s7086_s15 + $0x28] sm:$0x3f] %v3835_v36 }
 0x67d   : > { %v3744_v30 = vpop.f32.mrb[12].mxu1  ;;  %v3815_v51 = vpop.f32.mrb[14].mxu0 }
 0x67e   : > { %v3745_v16 = vadd.f32 %v3744_v30, %v3196_v17  ;;  %v3816_v26 = vadd.f32 %v3815_v51, %v3196_v17  ;;  %v3746_v23 = vpop.f32.mrb[13].mxu1  ;;  %v3817_v8 = vpop.f32.mrb[15].mxu0 }
 0x67f   : > { %v3747_v52 = vadd.f32 %v3746_v23, %v3196_v17  ;;  %v3818_v3 = vadd.f32 %v3817_v8, %v3196_v17 }
 0x680   : > { %v3826_v47 = vmax.f32 %v3745_v16, 0.0  ;;  %v3828_v44 = vmax.f32 %v3816_v26, 0.0 }
 0x681   : > { %v3827_v53 = vmax.f32 %v3747_v52, 0.0  ;;  %v3829_v28 = vmax.f32 %v3818_v3, 0.0 }
 0x682   : > { %v3836_v15 = vmul.f32 %v3826_v47, %v5898_v20  ;;  %v3838_v2 = vmul.f32 %v3828_v44, %v5901_v50 }
 0x683   : > { %v3837_v0 = vmul.f32 %v3827_v53, %v7151_v19  ;;  %v3839_v38 = vmul.f32 %v3829_v28, %v7152_v35 }
 0x684   : > { %3846 = vst [vmem:[%s7086_s15 + $0x30] sm:$0x3f] %v3836_v15  ;;  %3848 = vst [vmem:[%s7086_s15 + $0x40] sm:$0x3f] %v3838_v2 }
 0x685   : > { %3847 = vst [vmem:[%s7086_s15 + $0x38] sm:$0x3f] %v3837_v0  ;;  %3849 = vst [vmem:[%s7086_s15 + $0x48] sm:$0x3f] %v3839_v38 }
 0x686 PF: > { %s20_s13 = sadd.s32 1, %s5032_s13  }
 0x687   : > { %p17_p4 = scmp.ge.s32.totalorder %s20_s13, 4  }
 0x689   :  { %19 = sbr.rel (!%p17_p4) target bundleno = 1 (0x1), region = 93 }

</bundles_post_ra>
